<compile_context>
chip_gen: v7x
topology: tpu7x:2x2x1
jax: 0.10.0
libtpu: 0.0.40
codegen_flags: <defaults>
</compile_context>

<pallas_src>
import jax
import jax.numpy as jnp
from jax.experimental import pallas as pl
from jax.experimental.pallas import tpu as pltpu


# ----------------------------- Pallas kernel --------------------------------

def _leaky_relu(x, slope=0.2):
    return jnp.where(x > 0, x, slope * x)


def vae_forward_kernel(
    # per-tile inputs
    x_ref, eps_ref,
    # VMEM-resident weights (constant index_map, single-buffered)
    w_e1_ref, b_e1_ref,          # encoder linear 1: input_dim -> hidden_dim
    w_e2_ref, b_e2_ref,          # encoder linear 2: hidden_dim -> latent_dim
    w_hd_ref, b_hd_ref,          # fused heads:      latent_dim -> 4 (mean||logvar)
    w_d1_ref, b_d1_ref,          # decoder linear 1: 2 -> latent_dim (kept f32)
    w_d2_ref, b_d2_ref,          # decoder linear 2: latent_dim -> hidden_dim
    w_d3_ref, b_d3_ref,          # decoder linear 3: hidden_dim -> input_dim
    # outputs
    xhat_ref, ml_ref,
):
    mm = w_e1_ref.dtype  # matmul-operand dtype (bf16 or f32); accumulate in f32

    # ---- encoder ----
    h1 = _leaky_relu(
        jnp.dot(x_ref[...].astype(mm), w_e1_ref[...],
                preferred_element_type=jnp.float32) + b_e1_ref[...])
    h2 = _leaky_relu(
        jnp.dot(h1.astype(mm), w_e2_ref[...],
                preferred_element_type=jnp.float32) + b_e2_ref[...])

    # ---- fused mean/logvar heads: one MXU push, one packed [tb, 4] result ----
    heads = (jnp.dot(h2.astype(mm), w_hd_ref[...],
                     preferred_element_type=jnp.float32) + b_hd_ref[...])
    mean = heads[:, 0:2]
    logvar = heads[:, 2:4]

    # ---- reparameterization (matches the module: uses logvar directly) ----
    z = mean + logvar * eps_ref[...]

    # ---- decoder ----
    # K=2 layer as two exact f32 rank-1 broadcast-multiply-adds (cheap VPU work,
    # identical math to z @ w_d1).
    d1 = _leaky_relu(z[:, 0:1] * w_d1_ref[0:1, :]
                     + z[:, 1:2] * w_d1_ref[1:2, :]
                     + b_d1_ref[...])
    d2 = _leaky_relu(
        jnp.dot(d1.astype(mm), w_d2_ref[...],
                preferred_element_type=jnp.float32) + b_d2_ref[...])
    d3 = (jnp.dot(d2.astype(mm), w_d3_ref[...],
                  preferred_element_type=jnp.float32) + b_d3_ref[...])

    xhat_ref[...] = jax.nn.sigmoid(d3).astype(xhat_ref.dtype)
    ml_ref[...] = heads          # packed store: [:, 0:2]=mean, [:, 2:4]=logvar


# ------------------------------ wrapper --------------------------------------

def _const_spec(arr):
    """Full-array block, constant index map, single-buffered (block never changes)."""
    return pl.BlockSpec(arr.shape, lambda i: (0, 0),
                        pipeline_mode=pl.Buffered(buffer_count=1))


def _choose_batch_tile(batch, input_dim, hidden_dim, latent_dim,
                       vmem_budget_bytes=12 << 20):
    """Largest-tile-first heuristic.

    Whole batch in one tile when it fits the VMEM budget; two equal tiles
    (one per v7x TensorCore) once the batch is large enough to amortize the
    extra grid step; otherwise a VMEM-budgeted multiple-of-8 tile (Pallas
    handles the partial final block, so the batch is never padded).
    """
    # Rough per-row f32 footprint: double-buffered x / x_hat tiles + f32
    # intermediate activations of one tile.
    per_row_bytes = 4 * (4 * input_dim + 2 * hidden_dim + 2 * latent_dim + 16)
    max_rows = max(8, (vmem_budget_bytes // per_row_bytes) // 8 * 8)
    if batch <= max_rows:
        half = batch // 2
        if batch >= 512 and batch % 2 == 0 and half % 8 == 0 and half <= max_rows:
            return half                      # exactly 2 parallel tiles (v7x: 1/TC)
        return batch                         # single whole-batch tile
    return max_rows


def prepare_params(params, matmul_dtype=jnp.bfloat16):
    """One-time preprocessing (hoisted out of the per-call path): fuse the
    mean/logvar heads into one [latent, 4] weight and cast the large matmul
    weights to `matmul_dtype`.  Biases and the tiny K=2 decoder-in weight stay
    float32 (added / applied after f32 accumulation)."""
    mm = matmul_dtype
    w_hd = jnp.concatenate([params["w_mu"], params["w_lv"]], axis=1).astype(mm)
    b_hd = jnp.concatenate([params["b_mu"], params["b_lv"]], axis=1)
    return (
        params["w_e1"].astype(mm), params["b_e1"],
        params["w_e2"].astype(mm), params["b_e2"],
        w_hd, b_hd,
        params["w_d1"], params["b_d1"],
        params["w_d2"].astype(mm), params["b_d2"],
        params["w_d3"].astype(mm), params["b_d3"],
    )


@jax.jit
def vae_forward(x, eps, prepared):
    """Fused VAE forward.

    x:        [B, input_dim] float32
    eps:      [B, 2] float32 reparameterization noise (== torch.randn_like)
    prepared: output of prepare_params()
    Returns (x_hat [B, input_dim], mean [B, 2], logvar [B, 2]) in float32.
    """
    B, input_dim = x.shape
    hidden_dim = prepared[0].shape[1]
    latent_dim = prepared[2].shape[1]
    tb = _choose_batch_tile(B, input_dim, hidden_dim, latent_dim)
    grid = (pl.cdiv(B, tb),)

    in_specs = [
        pl.BlockSpec((tb, input_dim), lambda i: (i, 0)),   # x tile
        pl.BlockSpec((tb, 2), lambda i: (i, 0)),           # eps tile
    ] + [_const_spec(w) for w in prepared]
    out_specs = [
        pl.BlockSpec((tb, input_dim), lambda i: (i, 0)),   # x_hat tile
        pl.BlockSpec((tb, 4), lambda i: (i, 0)),           # packed mean||logvar
    ]
    out_shapes = (
        jax.ShapeDtypeStruct((B, input_dim), jnp.float32),
        jax.ShapeDtypeStruct((B, 4), jnp.float32),
    )

    x_hat, ml = pl.pallas_call(
        vae_forward_kernel,
        out_shape=out_shapes,
        grid_spec=pltpu.PrefetchScalarGridSpec(
            num_scalar_prefetch=0,
            grid=grid,
            in_specs=in_specs,
            out_specs=out_specs,
        ),
        compiler_params=pltpu.CompilerParams(
            dimension_semantics=("parallel",),
        ),
    )(x, eps, *prepared)

    return x_hat, ml[:, 0:2], ml[:, 2:4]


# --------------------------- parameter init -----------------------------------

def init_linear(key, fan_in, fan_out):
    """PyTorch nn.Linear default init: U(-1/sqrt(fan_in), 1/sqrt(fan_in))."""
    kw, kb = jax.random.split(key)
    bound = 1.0 / jnp.sqrt(jnp.float32(fan_in))
    w = jax.random.uniform(kw, (fan_in, fan_out), jnp.float32, -bound, bound)
    b = jax.random.uniform(kb, (1, fan_out), jnp.float32, -bound, bound)
    return w, b


def init_vae_params(key, input_dim, hidden_dim, latent_dim):
    keys = jax.random.split(key, 7)
    p = {}
    p["w_e1"], p["b_e1"] = init_linear(keys[0], input_dim, hidden_dim)
    p["w_e2"], p["b_e2"] = init_linear(keys[1], hidden_dim, latent_dim)
    p["w_mu"], p["b_mu"] = init_linear(keys[2], latent_dim, 2)
    p["w_lv"], p["b_lv"] = init_linear(keys[3], latent_dim, 2)
    p["w_d1"], p["b_d1"] = init_linear(keys[4], 2, latent_dim)
    p["w_d2"], p["b_d2"] = init_linear(keys[5], latent_dim, hidden_dim)
    p["w_d3"], p["b_d3"] = init_linear(keys[6], hidden_dim, input_dim)
    return p


# -------------------------- reference (plain JAX) ------------------------------

def vae_forward_ref(x, eps, p, matmul_dtype=jnp.float32):
    """Pure-JAX reference of the same math; optionally mirrors the kernel's
    bf16-operand / f32-accumulate matmul path."""
    mm = matmul_dtype
    dot = lambda a, w: jnp.dot(a.astype(mm), w.astype(mm),
                               preferred_element_type=jnp.float32)
    lrelu = lambda v: jnp.where(v > 0, v, 0.2 * v)
    h1 = lrelu(dot(x, p["w_e1"]) + p["b_e1"])
    h2 = lrelu(dot(h1, p["w_e2"]) + p["b_e2"])
    mean = dot(h2, p["w_mu"]) + p["b_mu"]
    logvar = dot(h2, p["w_lv"]) + p["b_lv"]
    z = mean + logvar * eps
    d1 = lrelu(z @ p["w_d1"] + p["b_d1"])        # K=2 layer kept in f32
    d2 = lrelu(dot(d1, p["w_d2"]) + p["b_d2"])
    x_hat = jax.nn.sigmoid(dot(d2, p["w_d3"]) + p["b_d3"])
    return x_hat, mean, logvar


# ----------------------------------- main --------------------------------------

if __name__ == "__main__":
    # Module-consistent (flattened-image MLP VAE) but small, MXU-friendly shapes.
    BATCH = 256        # -> single whole-batch tile, grid=(1,)
    INPUT_DIM = 256    # stands in for 784
    HIDDEN_DIM = 128   # stands in for 400
    LATENT_DIM = 128   # stands in for 200 (bottleneck stays at 2, as in module)

    root = jax.random.PRNGKey(0)
    k_params, k_x, k_eps = jax.random.split(root, 3)

    params = init_vae_params(k_params, INPUT_DIM, HIDDEN_DIM, LATENT_DIM)
    x = jax.random.uniform(k_x, (BATCH, INPUT_DIM), jnp.float32)   # image-like [0,1)
    eps = jax.random.normal(k_eps, (BATCH, 2), jnp.float32)        # torch.randn_like

    # --- bf16-operand path (MXU-native on v5e/v6e/v7x; f32 accumulation) ---
    prepared_bf16 = prepare_params(params, jnp.bfloat16)
    x_hat, mean, logvar = vae_forward(x, eps, prepared_bf16)
    jax.block_until_ready((x_hat, mean, logvar))

    x_hat_r, mean_r, logvar_r = vae_forward_ref(x, eps, params, jnp.bfloat16)
    assert x_hat.shape == (BATCH, INPUT_DIM)
    assert mean.shape == (BATCH, 2) and logvar.shape == (BATCH, 2)
    assert jnp.allclose(x_hat, x_hat_r, atol=3e-2, rtol=3e-2)
    assert jnp.allclose(mean, mean_r, atol=3e-2, rtol=3e-2)
    assert jnp.allclose(logvar, logvar_r, atol=3e-2, rtol=3e-2)

    # --- f32 path: strict validation of the kernel math itself ---
    prepared_f32 = prepare_params(params, jnp.float32)
    x_hat32, mean32, logvar32 = vae_forward(x, eps, prepared_f32)
    jax.block_until_ready((x_hat32, mean32, logvar32))
    x_hat_r32, mean_r32, logvar_r32 = vae_forward_ref(x, eps, params, jnp.float32)
    assert jnp.allclose(x_hat32, x_hat_r32, atol=1e-4, rtol=1e-4)
    assert jnp.allclose(mean32, mean_r32, atol=1e-4, rtol=1e-4)
    assert jnp.allclose(logvar32, logvar_r32, atol=1e-4, rtol=1e-4)

    print("KERNEL_OK")
</pallas_src>

<mosaic_0001>
module attributes {stable_mosaic.version = 11 : i64} {
  func.func @vae_forward_kernel(%arg0: i32, %arg1: memref<256x256xf32, #tpu.memory_space<vmem>>, %arg2: memref<256x2xf32, #tpu.memory_space<vmem>>, %arg3: memref<256x128xbf16, #tpu.memory_space<vmem>>, %arg4: memref<1x128xf32, #tpu.memory_space<vmem>>, %arg5: memref<128x128xbf16, #tpu.memory_space<vmem>>, %arg6: memref<1x128xf32, #tpu.memory_space<vmem>>, %arg7: memref<128x4xbf16, #tpu.memory_space<vmem>>, %arg8: memref<1x4xf32, #tpu.memory_space<vmem>>, %arg9: memref<2x128xf32, #tpu.memory_space<vmem>>, %arg10: memref<1x128xf32, #tpu.memory_space<vmem>>, %arg11: memref<128x128xbf16, #tpu.memory_space<vmem>>, %arg12: memref<1x128xf32, #tpu.memory_space<vmem>>, %arg13: memref<128x256xbf16, #tpu.memory_space<vmem>>, %arg14: memref<1x256xf32, #tpu.memory_space<vmem>>, %arg15: memref<256x256xf32, #tpu.memory_space<vmem>>, %arg16: memref<256x4xf32, #tpu.memory_space<vmem>>) attributes {dimension_semantics = [#tpu.dimension_semantics<parallel>], iteration_bounds = array<i64: 1>, scalar_prefetch = 0 : i64, scratch_operands = 0 : i64, tpu.core_type = #tpu.core_type<tc>, window_params = [{transform_indices = @transform_0, window_bounds = array<i64: 256, 256>}, {transform_indices = @transform_1, window_bounds = array<i64: 256, 2>}, {pipeline_mode = #tpu.pipeline_mode<synchronous>, transform_indices = @transform_2, window_bounds = array<i64: 256, 128>}, {pipeline_mode = #tpu.pipeline_mode<synchronous>, transform_indices = @transform_3, window_bounds = array<i64: 1, 128>}, {pipeline_mode = #tpu.pipeline_mode<synchronous>, transform_indices = @transform_4, window_bounds = array<i64: 128, 128>}, {pipeline_mode = #tpu.pipeline_mode<synchronous>, transform_indices = @transform_5, window_bounds = array<i64: 1, 128>}, {pipeline_mode = #tpu.pipeline_mode<synchronous>, transform_indices = @transform_6, window_bounds = array<i64: 128, 4>}, {pipeline_mode = #tpu.pipeline_mode<synchronous>, transform_indices = @transform_7, window_bounds = array<i64: 1, 4>}, {pipeline_mode = #tpu.pipeline_mode<synchronous>, transform_indices = @transform_8, window_bounds = array<i64: 2, 128>}, {pipeline_mode = #tpu.pipeline_mode<synchronous>, transform_indices = @transform_9, window_bounds = array<i64: 1, 128>}, {pipeline_mode = #tpu.pipeline_mode<synchronous>, transform_indices = @transform_10, window_bounds = array<i64: 128, 128>}, {pipeline_mode = #tpu.pipeline_mode<synchronous>, transform_indices = @transform_11, window_bounds = array<i64: 1, 128>}, {pipeline_mode = #tpu.pipeline_mode<synchronous>, transform_indices = @transform_12, window_bounds = array<i64: 128, 256>}, {pipeline_mode = #tpu.pipeline_mode<synchronous>, transform_indices = @transform_13, window_bounds = array<i64: 1, 256>}, {transform_indices = @transform_14, window_bounds = array<i64: 256, 256>}, {transform_indices = @transform_15, window_bounds = array<i64: 256, 4>}]} {
    %c0 = arith.constant 0 : index
    %c0_0 = arith.constant 0 : index
    %0 = vector.load %arg1[%c0, %c0_0] : memref<256x256xf32, #tpu.memory_space<vmem>>, vector<256x256xf32>
    %1 = arith.truncf %0 : vector<256x256xf32> to vector<256x256xbf16>
    %c0_1 = arith.constant 0 : index
    %c0_2 = arith.constant 0 : index
    %2 = vector.load %arg3[%c0_1, %c0_2] : memref<256x128xbf16, #tpu.memory_space<vmem>>, vector<256x128xbf16>
    %cst = arith.constant dense<0.000000e+00> : vector<256x128xf32>
    %3 = tpu.matmul %1, %2, %cst {dimension_numbers = #tpu.dot_dimension_numbers<[1], [0], [0], [1], [0, 0, 1, 1], [], []>} : vector<256x256xbf16>, vector<256x128xbf16>, vector<256x128xf32> -> vector<256x128xf32>
    %c0_3 = arith.constant 0 : index
    %c0_4 = arith.constant 0 : index
    %4 = vector.load %arg4[%c0_3, %c0_4] : memref<1x128xf32, #tpu.memory_space<vmem>>, vector<1x128xf32>
    %5 = vector.broadcast %4 : vector<1x128xf32> to vector<256x128xf32>
    %6 = arith.addf %3, %5 : vector<256x128xf32>
    %cst_5 = arith.constant 0.000000e+00 : f32
    %7 = vector.broadcast %cst_5 : f32 to vector<256x128xf32>
    %8 = arith.cmpf ogt, %6, %7 : vector<256x128xf32>
    %cst_6 = arith.constant 2.000000e-01 : f32
    %9 = vector.broadcast %cst_6 : f32 to vector<256x128xf32>
    %10 = arith.mulf %9, %6 : vector<256x128xf32>
    %11 = arith.select %8, %6, %10 : vector<256x128xi1>, vector<256x128xf32>
    %12 = arith.truncf %11 : vector<256x128xf32> to vector<256x128xbf16>
    %c0_7 = arith.constant 0 : index
    %c0_8 = arith.constant 0 : index
    %13 = vector.load %arg5[%c0_7, %c0_8] : memref<128x128xbf16, #tpu.memory_space<vmem>>, vector<128x128xbf16>
    %cst_9 = arith.constant dense<0.000000e+00> : vector<256x128xf32>
    %14 = tpu.matmul %12, %13, %cst_9 {dimension_numbers = #tpu.dot_dimension_numbers<[1], [0], [0], [1], [0, 0, 1, 1], [], []>} : vector<256x128xbf16>, vector<128x128xbf16>, vector<256x128xf32> -> vector<256x128xf32>
    %c0_10 = arith.constant 0 : index
    %c0_11 = arith.constant 0 : index
    %15 = vector.load %arg6[%c0_10, %c0_11] : memref<1x128xf32, #tpu.memory_space<vmem>>, vector<1x128xf32>
    %16 = vector.broadcast %15 : vector<1x128xf32> to vector<256x128xf32>
    %17 = arith.addf %14, %16 : vector<256x128xf32>
    %cst_12 = arith.constant 0.000000e+00 : f32
    %18 = vector.broadcast %cst_12 : f32 to vector<256x128xf32>
    %19 = arith.cmpf ogt, %17, %18 : vector<256x128xf32>
    %cst_13 = arith.constant 2.000000e-01 : f32
    %20 = vector.broadcast %cst_13 : f32 to vector<256x128xf32>
    %21 = arith.mulf %20, %17 : vector<256x128xf32>
    %22 = arith.select %19, %17, %21 : vector<256x128xi1>, vector<256x128xf32>
    %23 = arith.truncf %22 : vector<256x128xf32> to vector<256x128xbf16>
    %c0_14 = arith.constant 0 : index
    %c0_15 = arith.constant 0 : index
    %24 = vector.load %arg7[%c0_14, %c0_15] : memref<128x4xbf16, #tpu.memory_space<vmem>>, vector<128x4xbf16>
    %cst_16 = arith.constant dense<0.000000e+00> : vector<256x4xf32>
    %25 = tpu.matmul %23, %24, %cst_16 {dimension_numbers = #tpu.dot_dimension_numbers<[1], [0], [0], [1], [0, 0, 1, 1], [], []>} : vector<256x128xbf16>, vector<128x4xbf16>, vector<256x4xf32> -> vector<256x4xf32>
    %c0_17 = arith.constant 0 : index
    %c0_18 = arith.constant 0 : index
    %26 = vector.load %arg8[%c0_17, %c0_18] : memref<1x4xf32, #tpu.memory_space<vmem>>, vector<1x4xf32>
    %27 = vector.broadcast %26 : vector<1x4xf32> to vector<256x4xf32>
    %28 = arith.addf %25, %27 : vector<256x4xf32>
    %29 = vector.extract_strided_slice %28 {offsets = [0, 0], sizes = [256, 2], strides = [1, 1]} : vector<256x4xf32> to vector<256x2xf32>
    %30 = vector.extract_strided_slice %28 {offsets = [0, 2], sizes = [256, 2], strides = [1, 1]} : vector<256x4xf32> to vector<256x2xf32>
    %c0_19 = arith.constant 0 : index
    %c0_20 = arith.constant 0 : index
    %31 = vector.load %arg2[%c0_19, %c0_20] : memref<256x2xf32, #tpu.memory_space<vmem>>, vector<256x2xf32>
    %32 = arith.mulf %30, %31 : vector<256x2xf32>
    %33 = arith.addf %29, %32 : vector<256x2xf32>
    %34 = vector.extract_strided_slice %33 {offsets = [0, 0], sizes = [256, 1], strides = [1, 1]} : vector<256x2xf32> to vector<256x1xf32>
    %c0_21 = arith.constant 0 : index
    %c0_22 = arith.constant 0 : index
    %35 = vector.load %arg9[%c0_21, %c0_22] : memref<2x128xf32, #tpu.memory_space<vmem>>, vector<1x128xf32>
    %36 = vector.broadcast %34 : vector<256x1xf32> to vector<256x128xf32>
    %37 = vector.broadcast %35 : vector<1x128xf32> to vector<256x128xf32>
    %38 = arith.mulf %36, %37 : vector<256x128xf32>
    %39 = vector.extract_strided_slice %33 {offsets = [0, 1], sizes = [256, 1], strides = [1, 1]} : vector<256x2xf32> to vector<256x1xf32>
    %c1 = arith.constant 1 : index
    %c0_23 = arith.constant 0 : index
    %40 = vector.load %arg9[%c1, %c0_23] : memref<2x128xf32, #tpu.memory_space<vmem>>, vector<1x128xf32>
    %41 = vector.broadcast %39 : vector<256x1xf32> to vector<256x128xf32>
    %42 = vector.broadcast %40 : vector<1x128xf32> to vector<256x128xf32>
    %43 = arith.mulf %41, %42 : vector<256x128xf32>
    %44 = arith.addf %38, %43 : vector<256x128xf32>
    %c0_24 = arith.constant 0 : index
    %c0_25 = arith.constant 0 : index
    %45 = vector.load %arg10[%c0_24, %c0_25] : memref<1x128xf32, #tpu.memory_space<vmem>>, vector<1x128xf32>
    %46 = vector.broadcast %45 : vector<1x128xf32> to vector<256x128xf32>
    %47 = arith.addf %44, %46 : vector<256x128xf32>
    %cst_26 = arith.constant 0.000000e+00 : f32
    %48 = vector.broadcast %cst_26 : f32 to vector<256x128xf32>
    %49 = arith.cmpf ogt, %47, %48 : vector<256x128xf32>
    %cst_27 = arith.constant 2.000000e-01 : f32
    %50 = vector.broadcast %cst_27 : f32 to vector<256x128xf32>
    %51 = arith.mulf %50, %47 : vector<256x128xf32>
    %52 = arith.select %49, %47, %51 : vector<256x128xi1>, vector<256x128xf32>
    %53 = arith.truncf %52 : vector<256x128xf32> to vector<256x128xbf16>
    %c0_28 = arith.constant 0 : index
    %c0_29 = arith.constant 0 : index
    %54 = vector.load %arg11[%c0_28, %c0_29] : memref<128x128xbf16, #tpu.memory_space<vmem>>, vector<128x128xbf16>
    %cst_30 = arith.constant dense<0.000000e+00> : vector<256x128xf32>
    %55 = tpu.matmul %53, %54, %cst_30 {dimension_numbers = #tpu.dot_dimension_numbers<[1], [0], [0], [1], [0, 0, 1, 1], [], []>} : vector<256x128xbf16>, vector<128x128xbf16>, vector<256x128xf32> -> vector<256x128xf32>
    %c0_31 = arith.constant 0 : index
    %c0_32 = arith.constant 0 : index
    %56 = vector.load %arg12[%c0_31, %c0_32] : memref<1x128xf32, #tpu.memory_space<vmem>>, vector<1x128xf32>
    %57 = vector.broadcast %56 : vector<1x128xf32> to vector<256x128xf32>
    %58 = arith.addf %55, %57 : vector<256x128xf32>
    %cst_33 = arith.constant 0.000000e+00 : f32
    %59 = vector.broadcast %cst_33 : f32 to vector<256x128xf32>
    %60 = arith.cmpf ogt, %58, %59 : vector<256x128xf32>
    %cst_34 = arith.constant 2.000000e-01 : f32
    %61 = vector.broadcast %cst_34 : f32 to vector<256x128xf32>
    %62 = arith.mulf %61, %58 : vector<256x128xf32>
    %63 = arith.select %60, %58, %62 : vector<256x128xi1>, vector<256x128xf32>
    %64 = arith.truncf %63 : vector<256x128xf32> to vector<256x128xbf16>
    %c0_35 = arith.constant 0 : index
    %c0_36 = arith.constant 0 : index
    %65 = vector.load %arg13[%c0_35, %c0_36] : memref<128x256xbf16, #tpu.memory_space<vmem>>, vector<128x256xbf16>
    %cst_37 = arith.constant dense<0.000000e+00> : vector<256x256xf32>
    %66 = tpu.matmul %64, %65, %cst_37 {dimension_numbers = #tpu.dot_dimension_numbers<[1], [0], [0], [1], [0, 0, 1, 1], [], []>} : vector<256x128xbf16>, vector<128x256xbf16>, vector<256x256xf32> -> vector<256x256xf32>
    %c0_38 = arith.constant 0 : index
    %c0_39 = arith.constant 0 : index
    %67 = vector.load %arg14[%c0_38, %c0_39] : memref<1x256xf32, #tpu.memory_space<vmem>>, vector<1x256xf32>
    %68 = vector.broadcast %67 : vector<1x256xf32> to vector<256x256xf32>
    %69 = arith.addf %66, %68 : vector<256x256xf32>
    %70 = arith.negf %69 : vector<256x256xf32>
    %71 = math.exp %70 : vector<256x256xf32>
    %cst_40 = arith.constant 1.000000e+00 : f32
    %72 = vector.broadcast %cst_40 : f32 to vector<256x256xf32>
    %73 = arith.addf %72, %71 : vector<256x256xf32>
    %74 = arith.divf %72, %73 : vector<256x256xf32>
    %c0_41 = arith.constant 0 : index
    %c0_42 = arith.constant 0 : index
    %75 = vector.load %arg15[%c0_41, %c0_42] : memref<256x256xf32, #tpu.memory_space<vmem>>, vector<256x256xf32>
    tpu.vector_store %arg15[%c0_41, %c0_42], %74 {strides = array<i32>} : memref<256x256xf32, #tpu.memory_space<vmem>>, vector<256x256xf32>,
    %c0_43 = arith.constant 0 : index
    %c0_44 = arith.constant 0 : index
    %76 = vector.load %arg16[%c0_43, %c0_44] : memref<256x4xf32, #tpu.memory_space<vmem>>, vector<256x4xf32>
    tpu.vector_store %arg16[%c0_43, %c0_44], %28 {strides = array<i32>} : memref<256x4xf32, #tpu.memory_space<vmem>>, vector<256x4xf32>,
    return
  }
  func.func @transform_0(%arg0: i32) -> (i32, i32) {
    %c0_i32 = arith.constant 0 : i32
    %c0_i32_0 = arith.constant 0 : i32
    return %arg0, %c0_i32 : i32, i32
  }
  func.func @transform_1(%arg0: i32) -> (i32, i32) {
    %c0_i32 = arith.constant 0 : i32
    %c0_i32_0 = arith.constant 0 : i32
    return %arg0, %c0_i32 : i32, i32
  }
  func.func @transform_2(%arg0: i32) -> (i32, i32) {
    %c0_i32 = arith.constant 0 : i32
    %c0_i32_0 = arith.constant 0 : i32
    %c0_i32_1 = arith.constant 0 : i32
    return %c0_i32, %c0_i32_0 : i32, i32
  }
  func.func @transform_3(%arg0: i32) -> (i32, i32) {
    %c0_i32 = arith.constant 0 : i32
    %c0_i32_0 = arith.constant 0 : i32
    %c0_i32_1 = arith.constant 0 : i32
    return %c0_i32, %c0_i32_0 : i32, i32
  }
  func.func @transform_4(%arg0: i32) -> (i32, i32) {
    %c0_i32 = arith.constant 0 : i32
    %c0_i32_0 = arith.constant 0 : i32
    %c0_i32_1 = arith.constant 0 : i32
    return %c0_i32, %c0_i32_0 : i32, i32
  }
  func.func @transform_5(%arg0: i32) -> (i32, i32) {
    %c0_i32 = arith.constant 0 : i32
    %c0_i32_0 = arith.constant 0 : i32
    %c0_i32_1 = arith.constant 0 : i32
    return %c0_i32, %c0_i32_0 : i32, i32
  }
  func.func @transform_6(%arg0: i32) -> (i32, i32) {
    %c0_i32 = arith.constant 0 : i32
    %c0_i32_0 = arith.constant 0 : i32
    %c0_i32_1 = arith.constant 0 : i32
    return %c0_i32, %c0_i32_0 : i32, i32
  }
  func.func @transform_7(%arg0: i32) -> (i32, i32) {
    %c0_i32 = arith.constant 0 : i32
    %c0_i32_0 = arith.constant 0 : i32
    %c0_i32_1 = arith.constant 0 : i32
    return %c0_i32, %c0_i32_0 : i32, i32
  }
  func.func @transform_8(%arg0: i32) -> (i32, i32) {
    %c0_i32 = arith.constant 0 : i32
    %c0_i32_0 = arith.constant 0 : i32
    %c0_i32_1 = arith.constant 0 : i32
    return %c0_i32, %c0_i32_0 : i32, i32
  }
  func.func @transform_9(%arg0: i32) -> (i32, i32) {
    %c0_i32 = arith.constant 0 : i32
    %c0_i32_0 = arith.constant 0 : i32
    %c0_i32_1 = arith.constant 0 : i32
    return %c0_i32, %c0_i32_0 : i32, i32
  }
  func.func @transform_10(%arg0: i32) -> (i32, i32) {
    %c0_i32 = arith.constant 0 : i32
    %c0_i32_0 = arith.constant 0 : i32
    %c0_i32_1 = arith.constant 0 : i32
    return %c0_i32, %c0_i32_0 : i32, i32
  }
  func.func @transform_11(%arg0: i32) -> (i32, i32) {
    %c0_i32 = arith.constant 0 : i32
    %c0_i32_0 = arith.constant 0 : i32
    %c0_i32_1 = arith.constant 0 : i32
    return %c0_i32, %c0_i32_0 : i32, i32
  }
  func.func @transform_12(%arg0: i32) -> (i32, i32) {
    %c0_i32 = arith.constant 0 : i32
    %c0_i32_0 = arith.constant 0 : i32
    %c0_i32_1 = arith.constant 0 : i32
    return %c0_i32, %c0_i32_0 : i32, i32
  }
  func.func @transform_13(%arg0: i32) -> (i32, i32) {
    %c0_i32 = arith.constant 0 : i32
    %c0_i32_0 = arith.constant 0 : i32
    %c0_i32_1 = arith.constant 0 : i32
    return %c0_i32, %c0_i32_0 : i32, i32
  }
  func.func @transform_14(%arg0: i32) -> (i32, i32) {
    %c0_i32 = arith.constant 0 : i32
    %c0_i32_0 = arith.constant 0 : i32
    return %arg0, %c0_i32 : i32, i32
  }
  func.func @transform_15(%arg0: i32) -> (i32, i32) {
    %c0_i32 = arith.constant 0 : i32
    %c0_i32_0 = arith.constant 0 : i32
    return %arg0, %c0_i32 : i32, i32
  }
}

</mosaic_0001>

<bundles_post_ra>
// kernel: vae_forward.1
= control target key start
LH: loop header
LB: loop body
LE: loop exit
PB: predicated region body
PF: predicated region fallthrough
CT: control target
= control target key end

     0   :  { %21 = vsyncpa [#allocation3], 0  ;;  %s5277_s0 = inlined_call_operand.hbm [shape: f32[256,256], index: 0, kind: input, shape index: {}]   ;;  %s5278_s1 = inlined_call_operand.vmem [shape: f32[256,2], index: 1, kind: input, shape index: {}]   ;;  %s5279_s2 = inlined_call_operand.vmem [shape: bf16[256,128], index: 2, kind: input, shape index: {}]   ;;  %s5280_s3 = inlined_call_operand.vmem [shape: f32[1,128], index: 3, kind: input, shape index: {}]   ;;  %s5281_s4 = inlined_call_operand.vmem [shape: bf16[128,128], index: 4, kind: input, shape index: {}]   ;;  %s5282_s5 = inlined_call_operand.vmem [shape: f32[1,128], index: 5, kind: input, shape index: {}]   ;;  %s5283_s6 = inlined_call_operand.vmem [shape: bf16[128,4], index: 6, kind: input, shape index: {}]   ;;  %s5284_s7 = inlined_call_operand.vmem [shape: f32[1,4], index: 7, kind: input, shape index: {}]   ;;  %s5285_s8 = inlined_call_operand.vmem [shape: f32[2,128], index: 8, kind: input, shape index: {}]   ;;  %s5286_s9 = inlined_call_operand.vmem [shape: f32[1,128], index: 9, kind: input, shape index: {}]   ;;  %s5287_s10 = inlined_call_operand.hbm [shape: bf16[128,128], index: 10, kind: input, shape index: {}]   ;;  %s5288_s11 = inlined_call_operand.vmem [shape: f32[1,128], index: 11, kind: input, shape index: {}]   ;;  %s5289_s12 = inlined_call_operand.vmem [shape: bf16[128,256], index: 12, kind: input, shape index: {}]   ;;  %s5290_s13 = inlined_call_operand.vmem [shape: f32[1,256], index: 13, kind: input, shape index: {}]   ;;  %s5291_s14 = inlined_call_operand.hbm [shape: f32[256,256], index: 14, kind: output, shape index: {0}]   ;;  %s5292_s15 = inlined_call_operand.vmem [shape: f32[256,4], index: 15, kind: output, shape index: {1}]  }
   0x1   :  { %22 = vsyncpa [#allocation6], 0 }
   0x2   :  { %23 = vsyncpa [#allocation4], 0  ;;  %s4127_s18 = smov [#allocation2]   ;;  %s4055_s22 = scalar_lea.hbm %s5277_s0, 8192 }
   0x3   :  { %s29_s19 = sshll.u32 %s4127_s18, 4  ;;  %p4056_p0 = scmp.ne.s32.totalorder %s5277_s0, %s4055_s22  ;;  %s30_s19 = int_to_ptr.vmem [resolvable:$true] %s29_s19 }
   0x4   :  { %p4059_p1 = scmp.lt.u32.totalorder %s4055_s22, %s5277_s0 }
   0x6   :  { %p4061_p2 = pnand %p4059_p1, %p4056_p0 }
   0x8   :  { %4064 = shalt.err (!%p4061_p2)
}
   0x9   :  { %s4065_s27 = scalar_lea.vmem %s30_s19, 8192  ;;  %p4070_p4 = scmp.lt.s32.totalorder %s30_s19, %s30_s19 }
   0xa   :  { %p4066_p3 = scmp.ne.s32.totalorder %s30_s19, %s4065_s27  ;;  %p4071_p5 = scmp.lt.s32.totalorder %s4065_s27, %s4065_s27 }
   0xc   :  { %p4072_p6 = por %p4071_p5, %p4070_p4 }
   0xe   :  { %p4073_p7 = pnand %p4072_p6, %p4066_p3 }
  0x10   :  { %4076 = shalt.err (!%p4073_p7)
}
  0x11   :  { %s4128_s28 = smov 256   ;;  %s4129_s29 = smov 16  }
  0x12   :  { %35 = dma.hbm_to_vmem [thread:$0]  %s5277_s0, 8192, %s30_s19, [#allocation3], %s4128_s28, %s4128_s28, %s4129_s29  }
  0x13   :  { %s4130_s17 = smov [#allocation5]   ;;  %s4077_s22 = scalar_lea.hbm %s5287_s10, 1024 }
  0x14   :  { %s59_s18 = sshll.u32 %s4130_s17, 4  ;;  %p4078_p8 = scmp.ne.s32.totalorder %s5287_s10, %s4077_s22  ;;  %s60_s18 = int_to_ptr.vmem [resolvable:$true] %s59_s18 }
  0x15   :  { %p4081_p9 = scmp.lt.u32.totalorder %s4077_s22, %s5287_s10 }
  0x17   :  { %p4083_p10 = pnand %p4081_p9, %p4078_p8 }
  0x19   :  { %4086 = shalt.err (!%p4083_p10)
}
  0x1a   :  { %s4087_s27 = scalar_lea.vmem %s60_s18, 1024  ;;  %p4092_p12 = scmp.lt.s32.totalorder %s60_s18, %s60_s18 }
  0x1b   :  { %p4088_p11 = scmp.ne.s32.totalorder %s60_s18, %s4087_s27  ;;  %p4093_p13 = scmp.lt.s32.totalorder %s4087_s27, %s4087_s27 }
  0x1d   :  { %p4094_p0 = por %p4093_p13, %p4092_p12 }
  0x1f   :  { %p4095_p1 = pnand %p4094_p0, %p4088_p11 }
  0x21   :  { %4098 = shalt.err (!%p4095_p1)
}
  0x22   :  { %s4131_s0 = smov 64   ;;  %s4132_s19 = smov 4  }
  0x23   :  { %65 = dma.hbm_to_vmem [thread:$0]  %s5287_s10, 1024, %s60_s18, [#allocation6], %s4131_s0, %s4131_s0, %s4132_s19  }
  0x24   :  { %4121 = dma.done.wait [#allocation3], 8192  }
  0x25   :  { %4122 = vsyncadd [#allocation3], 4294959104 }
  0x26   :  { %4123 = dma.done.wait [#allocation6], 1024  }
  0x27   :  { %4124 = vsyncadd [#allocation6], 4294966272  ;;  %v3735_v0 = vld [vmem:[%s5279_s2 + $0x40] sm:$0xff]   ;;  %v3737_v2 = vld [vmem:[%s5279_s2 + $0x48] sm:$0xff]   ;;  %s4136_s30 = smov 126  }
  0x28   :  { %v3736_v1 = vld [vmem:[%s5279_s2] sm:$0xff]   ;;  %3331 = vmatprep.subr.bf16.mxu0 %v3735_v0  ;;  %v3738_v3 = vld [vmem:[%s5279_s2 + $0x8] sm:$0xff]   ;;  %v3739_v4 = vld [vmem:[%s5279_s2 + $0x50] sm:$0xff]  }
  0x29   :  { %3332 = vmatpush3.bf16.msra.mxu0 %v3736_v1  ;;  %v3740_v5 = vld [vmem:[%s5279_s2 + $0x10] sm:$0xff]   ;;  %v3741_v6 = vld [vmem:[%s5279_s2 + $0x58] sm:$0xff]   ;;  %v3743_v8 = vld [vmem:[%s5279_s2 + $0x60] sm:$0xff]  }
  0x2a   :  { %3333 = vmatprep.subr.bf16.mxu0 %v3737_v2  ;;  %v3742_v7 = vld [vmem:[%s5279_s2 + $0x18] sm:$0xff]   ;;  %v3744_v9 = vld [vmem:[%s5279_s2 + $0x20] sm:$0xff]   ;;  %v3745_v10 = vld [vmem:[%s5279_s2 + $0x68] sm:$0xff]  }
  0x2b   :  { %v80_v11 = vld [vmem:[#allocation2 + $0x8] sm:$0xff]  ;;  %v82_v12 = vld [vmem:[#allocation2 + $0x18] sm:$0xff]  ;;  %v3747_v15 = vld [vmem:[%s5279_s2 + $0x70] sm:$0xff]  }
  0x2c   :  { %v144_v13 = vpack.c.bf16 %v82_v12, %v80_v11  ;;  %v3746_v14 = vld [vmem:[%s5279_s2 + $0x28] sm:$0xff]   ;;  %v3748_v16 = vld [vmem:[%s5279_s2 + $0x30] sm:$0xff]   ;;  %v3749_v17 = vld [vmem:[%s5279_s2 + $0x78] sm:$0xff]  }
  0x2d   :  { %3334 = vmatpush3.bf16.msra.mxu0 %v3738_v3  ;;  %v3750_v18 = vld [vmem:[%s5279_s2 + $0x38] sm:$0xff]   ;;  %v79_v19 = vld [vmem:[#allocation2] sm:$0xff]  ;;  %v81_v20 = vld [vmem:[#allocation2 + $0x10] sm:$0xff]  ;;  %s4133_s2 = smov 2  }
  0x2e   :  { %3335 = vmatprep.subr.bf16.mxu0 %v3739_v4  ;;  %342 = vmatprep.mubr.bf16.mxu0 %v144_v13  ;;  %v84_v21 = vld [vmem:[#allocation2 + $0x28] sm:$0xff]  ;;  %v86_v22 = vld [vmem:[#allocation2 + $0x38] sm:$0xff]  ;;  %v143_v23 = vpack.c.bf16 %v81_v20, %v79_v19  ;;  %v83_v25 = vld [vmem:[#allocation2 + $0x20] sm:$0xff] }
  0x2f   :  { %v146_v24 = vpack.c.bf16 %v86_v22, %v84_v21  ;;  %v85_v26 = vld [vmem:[#allocation2 + $0x30] sm:$0xff]  ;;  %v3751_v27 = vld [vmem:[%s5281_s4] sm:$0xff]   ;;  %v88_v28 = vld [vmem:[#allocation2 + $0x48] sm:$0xff] }
  0x30   :  { %v90_v29 = vld [vmem:[#allocation2 + $0x58] sm:$0xff]  ;;  %3659 = vmatprep.subr.bf16.mxu1 %v3751_v27  ;;  %v145_v30 = vpack.c.bf16 %v85_v26, %v83_v25  ;;  %v3752_v32 = vld [vmem:[%s5281_s4 + $0x8] sm:$0xff]   ;;  %v3753_v33 = vld [vmem:[%s5281_s4 + $0x10] sm:$0xff]  }
  0x31   :  { %3336 = vmatpush3.bf16.msra.mxu0 %v3740_v5  ;;  %3667 = vmatpush3.bf16.msra.mxu1 %v3751_v27  ;;  %v148_v31 = vpack.c.bf16 %v90_v29, %v88_v28  ;;  %v87_v34 = vld [vmem:[#allocation2 + $0x40] sm:$0xff]  ;;  %v89_v35 = vld [vmem:[#allocation2 + $0x50] sm:$0xff]  ;;  %v92_v36 = vld [vmem:[#allocation2 + $0x68] sm:$0xff] }
  0x32   :  { %3337 = vmatprep.subr.bf16.mxu0 %v3741_v6  ;;  %3660 = vmatprep.subr.bf16.mxu1 %v3752_v32  ;;  %v94_v37 = vld [vmem:[#allocation2 + $0x78] sm:$0xff]  ;;  %v147_v39 = vpack.c.bf16 %v89_v35, %v87_v34  ;;  %v3755_v40 = vld [vmem:[%s5281_s4 + $0x20] sm:$0xff]   ;;  %v93_v43 = vld [vmem:[#allocation2 + $0x70] sm:$0xff] }
  0x33   :  { %v3754_v38 = vld [vmem:[%s5281_s4 + $0x18] sm:$0xff]   ;;  %v150_v41 = vpack.c.bf16 %v94_v37, %v92_v36  ;;  %v91_v42 = vld [vmem:[#allocation2 + $0x60] sm:$0xff]  ;;  %v96_v44 = vld [vmem:[#allocation2 + $0x88] sm:$0xff] }
  0x34   :  { %v98_v45 = vld [vmem:[#allocation2 + $0x98] sm:$0xff]  ;;  %v3756_v46 = vld [vmem:[%s5281_s4 + $0x28] sm:$0xff]   ;;  %v149_v47 = vpack.c.bf16 %v93_v43, %v91_v42  ;;  %v3757_v48 = vld [vmem:[%s5281_s4 + $0x30] sm:$0xff]  }
  0x35   :  { %3338 = vmatpush3.bf16.msra.mxu0 %v3742_v7  ;;  %3668 = vmatpush3.bf16.msra.mxu1 %v3752_v32  ;;  %v152_v49 = vpack.c.bf16 %v98_v45, %v96_v44  ;;  %v95_v50 = vld [vmem:[#allocation2 + $0x80] sm:$0xff]  ;;  %v97_v51 = vld [vmem:[#allocation2 + $0x90] sm:$0xff]  ;;  %v100_v52 = vld [vmem:[#allocation2 + $0xa8] sm:$0xff] }
  0x36   :  { %3339 = vmatprep.subr.bf16.mxu0 %v3743_v8  ;;  %3661 = vmatprep.subr.bf16.mxu1 %v3753_v33  ;;  %v102_v53 = vld [vmem:[#allocation2 + $0xb8] sm:$0xff]  ;;  %v151_v54 = vpack.c.bf16 %v97_v51, %v95_v50  ;;  %v99_v56 = vld [vmem:[#allocation2 + $0xa0] sm:$0xff]  ;;  %v101_v57 = vld [vmem:[#allocation2 + $0xb0] sm:$0xff] }
  0x37   :  { %v154_v55 = vpack.c.bf16 %v102_v53, %v100_v52  ;;  %v104_v58 = vld [vmem:[#allocation2 + $0xc8] sm:$0xff]  ;;  %v106_v59 = vld [vmem:[#allocation2 + $0xd8] sm:$0xff]  ;;  %v153_v60 = vpack.c.bf16 %v101_v57, %v99_v56  ;;  %v103_v62 = vld [vmem:[#allocation2 + $0xc0] sm:$0xff] }
  0x38   :  { %v156_v61 = vpack.c.bf16 %v106_v59, %v104_v58  ;;  %v105_v63 = vld [vmem:[#allocation2 + $0xd0] sm:$0xff]  ;;  %v108_v0 = vld [vmem:[#allocation2 + $0xe8] sm:$0xff]  ;;  %v110_v1 = vld [vmem:[#allocation2 + $0xf8] sm:$0xff] }
  0x39   :  { %3340 = vmatpush3.bf16.msra.mxu0 %v3744_v9  ;;  %3669 = vmatpush3.bf16.msra.mxu1 %v3753_v33  ;;  %v155_v2 = vpack.c.bf16 %v105_v63, %v103_v62  ;;  %v158_v3 = vpack.c.bf16 %v110_v1, %v108_v0  ;;  %v107_v4 = vld [vmem:[#allocation2 + $0xe0] sm:$0xff]  ;;  %v109_v5 = vld [vmem:[#allocation2 + $0xf0] sm:$0xff]  ;;  %v112_v6 = vld [vmem:[#allocation2 + $0x108] sm:$0xff] }
  0x3a   :  { %3341 = vmatprep.subr.bf16.mxu0 %v3745_v10  ;;  %3662 = vmatprep.subr.bf16.mxu1 %v3754_v38  ;;  %v114_v7 = vld [vmem:[#allocation2 + $0x118] sm:$0xff]  ;;  %v157_v8 = vpack.c.bf16 %v109_v5, %v107_v4  ;;  %v111_v10 = vld [vmem:[#allocation2 + $0x100] sm:$0xff]  ;;  %v113_v11 = vld [vmem:[#allocation2 + $0x110] sm:$0xff] }
  0x3b   :  { %v160_v9 = vpack.c.bf16 %v114_v7, %v112_v6  ;;  %v116_v12 = vld [vmem:[#allocation2 + $0x128] sm:$0xff]  ;;  %v118_v13 = vld [vmem:[#allocation2 + $0x138] sm:$0xff]  ;;  %v119_v22 = vld [vmem:[#allocation2 + $0x140] sm:$0xff] }
  0x3c   :  { %v122_v19 = vld [vmem:[#allocation2 + $0x158] sm:$0xff]  ;;  %v123_v28 = vld [vmem:[#allocation2 + $0x160] sm:$0xff]  ;;  %v125_v29 = vld [vmem:[#allocation2 + $0x170] sm:$0xff] }
  0x3d   :  { %3342 = vmatpush3.bf16.msra.mxu0 %v3746_v14  ;;  %3670 = vmatpush3.bf16.msra.mxu1 %v3754_v38  ;;  %v159_v14 = vpack.c.bf16 %v113_v11, %v111_v10  ;;  %v126_v25 = vld [vmem:[#allocation2 + $0x178] sm:$0xff]  ;;  %v127_v34 = vld [vmem:[#allocation2 + $0x180] sm:$0xff]  ;;  %v129_v35 = vld [vmem:[#allocation2 + $0x190] sm:$0xff] }
  0x3e   :  { %3343 = vmatprep.subr.bf16.mxu0 %v3747_v15  ;;  %3663 = vmatprep.subr.bf16.mxu1 %v3755_v40  ;;  %v162_v15 = vpack.c.bf16 %v118_v13, %v116_v12  ;;  %v132_v36 = vld [vmem:[#allocation2 + $0x1a8] sm:$0xff]  ;;  %v134_v37 = vld [vmem:[#allocation2 + $0x1b8] sm:$0xff]  ;;  %v139_v53 = vld [vmem:[#allocation2 + $0x1e0] sm:$0xff] }
  0x3f   :  { %v136_v42 = vld [vmem:[#allocation2 + $0x1c8] sm:$0xff]  ;;  %v138_v43 = vld [vmem:[#allocation2 + $0x1d8] sm:$0xff]  ;;  %v4320_v57 = vld [vmem:[%s5280_s3] ss:$0 sm:$0xff] }
  0x40   :  { %v3758_v44 = vld [vmem:[%s5281_s4 + $0x38] sm:$0xff]   ;;  %v4326_v0 = vld [vmem:[%s5283_s6] sm:$0xff]  }
  0x41   :  { %3344 = vmatpush3.bf16.msra.mxu0 %v3748_v16  ;;  %3671 = vmatpush3.bf16.msra.mxu1 %v3755_v40  ;;  %v115_v16 = vld [vmem:[#allocation2 + $0x120] sm:$0xff]  ;;  %v142_v50 = vld [vmem:[#allocation2 + $0x1f8] sm:$0xff] }
  0x42   :  { %3345 = vmatprep.subr.bf16.mxu0 %v3749_v17  ;;  %3664 = vmatprep.subr.bf16.mxu1 %v3756_v46  ;;  %v117_v17 = vld [vmem:[#allocation2 + $0x130] sm:$0xff] }
  0x43   :  { %v161_v20 = vpack.c.bf16 %v117_v17, %v115_v16 }
  0x45   :  { %3346 = vmatpush3.bf16.msra.mxu0 %v3750_v18  ;;  %3672 = vmatpush3.bf16.msra.mxu1 %v3756_v46  ;;  %v120_v18 = vld [vmem:[#allocation2 + $0x148] sm:$0xff] }
  0x46   :  { %3515 = vmatprep.subr.bf16.mxu0 %v3751_v27  ;;  %3665 = vmatprep.subr.bf16.mxu1 %v3757_v48  ;;  %v164_v21 = vpack.c.bf16 %v122_v19, %v120_v18 }
  0x48   :  { %343 = vmatmul.mubr.bf16.vlgmr.msra.gmra.mrb[0].mxu0 %v143_v23  ;;  %v121_v23 = vld [vmem:[#allocation2 + $0x150] sm:$0xff] }
  0x49   :  { %350 = vmatprep.mubr.bf16.mxu0 %v146_v24  ;;  %3516 = vmatpush3.bf16.msra.mxu0 %v3751_v27  ;;  %v124_v24 = vld [vmem:[#allocation2 + $0x168] sm:$0xff]  ;;  %v163_v26 = vpack.c.bf16 %v121_v23, %v119_v22 }
  0x4a   :  { %3517 = vmatprep.subr.bf16.mxu0 %v3752_v32  ;;  %3673 = vmatpush3.bf16.msra.mxu1 %v3757_v48  ;;  %v166_v27 = vpack.c.bf16 %v126_v25, %v124_v24 }
  0x4b   :  { %3666 = vmatprep.subr.bf16.mxu1 %v3758_v44 }
  0x4d   :  { %3518 = vmatpush3.bf16.msra.mxu0 %v3752_v32  ;;  %v165_v32 = vpack.c.bf16 %v125_v29, %v123_v28 }
  0x4e   :  { %3519 = vmatprep.subr.bf16.mxu0 %v3753_v33  ;;  %3674 = vmatpush3.bf16.msra.mxu1 %v3758_v44 }
  0x4f   :  { %3563 = vmatprep.subr.bf16.mxu1 %v4326_v0 }
  0x50   :  { %351 = vmatmul.mubr.bf16.gmra.mrb[4].mxu0 %v145_v30  ;;  %v128_v30 = vld [vmem:[#allocation2 + $0x188] sm:$0xff] }
  0x51   :  { %358 = vmatprep.mubr.bf16.mxu0 %v148_v31  ;;  %3520 = vmatpush3.bf16.msra.mxu0 %v3753_v33  ;;  %v130_v31 = vld [vmem:[#allocation2 + $0x198] sm:$0xff] }
  0x52   :  { %3521 = vmatprep.subr.bf16.mxu0 %v3754_v38  ;;  %v168_v33 = vpack.c.bf16 %v130_v31, %v128_v30 }
  0x55   :  { %3522 = vmatpush3.bf16.msra.mxu0 %v3754_v38  ;;  %v167_v38 = vpack.c.bf16 %v129_v35, %v127_v34 }
  0x56   :  { %3523 = vmatprep.subr.bf16.mxu0 %v3755_v40 }
  0x58   :  { %359 = vmatmul.mubr.bf16.gmra.mrb[8].mxu0 %v147_v39  ;;  %v170_v39 = vpack.c.bf16 %v134_v37, %v132_v36 }
  0x59   :  { %366 = vmatprep.mubr.bf16.mxu0 %v150_v41  ;;  %3524 = vmatpush3.bf16.msra.mxu0 %v3755_v40  ;;  %v131_v40 = vld [vmem:[#allocation2 + $0x1a0] sm:$0xff]  ;;  %v133_v41 = vld [vmem:[#allocation2 + $0x1b0] sm:$0xff] }
  0x5a   :  { %3525 = vmatprep.subr.bf16.mxu0 %v3756_v46  ;;  %v169_v45 = vpack.c.bf16 %v133_v41, %v131_v40 }
  0x5d   :  { %3526 = vmatpush3.bf16.msra.mxu0 %v3756_v46  ;;  %v172_v46 = vpack.c.bf16 %v138_v43, %v136_v42 }
  0x5e   :  { %3527 = vmatprep.subr.bf16.mxu0 %v3757_v48 }
  0x60   :  { %367 = vmatmul.mubr.bf16.gmra.mrb[12].mxu0 %v149_v47  ;;  %v135_v47 = vld [vmem:[#allocation2 + $0x1c0] sm:$0xff] }
  0x61   :  { %374 = vmatprep.mubr.bf16.mxu0 %v152_v49  ;;  %3528 = vmatpush3.bf16.msra.mxu0 %v3757_v48  ;;  %v137_v48 = vld [vmem:[#allocation2 + $0x1d0] sm:$0xff]  ;;  %v140_v49 = vld [vmem:[#allocation2 + $0x1e8] sm:$0xff] }
  0x62   :  { %3529 = vmatprep.subr.bf16.mxu0 %v3758_v44  ;;  %v171_v51 = vpack.c.bf16 %v137_v48, %v135_v47  ;;  %v174_v52 = vpack.c.bf16 %v142_v50, %v140_v49 }
  0x65   :  { %3530 = vmatpush3.bf16.msra.mxu0 %v3758_v44 }
  0x68   :  { %375 = vmatmul.mubr.bf16.gmra.mrb[16].mxu0 %v151_v54  ;;  %v141_v54 = vld [vmem:[#allocation2 + $0x1f0] sm:$0xff] }
  0x69   :  { %382 = vmatprep.mubr.bf16.mxu0 %v154_v55  ;;  %v173_v55 = vpack.c.bf16 %v141_v54, %v139_v53 }
  0x70   :  { %383 = vmatmul.mubr.bf16.gmra.mrb[20].mxu0 %v153_v60 }
  0x71   :  { %390 = vmatprep.mubr.bf16.mxu0 %v156_v61 }
  0x78   :  { %391 = vmatmul.mubr.bf16.gmra.mrb[24].mxu0 %v155_v2 }
  0x79   :  { %398 = vmatprep.mubr.bf16.mxu0 %v158_v3 }
  0x80   :  { %399 = vmatmul.mubr.bf16.gmra.mrb[28].mxu0 %v157_v8 }
  0x81   :  { %406 = vmatprep.mubr.bf16.mxu0 %v160_v9 }
  0x88   :  { %407 = vmatmul.mubr.bf16.gmra.mrb[32].mxu0 %v159_v14 }
  0x89   :  { %414 = vmatprep.mubr.bf16.mxu0 %v162_v15 }
  0x90   :  { %415 = vmatmul.mubr.bf16.gmra.mrb[36].mxu0 %v161_v20 }
  0x91   :  { %422 = vmatprep.mubr.bf16.mxu0 %v164_v21 }
  0x98   :  { %423 = vmatmul.mubr.bf16.gmra.mrb[40].mxu0 %v163_v26 }
  0x99   :  { %430 = vmatprep.mubr.bf16.mxu0 %v166_v27 }
  0xa0   :  { %431 = vmatmul.mubr.bf16.gmra.mrb[44].mxu0 %v165_v32 }
  0xa1   :  { %438 = vmatprep.mubr.bf16.mxu0 %v168_v33 }
  0xa8   :  { %439 = vmatmul.mubr.bf16.gmra.mrb[48].mxu0 %v167_v38 }
  0xa9   :  { %446 = vmatprep.mubr.bf16.mxu0 %v170_v39 }
  0xb0   :  { %447 = vmatmul.mubr.bf16.gmra.mrb[52].mxu0 %v169_v45 }
  0xb1   :  { %454 = vmatprep.mubr.bf16.mxu0 %v172_v46 }
  0xb8   :  { %455 = vmatmul.mubr.bf16.gmra.mrb[56].mxu0 %v171_v51 }
  0xb9   :  { %462 = vmatprep.mubr.bf16.mxu0 %v174_v52 }
  0xc0   :  { %463 = vmatmul.mubr.bf16.gmra.mrb[60].mxu0 %v173_v55 }
 0x11b   :  { %v3347_v56 = vpop.f32.mrb[0].mxu0 }
 0x11c   :  { %v3348_v58 = vpop.f32.mrb[1].mxu0 }
 0x11d   :  { %v3349_v59 = vadd.f32 %v3348_v58, %v3347_v56  ;;  %v3350_v60 = vpop.f32.mrb[2].mxu0 }
 0x11e   :  { %v3351_v61 = vpop.f32.mrb[3].mxu0 }
 0x11f   :  { %v345_v62 = vadd.f32 %v3349_v59, %v4320_v57  ;;  %v3352_v63 = vadd.f32 %v3351_v61, %v3350_v60 }
 0x121   :  { %v503_v1 = vmul.f32 0.2, %v345_v62  ;;  %v348_v2 = vadd.f32 %v3352_v63, %v4320_v57  ;;  %vm471_vm0 = vcmp.gt.f32.partialorder %v345_v62, 0.0 }
 0x123   :  { %vm472_vm1 = vcmp.gt.f32.partialorder %v348_v2, 0.0  ;;  %v504_v3 = vmul.f32 0.2, %v348_v2  ;;  %v3353_v4 = vpop.f32.mrb[4].mxu0  ;;  %v535_v8 = vsel %vm471_vm0, %v345_v62, %v503_v1 }
 0x124   :  { %v3354_v5 = vpop.f32.mrb[5].mxu0 }
 0x125   :  { %v3355_v6 = vadd.f32 %v3354_v5, %v3353_v4  ;;  %v3356_v7 = vpop.f32.mrb[6].mxu0  ;;  %v536_v9 = vsel %vm472_vm1, %v348_v2, %v504_v3 }
 0x126   :  { %v3357_v10 = vpop.f32.mrb[7].mxu0  ;;  %v567_v11 = vpack.c.bf16 %v536_v9, %v535_v8 }
 0x127   :  { %v353_v12 = vadd.f32 %v3355_v6, %v4320_v57  ;;  %v3358_v13 = vadd.f32 %v3357_v10, %v3356_v7 }
 0x128   :  { %3531 = vmatprep.mubr.bf16.mxu0 %v567_v11 }
 0x129   :  { %v505_v14 = vmul.f32 0.2, %v353_v12  ;;  %v356_v15 = vadd.f32 %v3358_v13, %v4320_v57  ;;  %vm473_vm2 = vcmp.gt.f32.partialorder %v353_v12, 0.0 }
 0x12b   :  { %vm474_vm3 = vcmp.gt.f32.partialorder %v356_v15, 0.0  ;;  %v506_v16 = vmul.f32 0.2, %v356_v15  ;;  %v3359_v17 = vpop.f32.mrb[8].mxu0  ;;  %v537_v19 = vsel %vm473_vm2, %v353_v12, %v505_v14 }
 0x12c   :  { %v3360_v18 = vpop.f32.mrb[9].mxu0 }
 0x12d   :  { %v538_v20 = vsel %vm474_vm3, %v356_v15, %v506_v16  ;;  %v3361_v21 = vadd.f32 %v3360_v18, %v3359_v17  ;;  %v3362_v22 = vpop.f32.mrb[10].mxu0 }
 0x12e   :  { %v568_v23 = vpack.c.bf16 %v538_v20, %v537_v19  ;;  %v3363_v24 = vpop.f32.mrb[11].mxu0 }
 0x12f   :  { %v361_v25 = vadd.f32 %v3361_v21, %v4320_v57  ;;  %v3364_v26 = vadd.f32 %v3363_v24, %v3362_v22 }
 0x130   :  { %3532 = vmatmul.mubr.bf16.vlgmr.msra.gmra.mrb[64].mxu0 %v568_v23 }
 0x131   :  { %v507_v27 = vmul.f32 0.2, %v361_v25  ;;  %v364_v28 = vadd.f32 %v3364_v26, %v4320_v57  ;;  %vm475_vm4 = vcmp.gt.f32.partialorder %v361_v25, 0.0 }
 0x133   :  { %vm476_vm5 = vcmp.gt.f32.partialorder %v364_v28, 0.0  ;;  %v508_v29 = vmul.f32 0.2, %v364_v28  ;;  %v3365_v30 = vpop.f32.mrb[12].mxu0  ;;  %v539_v34 = vsel %vm475_vm4, %v361_v25, %v507_v27 }
 0x134   :  { %v3366_v31 = vpop.f32.mrb[13].mxu0 }
 0x135   :  { %v3367_v32 = vadd.f32 %v3366_v31, %v3365_v30  ;;  %v3368_v33 = vpop.f32.mrb[14].mxu0  ;;  %v540_v35 = vsel %vm476_vm5, %v364_v28, %v508_v29 }
 0x136   :  { %v3369_v36 = vpop.f32.mrb[15].mxu0  ;;  %v569_v37 = vpack.c.bf16 %v540_v35, %v539_v34 }
 0x137   :  { %v369_v38 = vadd.f32 %v3367_v32, %v4320_v57  ;;  %v3370_v39 = vadd.f32 %v3369_v36, %v3368_v33 }
 0x138   :  { %3535 = vmatprep.mubr.bf16.mxu0 %v569_v37 }
 0x139   :  { %v509_v40 = vmul.f32 0.2, %v369_v38  ;;  %v372_v41 = vadd.f32 %v3370_v39, %v4320_v57  ;;  %vm477_vm6 = vcmp.gt.f32.partialorder %v369_v38, 0.0 }
 0x13b   :  { %vm478_vm7 = vcmp.gt.f32.partialorder %v372_v41, 0.0  ;;  %v510_v42 = vmul.f32 0.2, %v372_v41  ;;  %v3371_v43 = vpop.f32.mrb[16].mxu0  ;;  %v541_v47 = vsel %vm477_vm6, %v369_v38, %v509_v40 }
 0x13c   :  { %v3372_v44 = vpop.f32.mrb[17].mxu0 }
 0x13d   :  { %v3373_v45 = vadd.f32 %v3372_v44, %v3371_v43  ;;  %v3374_v46 = vpop.f32.mrb[18].mxu0  ;;  %v542_v48 = vsel %vm478_vm7, %v372_v41, %v510_v42 }
 0x13e   :  { %v3375_v49 = vpop.f32.mrb[19].mxu0  ;;  %v570_v50 = vpack.c.bf16 %v542_v48, %v541_v47 }
 0x13f   :  { %v377_v51 = vadd.f32 %v3373_v45, %v4320_v57  ;;  %v3376_v52 = vadd.f32 %v3375_v49, %v3374_v46 }
 0x140   :  { %3536 = vmatmul.mubr.bf16.gmra.mrb[68].mxu0 %v570_v50 }
 0x141   :  { %v511_v53 = vmul.f32 0.2, %v377_v51  ;;  %v380_v54 = vadd.f32 %v3376_v52, %v4320_v57  ;;  %vm479_vm8 = vcmp.gt.f32.partialorder %v377_v51, 0.0 }
 0x143   :  { %vm480_vm9 = vcmp.gt.f32.partialorder %v380_v54, 0.0  ;;  %v512_v55 = vmul.f32 0.2, %v380_v54  ;;  %v3377_v56 = vpop.f32.mrb[20].mxu0  ;;  %v543_v61 = vsel %vm479_vm8, %v377_v51, %v511_v53 }
 0x144   :  { %v3378_v58 = vpop.f32.mrb[21].mxu0 }
 0x145   :  { %v3379_v59 = vadd.f32 %v3378_v58, %v3377_v56  ;;  %v3380_v60 = vpop.f32.mrb[22].mxu0  ;;  %v544_v62 = vsel %vm480_vm9, %v380_v54, %v512_v55 }
 0x146   :  { %v3381_v63 = vpop.f32.mrb[23].mxu0  ;;  %v571_v1 = vpack.c.bf16 %v544_v62, %v543_v61 }
 0x147   :  { %v385_v2 = vadd.f32 %v3379_v59, %v4320_v57  ;;  %v3382_v3 = vadd.f32 %v3381_v63, %v3380_v60 }
 0x148   :  { %3539 = vmatprep.mubr.bf16.mxu0 %v571_v1 }
 0x149   :  { %v513_v4 = vmul.f32 0.2, %v385_v2  ;;  %v388_v5 = vadd.f32 %v3382_v3, %v4320_v57  ;;  %vm481_vm10 = vcmp.gt.f32.partialorder %v385_v2, 0.0 }
 0x14b   :  { %vm482_vm11 = vcmp.gt.f32.partialorder %v388_v5, 0.0  ;;  %v514_v6 = vmul.f32 0.2, %v388_v5  ;;  %v3383_v7 = vpop.f32.mrb[24].mxu0  ;;  %v545_v11 = vsel %vm481_vm10, %v385_v2, %v513_v4 }
 0x14c   :  { %v3384_v8 = vpop.f32.mrb[25].mxu0 }
 0x14d   :  { %v3385_v9 = vadd.f32 %v3384_v8, %v3383_v7  ;;  %v3386_v10 = vpop.f32.mrb[26].mxu0  ;;  %v546_v12 = vsel %vm482_vm11, %v388_v5, %v514_v6  ;;  %v3760_v5 = vld [vmem:[%s5283_s6 + $0x8] sm:$0xff]  }
 0x14e   :  { %v3387_v13 = vpop.f32.mrb[27].mxu0  ;;  %v572_v14 = vpack.c.bf16 %v546_v12, %v545_v11 }
 0x14f   :  { %v393_v15 = vadd.f32 %v3385_v9, %v4320_v57  ;;  %v3388_v16 = vadd.f32 %v3387_v13, %v3386_v10  ;;  %v3761_v10 = vld [vmem:[%s5283_s6 + $0x10] sm:$0xff]  }
 0x150   :  { %3540 = vmatmul.mubr.bf16.gmra.mrb[72].mxu0 %v572_v14 }
 0x151   :  { %v515_v17 = vmul.f32 0.2, %v393_v15  ;;  %v396_v18 = vadd.f32 %v3388_v16, %v4320_v57  ;;  %vm483_vm12 = vcmp.gt.f32.partialorder %v393_v15, 0.0 }
 0x153   :  { %vm484_vm13 = vcmp.gt.f32.partialorder %v396_v18, 0.0  ;;  %v516_v19 = vmul.f32 0.2, %v396_v18  ;;  %v3389_v20 = vpop.f32.mrb[28].mxu0  ;;  %v547_v24 = vsel %vm483_vm12, %v393_v15, %v515_v17 }
 0x154   :  { %v3390_v21 = vpop.f32.mrb[29].mxu0 }
 0x155   :  { %v3391_v22 = vadd.f32 %v3390_v21, %v3389_v20  ;;  %v3392_v23 = vpop.f32.mrb[30].mxu0  ;;  %v548_v25 = vsel %vm484_vm13, %v396_v18, %v516_v19 }
 0x156   :  { %v3393_v26 = vpop.f32.mrb[31].mxu0  ;;  %v573_v27 = vpack.c.bf16 %v548_v25, %v547_v24  ;;  %v3763_v24 = vld [vmem:[%s5283_s6 + $0x20] sm:$0xff]  }
 0x157   :  { %v401_v28 = vadd.f32 %v3391_v22, %v4320_v57  ;;  %v3394_v29 = vadd.f32 %v3393_v26, %v3392_v23 }
 0x158   :  { %3543 = vmatprep.mubr.bf16.mxu0 %v573_v27 }
 0x159   :  { %v517_v30 = vmul.f32 0.2, %v401_v28  ;;  %v404_v31 = vadd.f32 %v3394_v29, %v4320_v57  ;;  %vm485_vm14 = vcmp.gt.f32.partialorder %v401_v28, 0.0 }
 0x15b   :  { %vm486_vm15 = vcmp.gt.f32.partialorder %v404_v31, 0.0  ;;  %v518_v32 = vmul.f32 0.2, %v404_v31  ;;  %v3395_v33 = vpop.f32.mrb[32].mxu0  ;;  %v549_v37 = vsel %vm485_vm14, %v401_v28, %v517_v30 }
 0x15c   :  { %v3396_v34 = vpop.f32.mrb[33].mxu0 }
 0x15d   :  { %v3397_v35 = vadd.f32 %v3396_v34, %v3395_v33  ;;  %v3398_v36 = vpop.f32.mrb[34].mxu0  ;;  %v550_v38 = vsel %vm486_vm15, %v404_v31, %v518_v32 }
 0x15e   :  { %v3399_v39 = vpop.f32.mrb[35].mxu0  ;;  %v574_v40 = vpack.c.bf16 %v550_v38, %v549_v37  ;;  %v3764_v38 = vld [vmem:[%s5283_s6 + $0x28] sm:$0xff]  }
 0x15f   :  { %v409_v41 = vadd.f32 %v3397_v35, %v4320_v57  ;;  %v3400_v42 = vadd.f32 %v3399_v39, %v3398_v36 }
 0x160   :  { %3544 = vmatmul.mubr.bf16.gmra.mrb[76].mxu0 %v574_v40 }
 0x161   :  { %v412_v43 = vadd.f32 %v3400_v42, %v4320_v57  ;;  %v519_v44 = vmul.f32 0.2, %v409_v41  ;;  %vm487_vm0 = vcmp.gt.f32.partialorder %v409_v41, 0.0 }
 0x163   :  { %v3401_v45 = vpop.f32.mrb[36].mxu0  ;;  %vm488_vm1 = vcmp.gt.f32.partialorder %v412_v43, 0.0  ;;  %v520_v46 = vmul.f32 0.2, %v412_v43  ;;  %v551_v50 = vsel %vm487_vm0, %v409_v41, %v519_v44 }
 0x164   :  { %v3402_v47 = vpop.f32.mrb[37].mxu0 }
 0x165   :  { %v3403_v48 = vadd.f32 %v3402_v47, %v3401_v45  ;;  %v3404_v49 = vpop.f32.mrb[38].mxu0  ;;  %v552_v51 = vsel %vm488_vm1, %v412_v43, %v520_v46  ;;  %v3765_v46 = vld [vmem:[%s5283_s6 + $0x30] sm:$0xff]  }
 0x166   :  { %v3405_v52 = vpop.f32.mrb[39].mxu0  ;;  %v575_v53 = vpack.c.bf16 %v552_v51, %v551_v50 }
 0x167   :  { %v417_v54 = vadd.f32 %v3403_v48, %v4320_v57  ;;  %v3406_v55 = vadd.f32 %v3405_v52, %v3404_v49 }
 0x168   :  { %3547 = vmatprep.mubr.bf16.mxu1 %v575_v53  ;;  %v3766_v53 = vld [vmem:[%s5283_s6 + $0x38] sm:$0xff]  }
 0x169   :  { %v521_v56 = vmul.f32 0.2, %v417_v54  ;;  %v420_v58 = vadd.f32 %v3406_v55, %v4320_v57  ;;  %vm489_vm2 = vcmp.gt.f32.partialorder %v417_v54, 0.0 }
 0x16b   :  { %vm490_vm3 = vcmp.gt.f32.partialorder %v420_v58, 0.0  ;;  %v522_v59 = vmul.f32 0.2, %v420_v58  ;;  %v3407_v60 = vpop.f32.mrb[40].mxu0  ;;  %v553_v1 = vsel %vm489_vm2, %v417_v54, %v521_v56 }
 0x16c   :  { %v3408_v61 = vpop.f32.mrb[41].mxu0 }
 0x16d   :  { %v3409_v62 = vadd.f32 %v3408_v61, %v3407_v60  ;;  %v3410_v63 = vpop.f32.mrb[42].mxu0  ;;  %v554_v2 = vsel %vm490_vm3, %v420_v58, %v522_v59 }
 0x16e   :  { %v3411_v3 = vpop.f32.mrb[43].mxu0  ;;  %v576_v4 = vpack.c.bf16 %v554_v2, %v553_v1 }
 0x16f   :  { %v425_v6 = vadd.f32 %v3409_v62, %v4320_v57  ;;  %v3412_v7 = vadd.f32 %v3411_v3, %v3410_v63 }
 0x170   :  { %3548 = vmatmul.mubr.bf16.vlgmr.msra.gmra.mrb[0].mxu1 %v576_v4 }
 0x171   :  { %v523_v8 = vmul.f32 0.2, %v425_v6  ;;  %v428_v9 = vadd.f32 %v3412_v7, %v4320_v57  ;;  %3564 = vmatpush3.bf16.msra.mxu1 %v4326_v0  ;;  %vm491_vm4 = vcmp.gt.f32.partialorder %v425_v6, 0.0  ;;  %v3762_v0 = vld [vmem:[%s5283_s6 + $0x18] sm:$0xff]  }
 0x172   :  { %3565 = vmatprep.subr.bf16.mxu1 %v3760_v5 }
 0x173   :  { %vm492_vm5 = vcmp.gt.f32.partialorder %v428_v9, 0.0  ;;  %v524_v11 = vmul.f32 0.2, %v428_v9  ;;  %v3413_v12 = vpop.f32.mrb[44].mxu0  ;;  %v555_v16 = vsel %vm491_vm4, %v425_v6, %v523_v8 }
 0x174   :  { %v3414_v13 = vpop.f32.mrb[45].mxu0 }
 0x175   :  { %v3415_v14 = vadd.f32 %v3414_v13, %v3413_v12  ;;  %v3416_v15 = vpop.f32.mrb[46].mxu0  ;;  %v556_v17 = vsel %vm492_vm5, %v428_v9, %v524_v11  ;;  %3566 = vmatpush3.bf16.msra.mxu1 %v3760_v5 }
 0x176   :  { %v3417_v18 = vpop.f32.mrb[47].mxu0  ;;  %v577_v19 = vpack.c.bf16 %v556_v17, %v555_v16  ;;  %3567 = vmatprep.subr.bf16.mxu1 %v3761_v10 }
 0x177   :  { %v433_v20 = vadd.f32 %v3415_v14, %v4320_v57  ;;  %v3418_v21 = vadd.f32 %v3417_v18, %v3416_v15 }
 0x178   :  { %3551 = vmatprep.mubr.bf16.mxu1 %v577_v19 }
 0x179   :  { %v525_v22 = vmul.f32 0.2, %v433_v20  ;;  %v436_v23 = vadd.f32 %v3418_v21, %v4320_v57  ;;  %3568 = vmatpush3.bf16.msra.mxu1 %v3761_v10  ;;  %vm493_vm6 = vcmp.gt.f32.partialorder %v433_v20, 0.0  ;;  %v1161_v21 = vld [vmem:[%s5278_s1 + $0x10] sm:$0xff] }
 0x17a   :  { %3569 = vmatprep.subr.bf16.mxu1 %v3762_v0  ;;  %1227 = vrot.lane.b32.xlu1 %v1161_v21, %s4133_s2 }
 0x17b   :  { %vm494_vm7 = vcmp.gt.f32.partialorder %v436_v23, 0.0  ;;  %v526_v25 = vmul.f32 0.2, %v436_v23  ;;  %v3419_v26 = vpop.f32.mrb[48].mxu0  ;;  %v557_v30 = vsel %vm493_vm6, %v433_v20, %v525_v22  ;;  %v1159_v22 = vld [vmem:[%s5278_s1] sm:$0xff] }
 0x17c   :  { %v3420_v27 = vpop.f32.mrb[49].mxu0  ;;  %1223 = vrot.lane.b32.xlu0 %v1159_v22, %s4133_s2 }
 0x17d   :  { %v3421_v28 = vadd.f32 %v3420_v27, %v3419_v26  ;;  %v3422_v29 = vpop.f32.mrb[50].mxu0  ;;  %v558_v31 = vsel %vm494_vm7, %v436_v23, %v526_v25  ;;  %3570 = vmatpush3.bf16.msra.mxu1 %v3762_v0  ;;  %v1160_v23 = vld [vmem:[%s5278_s1 + $0x8] sm:$0xff]  ;;  %v1165_v26 = vld [vmem:[%s5278_s1 + $0x30] sm:$0xff]  ;;  %v4413_v27 = vld [vmem:[%s5282_s5] ss:$0 sm:$0xff] }
 0x17e   :  { %v3423_v32 = vpop.f32.mrb[51].mxu0  ;;  %v578_v33 = vpack.c.bf16 %v558_v31, %v557_v30  ;;  %3571 = vmatprep.subr.bf16.mxu1 %v3763_v24  ;;  %v1164_v25 = vld [vmem:[%s5278_s1 + $0x28] sm:$0xff] }
 0x17f   :  { %v441_v34 = vadd.f32 %v3421_v28, %v4320_v57  ;;  %v3424_v35 = vadd.f32 %v3423_v32, %v3422_v29  ;;  %v1166_v28 = vld [vmem:[%s5278_s1 + $0x38] sm:$0xff]  ;;  %v1167_v29 = vld [vmem:[%s5278_s1 + $0x40] sm:$0xff] }
 0x180   :  { %3552 = vmatmul.mubr.bf16.gmra.mrb[4].mxu1 %v578_v33  ;;  %1225 = vrot.lane.b32.xlu0 %v1160_v23, %s4133_s2  ;;  %v1184_v23 = vld [vmem:[%s5278_s1 + $0xc8] sm:$0xff] }
 0x181   :  { %v527_v36 = vmul.f32 0.2, %v441_v34  ;;  %v444_v37 = vadd.f32 %v3424_v35, %v4320_v57  ;;  %3572 = vmatpush3.bf16.msra.mxu1 %v3763_v24  ;;  %vm495_vm8 = vcmp.gt.f32.partialorder %v441_v34, 0.0  ;;  %v1163_v24 = vld [vmem:[%s5278_s1 + $0x20] sm:$0xff]  ;;  %v1168_v35 = vld [vmem:[%s5278_s1 + $0x48] sm:$0xff] }
 0x182   :  { %3573 = vmatprep.subr.bf16.mxu1 %v3764_v38 }
 0x183   :  { %vm496_vm9 = vcmp.gt.f32.partialorder %v444_v37, 0.0  ;;  %v528_v39 = vmul.f32 0.2, %v444_v37  ;;  %v3425_v40 = vpop.f32.mrb[52].mxu0  ;;  %v559_v44 = vsel %vm495_vm8, %v441_v34, %v527_v36  ;;  %v1169_v36 = vld [vmem:[%s5278_s1 + $0x50] sm:$0xff] }
 0x184   :  { %v3426_v41 = vpop.f32.mrb[53].mxu0  ;;  %1231 = vrot.lane.b32.xlu0 %v1163_v24, %s4133_s2  ;;  %v1185_v24 = vld [vmem:[%s5278_s1 + $0xd0] sm:$0xff] }
 0x185   :  { %v3427_v42 = vadd.f32 %v3426_v41, %v3425_v40  ;;  %v3428_v43 = vpop.f32.mrb[54].mxu0  ;;  %v560_v45 = vsel %vm496_vm9, %v444_v37, %v528_v39  ;;  %3574 = vmatpush3.bf16.msra.mxu1 %v3764_v38 }
 0x186   :  { %v3429_v47 = vpop.f32.mrb[55].mxu0  ;;  %v579_v48 = vpack.c.bf16 %v560_v45, %v559_v44  ;;  %3575 = vmatprep.subr.bf16.mxu1 %v3765_v46  ;;  %v1170_v44 = vld [vmem:[%s5278_s1 + $0x58] sm:$0xff]  ;;  %v1171_v45 = vld [vmem:[%s5278_s1 + $0x60] sm:$0xff] }
 0x187   :  { %v449_v49 = vadd.f32 %v3427_v42, %v4320_v57  ;;  %v3430_v50 = vadd.f32 %v3429_v47, %v3428_v43 }
 0x188   :  { %3555 = vmatprep.mubr.bf16.mxu1 %v579_v48  ;;  %1235 = vrot.lane.b32.xlu0 %v1165_v26, %s4133_s2 }
 0x189   :  { %v529_v51 = vmul.f32 0.2, %v449_v49  ;;  %v452_v52 = vadd.f32 %v3430_v50, %v4320_v57  ;;  %3576 = vmatpush3.bf16.msra.mxu1 %v3765_v46  ;;  %vm497_vm10 = vcmp.gt.f32.partialorder %v449_v49, 0.0 }
 0x18a   :  { %3577 = vmatprep.subr.bf16.mxu1 %v3766_v53 }
 0x18b   :  { %vm498_vm11 = vcmp.gt.f32.partialorder %v452_v52, 0.0  ;;  %v530_v54 = vmul.f32 0.2, %v452_v52  ;;  %v3431_v55 = vpop.f32.mrb[56].mxu0  ;;  %v561_v60 = vsel %vm497_vm10, %v449_v49, %v529_v51 }
 0x18c   :  { %v3432_v56 = vpop.f32.mrb[57].mxu0  ;;  %1239 = vrot.lane.b32.xlu0 %v1167_v29, %s4133_s2 }
 0x18d   :  { %v3433_v58 = vadd.f32 %v3432_v56, %v3431_v55  ;;  %v3434_v59 = vpop.f32.mrb[58].mxu0  ;;  %v562_v61 = vsel %vm498_vm11, %v452_v52, %v530_v54  ;;  %3578 = vmatpush3.bf16.msra.mxu1 %v3766_v53  ;;  %v1172_v52 = vld [vmem:[%s5278_s1 + $0x68] sm:$0xff]  ;;  %v1173_v53 = vld [vmem:[%s5278_s1 + $0x70] sm:$0xff]  ;;  %v1174_v54 = vld [vmem:[%s5278_s1 + $0x78] sm:$0xff] }
 0x18e   :  { %v3435_v62 = vpop.f32.mrb[59].mxu0  ;;  %v580_v63 = vpack.c.bf16 %v562_v61, %v561_v60  ;;  %v1175_v55 = vld [vmem:[%s5278_s1 + $0x80] sm:$0xff] }
 0x18f   :  { %v457_v1 = vadd.f32 %v3433_v58, %v4320_v57  ;;  %v3436_v2 = vadd.f32 %v3435_v62, %v3434_v59  ;;  %v1176_v62 = vld [vmem:[%s5278_s1 + $0x88] sm:$0xff] }
 0x190   :  { %3556 = vmatmul.mubr.bf16.gmra.mrb[8].mxu1 %v580_v63  ;;  %1243 = vrot.lane.b32.xlu0 %v1169_v36, %s4133_s2  ;;  %v1177_v63 = vld [vmem:[%s5278_s1 + $0x90] sm:$0xff] }
 0x191   :  { %v531_v3 = vmul.f32 0.2, %v457_v1  ;;  %v460_v4 = vadd.f32 %v3436_v2, %v4320_v57  ;;  %vm499_vm12 = vcmp.gt.f32.partialorder %v457_v1, 0.0 }
 0x193   :  { %vm500_vm13 = vcmp.gt.f32.partialorder %v460_v4, 0.0  ;;  %v532_v5 = vmul.f32 0.2, %v460_v4  ;;  %v3437_v6 = vpop.f32.mrb[60].mxu0  ;;  %v563_v10 = vsel %vm499_vm12, %v457_v1, %v531_v3 }
 0x194   :  { %v3438_v7 = vpop.f32.mrb[61].mxu0  ;;  %1247 = vrot.lane.b32.xlu0 %v1171_v45, %s4133_s2 }
 0x195   :  { %v3439_v8 = vadd.f32 %v3438_v7, %v3437_v6  ;;  %v3440_v9 = vpop.f32.mrb[62].mxu0  ;;  %v564_v11 = vsel %vm500_vm13, %v460_v4, %v532_v5 }
 0x196   :  { %v3441_v12 = vpop.f32.mrb[63].mxu0  ;;  %v581_v13 = vpack.c.bf16 %v564_v11, %v563_v10 }
 0x197   :  { %v465_v14 = vadd.f32 %v3439_v8, %v4320_v57  ;;  %v3442_v15 = vadd.f32 %v3441_v12, %v3440_v9  ;;  %v1178_v8 = vld [vmem:[%s5278_s1 + $0x98] sm:$0xff]  ;;  %v1179_v9 = vld [vmem:[%s5278_s1 + $0xa0] sm:$0xff] }
 0x198   :  { %3559 = vmatprep.mubr.bf16.mxu1 %v581_v13  ;;  %1251 = vrot.lane.b32.xlu0 %v1173_v53, %s4133_s2 }
 0x199   :  { %v533_v16 = vmul.f32 0.2, %v465_v14  ;;  %v468_v17 = vadd.f32 %v3442_v15, %v4320_v57  ;;  %vm501_vm14 = vcmp.gt.f32.partialorder %v465_v14, 0.0  ;;  %v1162_v57 = vld [vmem:[%s5278_s1 + $0x18] sm:$0xff] }
 0x19a   :  { %1229 = vrot.lane.b32.xlu1 %v1162_v57, %s4133_s2 }
 0x19b   :  { %vm502_vm15 = vcmp.gt.f32.partialorder %v468_v17, 0.0  ;;  %v534_v18 = vmul.f32 0.2, %v468_v17  ;;  %v565_v19 = vsel %vm501_vm14, %v465_v14, %v533_v16  ;;  %v1180_v16 = vld [vmem:[%s5278_s1 + $0xa8] sm:$0xff] }
 0x19c   :  { %1255 = vrot.lane.b32.xlu0 %v1175_v55, %s4133_s2 }
 0x19d   :  { %v566_v0 = vsel %vm502_vm15, %v468_v17, %v534_v18  ;;  %v1181_v17 = vld [vmem:[%s5278_s1 + $0xb0] sm:$0xff]  ;;  %v1182_v18 = vld [vmem:[%s5278_s1 + $0xb8] sm:$0xff] }
 0x19e   :  { %v582_v20 = vpack.c.bf16 %v566_v0, %v565_v19  ;;  %1233 = vrot.lane.b32.xlu1 %v1164_v25, %s4133_s2  ;;  %v1183_v19 = vld [vmem:[%s5278_s1 + $0xc0] sm:$0xff] }
 0x1a0   :  { %3560 = vmatmul.mubr.bf16.gmra.mrb[12].mxu1 %v582_v20  ;;  %1259 = vrot.lane.b32.xlu0 %v1177_v63, %s4133_s2 }
 0x1a2   :  { %1237 = vrot.lane.b32.xlu1 %v1166_v28, %s4133_s2 }
 0x1a4   :  { %1263 = vrot.lane.b32.xlu0 %v1179_v9, %s4133_s2 }
 0x1a6   :  { %1241 = vrot.lane.b32.xlu1 %v1168_v35, %s4133_s2 }
 0x1a8   :  { %1267 = vrot.lane.b32.xlu0 %v1181_v17, %s4133_s2 }
 0x1aa   :  { %1245 = vrot.lane.b32.xlu1 %v1170_v44, %s4133_s2 }
 0x1ac   :  { %1271 = vrot.lane.b32.xlu0 %v1183_v19, %s4133_s2 }
 0x1ae   :  { %1249 = vrot.lane.b32.xlu1 %v1172_v52, %s4133_s2 }
 0x1b0   :  { %1275 = vrot.lane.b32.xlu0 %v1185_v24, %s4133_s2 }
 0x1b2   :  { %1253 = vrot.lane.b32.xlu1 %v1174_v54, %s4133_s2 }
 0x1b6   :  { %1257 = vrot.lane.b32.xlu1 %v1176_v62, %s4133_s2 }
 0x1ba   :  { %1261 = vrot.lane.b32.xlu1 %v1178_v8, %s4133_s2 }
 0x1be   :  { %1265 = vrot.lane.b32.xlu1 %v1180_v16, %s4133_s2 }
 0x1c2   :  { %1269 = vrot.lane.b32.xlu1 %v1182_v18, %s4133_s2 }
 0x1c6   :  { %1273 = vrot.lane.b32.xlu1 %v1184_v23, %s4133_s2 }
 0x203   :  { %v3533_v30 = vpop.f32.mrb[64].mxu0 }
 0x204   :  { %v697_v31 = vadd.f32 %v3533_v30, %v4413_v27  ;;  %v688_v32 = vpop.f32.mrb[65].mxu0 }
 0x205   :  { %v689_v33 = vadd.f32 %v4413_v27, %v688_v32  ;;  %v3534_v34 = vpop.f32.mrb[66].mxu0 }
 0x206   :  { %v849_v37 = vmul.f32 0.2, %v697_v31  ;;  %v700_v38 = vadd.f32 %v3534_v34, %v4413_v27  ;;  %v691_v39 = vpop.f32.mrb[67].mxu0  ;;  %vm817_vm0 = vcmp.gt.f32.partialorder %v697_v31, 0.0  ;;  %v1187_v34 = vld [vmem:[%s5278_s1 + $0xe0] sm:$0xff] }
 0x207   :  { %v847_v40 = vmul.f32 0.2, %v689_v33  ;;  %v692_v41 = vadd.f32 %v4413_v27, %v691_v39  ;;  %vm815_vm1 = vcmp.gt.f32.partialorder %v689_v33, 0.0  ;;  %1279 = vrot.lane.b32.xlu0 %v1187_v34, %s4133_s2 }
 0x208   :  { %vm818_vm2 = vcmp.gt.f32.partialorder %v700_v38, 0.0  ;;  %v850_v42 = vmul.f32 0.2, %v700_v38  ;;  %v881_v46 = vsel %vm817_vm0, %v697_v31, %v849_v37 }
 0x209   :  { %vm816_vm3 = vcmp.gt.f32.partialorder %v692_v41, 0.0  ;;  %v848_v43 = vmul.f32 0.2, %v692_v41  ;;  %v879_v49 = vsel %vm815_vm1, %v689_v33, %v847_v40  ;;  %v1186_v33 = vld [vmem:[%s5278_s1 + $0xd8] sm:$0xff] }
 0x20a   :  { %v882_v47 = vsel %vm818_vm2, %v700_v38, %v850_v42  ;;  %1277 = vrot.lane.b32.xlu1 %v1186_v33, %s4133_s2  ;;  %v1189_v42 = vld [vmem:[%s5278_s1 + $0xf0] sm:$0xff] }
 0x20b   :  { %v912_v48 = vpack.c.bf16 %v882_v47, %v881_v46  ;;  %v880_v50 = vsel %vm816_vm3, %v692_v41, %v848_v43  ;;  %v1188_v41 = vld [vmem:[%s5278_s1 + $0xe8] sm:$0xff]  ;;  %1283 = vrot.lane.b32.xlu0 %v1189_v42, %s4133_s2 }
 0x20c   :  { %v911_v51 = vpack.c.bf16 %v880_v50, %v879_v49 }
 0x20e   :  { %3579 = vmatprep.mubr.bf16.mxu1 %v911_v51  ;;  %1281 = vrot.lane.b32.xlu1 %v1188_v41, %s4133_s2 }
 0x20f   :  { %3580 = vmatmul.mubr.bf16.vlgmr.msra.gmra.mrb[16].mxu1 %v912_v48 }
 0x213   :  { %v3537_v56 = vpop.f32.mrb[68].mxu0 }
 0x214   :  { %v713_v58 = vadd.f32 %v3537_v56, %v4413_v27  ;;  %v704_v59 = vpop.f32.mrb[69].mxu0 }
 0x215   :  { %v705_v60 = vadd.f32 %v4413_v27, %v704_v59  ;;  %v3538_v61 = vpop.f32.mrb[70].mxu0 }
 0x216   :  { %v853_v1 = vmul.f32 0.2, %v713_v58  ;;  %v716_v2 = vadd.f32 %v3538_v61, %v4413_v27  ;;  %v707_v3 = vpop.f32.mrb[71].mxu0  ;;  %vm821_vm4 = vcmp.gt.f32.partialorder %v713_v58, 0.0 }
 0x217   :  { %v851_v4 = vmul.f32 0.2, %v705_v60  ;;  %v708_v5 = vadd.f32 %v4413_v27, %v707_v3  ;;  %vm819_vm5 = vcmp.gt.f32.partialorder %v705_v60, 0.0 }
 0x218   :  { %vm822_vm6 = vcmp.gt.f32.partialorder %v716_v2, 0.0  ;;  %v854_v6 = vmul.f32 0.2, %v716_v2  ;;  %v885_v10 = vsel %vm821_vm4, %v713_v58, %v853_v1 }
 0x219   :  { %vm820_vm7 = vcmp.gt.f32.partialorder %v708_v5, 0.0  ;;  %v852_v7 = vmul.f32 0.2, %v708_v5  ;;  %v883_v12 = vsel %vm819_vm5, %v705_v60, %v851_v4 }
 0x21a   :  { %v886_v11 = vsel %vm822_vm6, %v716_v2, %v854_v6 }
 0x21b   :  { %v884_v13 = vsel %vm820_vm7, %v708_v5, %v852_v7  ;;  %v914_v14 = vpack.c.bf16 %v886_v11, %v885_v10 }
 0x21c   :  { %v913_v15 = vpack.c.bf16 %v884_v13, %v883_v12 }
 0x21e   :  { %3583 = vmatprep.mubr.bf16.mxu1 %v913_v15 }
 0x21f   :  { %3584 = vmatmul.mubr.bf16.gmra.mrb[20].mxu1 %v914_v14 }
 0x223   :  { %v3541_v0 = vpop.f32.mrb[72].mxu0 }
 0x224   :  { %v729_v20 = vadd.f32 %v3541_v0, %v4413_v27  ;;  %v720_v21 = vpop.f32.mrb[73].mxu0 }
 0x225   :  { %v721_v22 = vadd.f32 %v4413_v27, %v720_v21  ;;  %v3542_v57 = vpop.f32.mrb[74].mxu0 }
 0x226   :  { %v857_v25 = vmul.f32 0.2, %v729_v20  ;;  %v732_v26 = vadd.f32 %v3542_v57, %v4413_v27  ;;  %v723_v28 = vpop.f32.mrb[75].mxu0  ;;  %vm825_vm8 = vcmp.gt.f32.partialorder %v729_v20, 0.0 }
 0x227   :  { %v855_v29 = vmul.f32 0.2, %v721_v22  ;;  %v724_v30 = vadd.f32 %v4413_v27, %v723_v28  ;;  %vm823_vm9 = vcmp.gt.f32.partialorder %v721_v22, 0.0 }
 0x228   :  { %vm826_vm10 = vcmp.gt.f32.partialorder %v732_v26, 0.0  ;;  %v858_v31 = vmul.f32 0.2, %v732_v26  ;;  %v889_v35 = vsel %vm825_vm8, %v729_v20, %v857_v25 }
 0x229   :  { %vm824_vm11 = vcmp.gt.f32.partialorder %v724_v30, 0.0  ;;  %v856_v32 = vmul.f32 0.2, %v724_v30  ;;  %v887_v37 = vsel %vm823_vm9, %v721_v22, %v855_v29 }
 0x22a   :  { %v890_v36 = vsel %vm826_vm10, %v732_v26, %v858_v31 }
 0x22b   :  { %v888_v38 = vsel %vm824_vm11, %v724_v30, %v856_v32  ;;  %v916_v39 = vpack.c.bf16 %v890_v36, %v889_v35  ;;  %v1190_v35 = vld [vmem:[%s5278_s1 + $0xf8] sm:$0xff] }
 0x22c   :  { %v915_v40 = vpack.c.bf16 %v888_v38, %v887_v37  ;;  %1285 = vrot.lane.b32.xlu1 %v1190_v35, %s4133_s2 }
 0x22e   :  { %3587 = vmatprep.mubr.bf16.mxu1 %v915_v40 }
 0x22f   :  { %3588 = vmatmul.mubr.bf16.gmra.mrb[24].mxu1 %v916_v39 }
 0x233   :  { %v3545_v43 = vpop.f32.mrb[76].mxu0 }
 0x234   :  { %v745_v44 = vadd.f32 %v3545_v43, %v4413_v27  ;;  %v736_v45 = vpop.f32.mrb[77].mxu0 }
 0x235   :  { %v737_v46 = vadd.f32 %v4413_v27, %v736_v45  ;;  %v3546_v47 = vpop.f32.mrb[78].mxu0 }
 0x236   :  { %v861_v48 = vmul.f32 0.2, %v745_v44  ;;  %v748_v49 = vadd.f32 %v3546_v47, %v4413_v27  ;;  %v739_v50 = vpop.f32.mrb[79].mxu0  ;;  %vm829_vm12 = vcmp.gt.f32.partialorder %v745_v44, 0.0 }
 0x237   :  { %v859_v51 = vmul.f32 0.2, %v737_v46  ;;  %v740_v52 = vadd.f32 %v4413_v27, %v739_v50  ;;  %vm827_vm13 = vcmp.gt.f32.partialorder %v737_v46, 0.0 }
 0x238   :  { %vm830_vm14 = vcmp.gt.f32.partialorder %v748_v49, 0.0  ;;  %v862_v53 = vmul.f32 0.2, %v748_v49  ;;  %v893_v55 = vsel %vm829_vm12, %v745_v44, %v861_v48 }
 0x239   :  { %vm828_vm15 = vcmp.gt.f32.partialorder %v740_v52, 0.0  ;;  %v860_v54 = vmul.f32 0.2, %v740_v52  ;;  %v891_v58 = vsel %vm827_vm13, %v737_v46, %v859_v51 }
 0x23a   :  { %v894_v56 = vsel %vm830_vm14, %v748_v49, %v862_v53 }
 0x23b   :  { %v892_v59 = vsel %vm828_vm15, %v740_v52, %v860_v54  ;;  %v918_v60 = vpack.c.bf16 %v894_v56, %v893_v55 }
 0x23c   :  { %v917_v61 = vpack.c.bf16 %v892_v59, %v891_v58 }
 0x23e   :  { %3591 = vmatprep.mubr.bf16.mxu1 %v917_v61 }
 0x23f   :  { %3592 = vmatmul.mubr.bf16.gmra.mrb[28].mxu1 %v918_v60 }
 0x243   :  { %v3549_v62 = vpop.f32.mrb[0].mxu1 }
 0x244   :  { %v761_v63 = vadd.f32 %v3549_v62, %v4413_v27  ;;  %v752_v1 = vpop.f32.mrb[1].mxu1 }
 0x245   :  { %v753_v2 = vadd.f32 %v4413_v27, %v752_v1  ;;  %v3550_v3 = vpop.f32.mrb[2].mxu1 }
 0x246   :  { %v865_v4 = vmul.f32 0.2, %v761_v63  ;;  %v764_v5 = vadd.f32 %v3550_v3, %v4413_v27  ;;  %v755_v6 = vpop.f32.mrb[3].mxu1  ;;  %vm833_vm0 = vcmp.gt.f32.partialorder %v761_v63, 0.0 }
 0x247   :  { %v863_v7 = vmul.f32 0.2, %v753_v2  ;;  %v756_v8 = vadd.f32 %v4413_v27, %v755_v6  ;;  %vm831_vm1 = vcmp.gt.f32.partialorder %v753_v2, 0.0 }
 0x248   :  { %vm834_vm2 = vcmp.gt.f32.partialorder %v764_v5, 0.0  ;;  %v866_v9 = vmul.f32 0.2, %v764_v5  ;;  %v897_v11 = vsel %vm833_vm0, %v761_v63, %v865_v4  ;;  %vm3149_vm0 = vcmask 31744  }
 0x249   :  { %vm832_vm3 = vcmp.gt.f32.partialorder %v756_v8, 0.0  ;;  %v864_v10 = vmul.f32 0.2, %v756_v8  ;;  %v895_v13 = vsel %vm831_vm1, %v753_v2, %v863_v7 }
 0x24a   :  { %v898_v12 = vsel %vm834_vm2, %v764_v5, %v866_v9  ;;  %v1228_v9 = vpop.permute.xlu1 %1227 }
 0x24b   :  { %v896_v14 = vsel %vm832_vm3, %v756_v8, %v864_v10  ;;  %v920_v15 = vpack.c.bf16 %v898_v12, %v897_v11  ;;  %v4134_v10 = vmov 1   ;;  %v4135_v11 = vmov 0  }
 0x24c   :  { %v919_v16 = vpack.c.bf16 %v896_v14, %v895_v13  ;;  %3687 = vset.pattern.permute.xlu0 %v4134_v10  ;;  %3686 = vset.pattern.permute.xlu1 %v4135_v11  ;;  %v1224_v13 = vpop.permute.xlu0 %1223 }
 0x24e   :  { %3595 = vmatprep.mubr.bf16.mxu1 %v919_v16 }
 0x24f   :  { %3596 = vmatmul.mubr.bf16.gmra.mrb[32].mxu1 %v920_v15 }
 0x253   :  { %v3553_v17 = vpop.f32.mrb[4].mxu1 }
 0x254   :  { %v777_v18 = vadd.f32 %v3553_v17, %v4413_v27  ;;  %v768_v19 = vpop.f32.mrb[5].mxu1 }
 0x255   :  { %v769_v0 = vadd.f32 %v4413_v27, %v768_v19  ;;  %v3554_v20 = vpop.f32.mrb[6].mxu1 }
 0x256   :  { %v869_v21 = vmul.f32 0.2, %v777_v18  ;;  %v780_v22 = vadd.f32 %v3554_v20, %v4413_v27  ;;  %v771_v57 = vpop.f32.mrb[7].mxu1  ;;  %vm837_vm4 = vcmp.gt.f32.partialorder %v777_v18, 0.0 }
 0x257   :  { %v867_v23 = vmul.f32 0.2, %v769_v0  ;;  %v772_v24 = vadd.f32 %v4413_v27, %v771_v57  ;;  %vm835_vm5 = vcmp.gt.f32.partialorder %v769_v0, 0.0  ;;  %v1226_v57 = vpop.permute.xlu0 %1225 }
 0x258   :  { %vm838_vm6 = vcmp.gt.f32.partialorder %v780_v22, 0.0  ;;  %v870_v25 = vmul.f32 0.2, %v780_v22  ;;  %v901_v28 = vsel %vm837_vm4, %v777_v18, %v869_v21  ;;  %v1230_v18 = vpop.permute.xlu1 %1229 }
 0x259   :  { %vm836_vm7 = vcmp.gt.f32.partialorder %v772_v24, 0.0  ;;  %v868_v26 = vmul.f32 0.2, %v772_v24  ;;  %v899_v30 = vsel %vm835_vm5, %v769_v0, %v867_v23 }
 0x25a   :  { %v902_v29 = vsel %vm838_vm6, %v780_v22, %v870_v25 }
 0x25b   :  { %v900_v31 = vsel %vm836_vm7, %v772_v24, %v868_v26  ;;  %v922_v32 = vpack.c.bf16 %v902_v29, %v901_v28  ;;  %v1232_v25 = vpop.permute.xlu0 %1231 }
 0x25c   :  { %v921_v33 = vpack.c.bf16 %v900_v31, %v899_v30  ;;  %v1234_v26 = vpop.permute.xlu1 %1233 }
 0x25e   :  { %3599 = vmatprep.mubr.bf16.mxu1 %v921_v33 }
 0x25f   :  { %3600 = vmatmul.mubr.bf16.gmra.mrb[36].mxu1 %v922_v32  ;;  %v1236_v29 = vpop.permute.xlu0 %1235 }
 0x263   :  { %v3557_v34 = vpop.f32.mrb[8].mxu1 }
 0x264   :  { %v793_v36 = vadd.f32 %v3557_v34, %v4413_v27  ;;  %v784_v37 = vpop.f32.mrb[9].mxu1  ;;  %v1238_v34 = vpop.permute.xlu1 %1237 }
 0x265   :  { %v785_v38 = vadd.f32 %v4413_v27, %v784_v37  ;;  %v3558_v39 = vpop.f32.mrb[10].mxu1 }
 0x266   :  { %v873_v40 = vmul.f32 0.2, %v793_v36  ;;  %v796_v41 = vadd.f32 %v3558_v39, %v4413_v27  ;;  %v787_v42 = vpop.f32.mrb[11].mxu1  ;;  %vm841_vm8 = vcmp.gt.f32.partialorder %v793_v36, 0.0 }
 0x267   :  { %v871_v43 = vmul.f32 0.2, %v785_v38  ;;  %v788_v44 = vadd.f32 %v4413_v27, %v787_v42  ;;  %vm839_vm9 = vcmp.gt.f32.partialorder %v785_v38, 0.0  ;;  %v1240_v42 = vpop.permute.xlu0 %1239 }
 0x268   :  { %vm842_vm10 = vcmp.gt.f32.partialorder %v796_v41, 0.0  ;;  %v874_v45 = vmul.f32 0.2, %v796_v41  ;;  %v905_v47 = vsel %vm841_vm8, %v793_v36, %v873_v40 }
 0x269   :  { %vm840_vm11 = vcmp.gt.f32.partialorder %v788_v44, 0.0  ;;  %v872_v46 = vmul.f32 0.2, %v788_v44  ;;  %v903_v49 = vsel %vm839_vm9, %v785_v38, %v871_v43  ;;  %v1242_v43 = vpop.permute.xlu1 %1241 }
 0x26a   :  { %v906_v48 = vsel %vm842_vm10, %v796_v41, %v874_v45 }
 0x26b   :  { %v904_v50 = vsel %vm840_vm11, %v788_v44, %v872_v46  ;;  %v924_v51 = vpack.c.bf16 %v906_v48, %v905_v47  ;;  %v1244_v45 = vpop.permute.xlu0 %1243 }
 0x26c   :  { %v923_v52 = vpack.c.bf16 %v904_v50, %v903_v49 }
 0x26d   :  { %v1246_v50 = vpop.permute.xlu1 %1245 }
 0x26e   :  { %3603 = vmatprep.mubr.bf16.mxu1 %v923_v52 }
 0x26f   :  { %3604 = vmatmul.mubr.bf16.gmra.mrb[40].mxu1 %v924_v51 }
 0x273   :  { %v3561_v53 = vpop.f32.mrb[12].mxu1 }
 0x274   :  { %v809_v54 = vadd.f32 %v3561_v53, %v4413_v27  ;;  %v800_v55 = vpop.f32.mrb[13].mxu1 }
 0x275   :  { %v801_v56 = vadd.f32 %v4413_v27, %v800_v55  ;;  %v3562_v58 = vpop.f32.mrb[14].mxu1 }
 0x276   :  { %v877_v59 = vmul.f32 0.2, %v809_v54  ;;  %v812_v60 = vadd.f32 %v3562_v58, %v4413_v27  ;;  %v803_v61 = vpop.f32.mrb[15].mxu1  ;;  %vm845_vm12 = vcmp.gt.f32.partialorder %v809_v54, 0.0 }
 0x277   :  { %v875_v62 = vmul.f32 0.2, %v801_v56  ;;  %v804_v63 = vadd.f32 %v4413_v27, %v803_v61  ;;  %vm843_vm13 = vcmp.gt.f32.partialorder %v801_v56, 0.0  ;;  %v4551_v27 = vld [vmem:[%s5284_s7] ss:$0 sm:$0xff] }
 0x278   :  { %vm846_vm14 = vcmp.gt.f32.partialorder %v812_v60, 0.0  ;;  %v878_v1 = vmul.f32 0.2, %v812_v60  ;;  %v909_v3 = vsel %vm845_vm12, %v809_v54, %v877_v59  ;;  %v1248_v59 = vpop.permute.xlu0 %1247 }
 0x279   :  { %vm844_vm15 = vcmp.gt.f32.partialorder %v804_v63, 0.0  ;;  %v876_v2 = vmul.f32 0.2, %v804_v63  ;;  %v907_v5 = vsel %vm843_vm13, %v801_v56, %v875_v62 }
 0x27a   :  { %v910_v4 = vsel %vm846_vm14, %v812_v60, %v878_v1  ;;  %v1250_v60 = vpop.permute.xlu1 %1249 }
 0x27b   :  { %v908_v6 = vsel %vm844_vm15, %v804_v63, %v876_v2  ;;  %v926_v7 = vpack.c.bf16 %v910_v4, %v909_v3 }
 0x27c   :  { %v925_v8 = vpack.c.bf16 %v908_v6, %v907_v5  ;;  %v1252_v62 = vpop.permute.xlu0 %1251 }
 0x27e   :  { %3607 = vmatprep.mubr.bf16.mxu1 %v925_v8  ;;  %v1254_v4 = vpop.permute.xlu1 %1253 }
 0x27f   :  { %3608 = vmatmul.mubr.bf16.gmra.mrb[44].mxu1 %v926_v7 }
 0x280   :  { %2540 = vmatprep.mubr.bf16.mxu1 %v4135_v11 }
 0x2e2   :  { %v3581_v12 = vpop.f32.mrb[16].mxu1 }
 0x2e3   :  { %v4556_v14 = vadd.f32 %v3581_v12, %v4551_v27  ;;  %v1032_v15 = vpop.f32.mrb[17].mxu1 }
 0x2e4   :  { %v4559_v16 = vadd.f32 %v4551_v27, %v1032_v15  ;;  %v3582_v17 = vpop.f32.mrb[18].mxu1  ;;  %v1256_v15 = vpop.permute.xlu0 %1255 }
 0x2e5   :  { %3152 = vst.msk [vmem:[%s5292_s15 + $0x10] sm:$0xff] %vm3149_vm0, %v4556_v14  ;;  %v4567_v19 = vadd.f32 %v3582_v17, %v4551_v27  ;;  %v1035_v0 = vpop.f32.mrb[19].mxu1  ;;  %v1321_v20 = vmul.f32 %v1228_v9, %v4556_v14  ;;  %v1258_v17 = vpop.permute.xlu1 %1257 }
 0x2e6   :  { %3150 = vst.msk [vmem:[%s5292_s15] sm:$0xff] %vm3149_vm0, %v4559_v16  ;;  %v4576_v21 = vadd.f32 %v4551_v27, %v1035_v0  ;;  %v1319_v23 = vmul.f32 %v1224_v13, %v4559_v16 }
 0x2e7   :  { %3153 = vst.msk [vmem:[%s5292_s15 + $0x18] sm:$0xff] %vm3149_vm0, %v4567_v19  ;;  %v1322_v22 = vmul.f32 %v1230_v18, %v4567_v19  ;;  %1387 = vrot.lane.b32.xlu0 %v1321_v20, %s4136_s30 }
 0x2e8   :  { %3151 = vst.msk [vmem:[%s5292_s15 + $0x8] sm:$0xff] %vm3149_vm0, %v4576_v21  ;;  %v1320_v24 = vmul.f32 %v1226_v57, %v4576_v21  ;;  %v1260_v0 = vpop.permute.xlu0 %1259 }
 0x2e9   :  { %1389 = vrot.lane.b32.xlu1 %v1322_v22, %s4136_s30 }
 0x2eb   :  { %1383 = vrot.lane.b32.xlu0 %v1319_v23, %s4136_s30 }
 0x2ed   :  { %1385 = vrot.lane.b32.xlu1 %v1320_v24, %s4136_s30  ;;  %v1262_v24 = vpop.permute.xlu1 %1261 }
 0x2f2   :  { %v3585_v28 = vpop.f32.mrb[20].mxu1 }
 0x2f3   :  { %v4596_v30 = vadd.f32 %v3585_v28, %v4551_v27  ;;  %v1048_v31 = vpop.f32.mrb[21].mxu1 }
 0x2f4   :  { %v4599_v32 = vadd.f32 %v4551_v27, %v1048_v31  ;;  %v3586_v33 = vpop.f32.mrb[22].mxu1 }
 0x2f5   :  { %3156 = vst.msk [vmem:[%s5292_s15 + $0x30] sm:$0xff] %vm3149_vm0, %v4596_v30  ;;  %v1325_v35 = vmul.f32 %v1236_v29, %v4596_v30  ;;  %v4608_v36 = vadd.f32 %v3586_v33, %v4551_v27  ;;  %v1051_v37 = vpop.f32.mrb[23].mxu1 }
 0x2f6   :  { %3154 = vst.msk [vmem:[%s5292_s15 + $0x20] sm:$0xff] %vm3149_vm0, %v4599_v32  ;;  %v4616_v38 = vadd.f32 %v4551_v27, %v1051_v37  ;;  %v1323_v40 = vmul.f32 %v1232_v25, %v4599_v32  ;;  %v1266_v37 = vpop.permute.xlu1 %1265 }
 0x2f7   :  { %3157 = vst.msk [vmem:[%s5292_s15 + $0x38] sm:$0xff] %vm3149_vm0, %v4608_v36  ;;  %v1326_v39 = vmul.f32 %v1238_v34, %v4608_v36  ;;  %1395 = vrot.lane.b32.xlu0 %v1325_v35, %s4136_s30  ;;  %v1264_v35 = vpop.permute.xlu0 %1263 }
 0x2f8   :  { %3155 = vst.msk [vmem:[%s5292_s15 + $0x28] sm:$0xff] %vm3149_vm0, %v4616_v38  ;;  %v1324_v41 = vmul.f32 %v1234_v26, %v4616_v38 }
 0x2f9   :  { %1397 = vrot.lane.b32.xlu1 %v1326_v39, %s4136_s30 }
 0x2fb   :  { %1391 = vrot.lane.b32.xlu0 %v1323_v40, %s4136_s30  ;;  %v1268_v40 = vpop.permute.xlu0 %1267 }
 0x2fd   :  { %1393 = vrot.lane.b32.xlu1 %v1324_v41, %s4136_s30 }
 0x302   :  { %v3589_v44 = vpop.f32.mrb[24].mxu1 }
 0x303   :  { %v4636_v46 = vadd.f32 %v3589_v44, %v4551_v27  ;;  %v1064_v47 = vpop.f32.mrb[25].mxu1 }
 0x304   :  { %v4639_v48 = vadd.f32 %v4551_v27, %v1064_v47  ;;  %v3590_v49 = vpop.f32.mrb[26].mxu1 }
 0x305   :  { %3160 = vst.msk [vmem:[%s5292_s15 + $0x50] sm:$0xff] %vm3149_vm0, %v4636_v46  ;;  %v1329_v51 = vmul.f32 %v1244_v45, %v4636_v46  ;;  %v4648_v52 = vadd.f32 %v3590_v49, %v4551_v27  ;;  %v1067_v53 = vpop.f32.mrb[27].mxu1  ;;  %v1270_v45 = vpop.permute.xlu1 %1269 }
 0x306   :  { %3158 = vst.msk [vmem:[%s5292_s15 + $0x40] sm:$0xff] %vm3149_vm0, %v4639_v48  ;;  %v4656_v54 = vadd.f32 %v4551_v27, %v1067_v53  ;;  %v1327_v56 = vmul.f32 %v1240_v42, %v4639_v48 }
 0x307   :  { %3161 = vst.msk [vmem:[%s5292_s15 + $0x58] sm:$0xff] %vm3149_vm0, %v4648_v52  ;;  %v1330_v55 = vmul.f32 %v1246_v50, %v4648_v52  ;;  %1403 = vrot.lane.b32.xlu0 %v1329_v51, %s4136_s30 }
 0x308   :  { %3159 = vst.msk [vmem:[%s5292_s15 + $0x48] sm:$0xff] %vm3149_vm0, %v4656_v54  ;;  %v1328_v58 = vmul.f32 %v1242_v43, %v4656_v54 }
 0x309   :  { %1405 = vrot.lane.b32.xlu1 %v1330_v55, %s4136_s30 }
 0x30b   :  { %1399 = vrot.lane.b32.xlu0 %v1327_v56, %s4136_s30 }
 0x30d   :  { %1401 = vrot.lane.b32.xlu1 %v1328_v58, %s4136_s30  ;;  %v1272_v58 = vpop.permute.xlu0 %1271 }
 0x312   :  { %v3593_v61 = vpop.f32.mrb[28].mxu1 }
 0x313   :  { %v4676_v63 = vadd.f32 %v3593_v61, %v4551_v27  ;;  %v1080_v1 = vpop.f32.mrb[29].mxu1  ;;  %v1276_v61 = vpop.permute.xlu0 %1275 }
 0x314   :  { %v4679_v2 = vadd.f32 %v4551_v27, %v1080_v1  ;;  %v3594_v3 = vpop.f32.mrb[30].mxu1 }
 0x315   :  { %3164 = vst.msk [vmem:[%s5292_s15 + $0x70] sm:$0xff] %vm3149_vm0, %v4676_v63  ;;  %v1333_v5 = vmul.f32 %v1252_v62, %v4676_v63  ;;  %v4688_v6 = vadd.f32 %v3594_v3, %v4551_v27  ;;  %v1083_v7 = vpop.f32.mrb[31].mxu1 }
 0x316   :  { %3162 = vst.msk [vmem:[%s5292_s15 + $0x60] sm:$0xff] %vm3149_vm0, %v4679_v2  ;;  %v4696_v8 = vadd.f32 %v4551_v27, %v1083_v7  ;;  %v1331_v12 = vmul.f32 %v1248_v59, %v4679_v2  ;;  %v1274_v59 = vpop.permute.xlu1 %1273 }
 0x317   :  { %3165 = vst.msk [vmem:[%s5292_s15 + $0x78] sm:$0xff] %vm3149_vm0, %v4688_v6  ;;  %v1334_v9 = vmul.f32 %v1254_v4, %v4688_v6  ;;  %1411 = vrot.lane.b32.xlu0 %v1333_v5, %s4136_s30 }
 0x318   :  { %3163 = vst.msk [vmem:[%s5292_s15 + $0x68] sm:$0xff] %vm3149_vm0, %v4696_v8  ;;  %v1332_v13 = vmul.f32 %v1250_v60, %v4696_v8 }
 0x319   :  { %1413 = vrot.lane.b32.xlu1 %v1334_v9, %s4136_s30 }
 0x31a   :  { %v1278_v5 = vpop.permute.xlu1 %1277 }
 0x31b   :  { %1407 = vrot.lane.b32.xlu0 %v1331_v12, %s4136_s30 }
 0x31d   :  { %1409 = vrot.lane.b32.xlu1 %v1332_v13, %s4136_s30 }
 0x322   :  { %v3597_v18 = vpop.f32.mrb[32].mxu1 }
 0x323   :  { %v4716_v20 = vadd.f32 %v3597_v18, %v4551_v27  ;;  %v1096_v22 = vpop.f32.mrb[33].mxu1 }
 0x324   :  { %v4719_v57 = vadd.f32 %v4551_v27, %v1096_v22  ;;  %v3598_v23 = vpop.f32.mrb[34].mxu1  ;;  %v1282_v22 = vpop.permute.xlu1 %1281 }
 0x325   :  { %3168 = vst.msk [vmem:[%s5292_s15 + $0x90] sm:$0xff] %vm3149_vm0, %v4716_v20  ;;  %v1337_v25 = vmul.f32 %v1260_v0, %v4716_v20  ;;  %v4728_v26 = vadd.f32 %v3598_v23, %v4551_v27  ;;  %v1099_v28 = vpop.f32.mrb[35].mxu1  ;;  %v1280_v0 = vpop.permute.xlu0 %1279 }
 0x326   :  { %3166 = vst.msk [vmem:[%s5292_s15 + $0x80] sm:$0xff] %vm3149_vm0, %v4719_v57  ;;  %v4736_v29 = vadd.f32 %v4551_v27, %v1099_v28  ;;  %v1335_v33 = vmul.f32 %v1256_v15, %v4719_v57 }
 0x327   :  { %3169 = vst.msk [vmem:[%s5292_s15 + $0x98] sm:$0xff] %vm3149_vm0, %v4728_v26  ;;  %v1338_v31 = vmul.f32 %v1262_v24, %v4728_v26  ;;  %1419 = vrot.lane.b32.xlu0 %v1337_v25, %s4136_s30 }
 0x328   :  { %3167 = vst.msk [vmem:[%s5292_s15 + $0x88] sm:$0xff] %vm3149_vm0, %v4736_v29  ;;  %v1336_v34 = vmul.f32 %v1258_v17, %v4736_v29 }
 0x329   :  { %1421 = vrot.lane.b32.xlu1 %v1338_v31, %s4136_s30  ;;  %v1284_v24 = vpop.permute.xlu0 %1283 }
 0x32b   :  { %1415 = vrot.lane.b32.xlu0 %v1335_v33, %s4136_s30 }
 0x32d   :  { %1417 = vrot.lane.b32.xlu1 %v1336_v34, %s4136_s30  ;;  %v1286_v34 = vpop.permute.xlu1 %1285 }
 0x332   :  { %v3601_v39 = vpop.f32.mrb[36].mxu1 }
 0x333   :  { %v4756_v41 = vadd.f32 %v3601_v39, %v4551_v27  ;;  %v1112_v42 = vpop.f32.mrb[37].mxu1 }
 0x334   :  { %v4759_v43 = vadd.f32 %v4551_v27, %v1112_v42  ;;  %v3602_v44 = vpop.f32.mrb[38].mxu1 }
 0x335   :  { %3172 = vst.msk [vmem:[%s5292_s15 + $0xb0] sm:$0xff] %vm3149_vm0, %v4756_v41  ;;  %v1341_v47 = vmul.f32 %v1268_v40, %v4756_v41  ;;  %v4768_v49 = vadd.f32 %v3602_v44, %v4551_v27  ;;  %v1115_v50 = vpop.f32.mrb[39].mxu1 }
 0x336   :  { %3170 = vst.msk [vmem:[%s5292_s15 + $0xa0] sm:$0xff] %vm3149_vm0, %v4759_v43  ;;  %v4776_v51 = vadd.f32 %v4551_v27, %v1115_v50  ;;  %v1339_v55 = vmul.f32 %v1264_v35, %v4759_v43 }
 0x337   :  { %3173 = vst.msk [vmem:[%s5292_s15 + $0xb8] sm:$0xff] %vm3149_vm0, %v4768_v49  ;;  %v1342_v53 = vmul.f32 %v1270_v45, %v4768_v49  ;;  %1427 = vrot.lane.b32.xlu0 %v1341_v47, %s4136_s30 }
 0x338   :  { %3171 = vst.msk [vmem:[%s5292_s15 + $0xa8] sm:$0xff] %vm3149_vm0, %v4776_v51  ;;  %v1340_v56 = vmul.f32 %v1266_v37, %v4776_v51 }
 0x339   :  { %1429 = vrot.lane.b32.xlu1 %v1342_v53, %s4136_s30 }
 0x33b   :  { %1423 = vrot.lane.b32.xlu0 %v1339_v55, %s4136_s30  ;;  %v3767_v55 = vld [vmem:[#allocation5] sm:$0xff]  }
 0x33c   :  { %3611 = vmatprep.subr.bf16.mxu0 %v3767_v55 }
 0x33d   :  { %1425 = vrot.lane.b32.xlu1 %v1340_v56, %s4136_s30  ;;  %3612 = vmatpush3.bf16.msra.mxu0 %v3767_v55 }
 0x342   :  { %v3605_v60 = vpop.f32.mrb[40].mxu1 }
 0x343   :  { %v4796_v62 = vadd.f32 %v3605_v60, %v4551_v27  ;;  %v1128_v1 = vpop.f32.mrb[41].mxu1  ;;  %v3769_v60 = vld [vmem:[#allocation5 + $0x10] sm:$0xff]  }
 0x344   :  { %v4799_v3 = vadd.f32 %v4551_v27, %v1128_v1  ;;  %v3606_v4 = vpop.f32.mrb[42].mxu1 }
 0x345   :  { %3176 = vst.msk [vmem:[%s5292_s15 + $0xd0] sm:$0xff] %vm3149_vm0, %v4796_v62  ;;  %v1345_v7 = vmul.f32 %v1276_v61, %v4796_v62  ;;  %v4808_v9 = vadd.f32 %v3606_v4, %v4551_v27  ;;  %v1131_v12 = vpop.f32.mrb[43].mxu1  ;;  %v3770_v4 = vld [vmem:[#allocation5 + $0x18] sm:$0xff]  }
 0x346   :  { %3174 = vst.msk [vmem:[%s5292_s15 + $0xc0] sm:$0xff] %vm3149_vm0, %v4799_v3  ;;  %v4816_v13 = vadd.f32 %v4551_v27, %v1131_v12  ;;  %v1343_v17 = vmul.f32 %v1272_v58, %v4799_v3  ;;  %v3768_v58 = vld [vmem:[#allocation5 + $0x8] sm:$0xff]  }
 0x347   :  { %3177 = vst.msk [vmem:[%s5292_s15 + $0xd8] sm:$0xff] %vm3149_vm0, %v4808_v9  ;;  %v1346_v15 = vmul.f32 %v1278_v5, %v4808_v9  ;;  %1435 = vrot.lane.b32.xlu0 %v1345_v7, %s4136_s30  ;;  %3613 = vmatprep.subr.bf16.mxu0 %v3768_v58  ;;  %v3772_v12 = vld [vmem:[#allocation5 + $0x28] sm:$0xff]  }
 0x348   :  { %3175 = vst.msk [vmem:[%s5292_s15 + $0xc8] sm:$0xff] %vm3149_vm0, %v4816_v13  ;;  %v1344_v18 = vmul.f32 %v1274_v59, %v4816_v13  ;;  %3614 = vmatpush3.bf16.msra.mxu0 %v3768_v58 }
 0x349   :  { %1437 = vrot.lane.b32.xlu1 %v1346_v15, %s4136_s30  ;;  %3615 = vmatprep.subr.bf16.mxu0 %v3769_v60 }
 0x34b   :  { %1431 = vrot.lane.b32.xlu0 %v1343_v17, %s4136_s30  ;;  %v3773_v17 = vld [vmem:[#allocation5 + $0x30] sm:$0xff]  }
 0x34c   :  { %3616 = vmatpush3.bf16.msra.mxu0 %v3769_v60 }
 0x34d   :  { %1433 = vrot.lane.b32.xlu1 %v1344_v18, %s4136_s30  ;;  %3617 = vmatprep.subr.bf16.mxu0 %v3770_v4 }
 0x350   :  { %3618 = vmatpush3.bf16.msra.mxu0 %v3770_v4 }
 0x352   :  { %v3609_v23 = vpop.f32.mrb[44].mxu1 }
 0x353   :  { %v4836_v25 = vadd.f32 %v3609_v23, %v4551_v27  ;;  %v1144_v28 = vpop.f32.mrb[45].mxu1 }
 0x354   :  { %v4839_v31 = vadd.f32 %v4551_v27, %v1144_v28  ;;  %v3610_v33 = vpop.f32.mrb[46].mxu1 }
 0x355   :  { %3180 = vst.msk [vmem:[%s5292_s15 + $0xf0] sm:$0xff] %vm3149_vm0, %v4836_v25  ;;  %v1349_v35 = vmul.f32 %v1284_v24, %v4836_v25  ;;  %v4848_v37 = vadd.f32 %v3610_v33, %v4551_v27  ;;  %v1147_v39 = vpop.f32.mrb[47].mxu1 }
 0x356   :  { %3178 = vst.msk [vmem:[%s5292_s15 + $0xe0] sm:$0xff] %vm3149_vm0, %v4839_v31  ;;  %v4856_v40 = vadd.f32 %v4551_v27, %v1147_v39  ;;  %v1347_v27 = vmul.f32 %v1280_v0, %v4839_v31 }
 0x357   :  { %3181 = vst.msk [vmem:[%s5292_s15 + $0xf8] sm:$0xff] %vm3149_vm0, %v4848_v37  ;;  %v1350_v42 = vmul.f32 %v1286_v34, %v4848_v37  ;;  %1443 = vrot.lane.b32.xlu0 %v1349_v35, %s4136_s30 }
 0x358   :  { %3179 = vst.msk [vmem:[%s5292_s15 + $0xe8] sm:$0xff] %vm3149_vm0, %v4856_v40  ;;  %v1348_v45 = vmul.f32 %v1282_v22, %v4856_v40  ;;  %v3774_v22 = vld [vmem:[#allocation5 + $0x38] sm:$0xff]  }
 0x359   :  { %v1388_v44 = vpop.permute.xlu0 %1387  ;;  %1445 = vrot.lane.b32.xlu1 %v1350_v42, %s4136_s30 }
 0x35a   :  { %v1481_v47 = vadd.f32 %v1388_v44, %v4556_v14 }
 0x35b   :  { %1439 = vrot.lane.b32.xlu0 %v1347_v27, %s4136_s30  ;;  %v1390_v50 = vpop.permute.xlu1 %1389 }
 0x35c   :  { %v1482_v61 = vadd.f32 %v1390_v50, %v4567_v19 }
 0x35d   :  { %1441 = vrot.lane.b32.xlu1 %v1348_v45, %s4136_s30  ;;  %v1384_v53 = vpop.permute.xlu0 %1383 }
 0x35e   :  { %v1479_v56 = vadd.f32 %v1384_v53, %v4559_v16 }
 0x35f   :  { %1718 = vperm.xlu0 %3687, %v1481_v47   ;;  %v1386_v59 = vpop.permute.xlu1 %1385 }
 0x360   :  { %v1480_v14 = vadd.f32 %v1386_v59, %v4576_v21  ;;  %v3771_v21 = vld [vmem:[#allocation5 + $0x20] sm:$0xff]  }
 0x361   :  { %1524 = vperm.xlu1 %3686, %v1481_v47   ;;  %3619 = vmatprep.subr.bf16.mxu0 %v3771_v21 }
 0x362   :  { %3620 = vmatpush3.bf16.msra.mxu0 %v3771_v21  ;;  %v4971_v21 = vld [vmem:[%s5285_s8 + $0x1] ss:$0 sm:$0xff] }
 0x363   :  { %3688 = vset.pattern.permute.xlu0 %v4135_v11  ;;  %3621 = vmatprep.subr.bf16.mxu0 %v3772_v12 }
 0x364   :  { %1514 = vperm.xlu0 %3688, %v1479_v56  }
 0x365   :  { %3689 = vset.pattern.permute.xlu1 %v4134_v10 }
 0x366   :  { %1710 = vperm.xlu1 %3689, %v1479_v56   ;;  %3622 = vmatpush3.bf16.msra.mxu0 %v3772_v12 }
 0x367   :  { %3623 = vmatprep.subr.bf16.mxu0 %v3773_v17 }
 0x368   :  { %3693 = vset.pattern.permute.xlu0 %v4134_v10 }
 0x369   :  { %1714 = vperm.xlu0 %3693, %v1480_v14   ;;  %v1396_v16 = vpop.permute.xlu0 %1395 }
 0x36a   :  { %v1485_v1 = vadd.f32 %v1396_v16, %v4596_v30  ;;  %3690 = vset.pattern.permute.xlu1 %v4135_v11  ;;  %3624 = vmatpush3.bf16.msra.mxu0 %v3773_v17 }
 0x36b   :  { %1529 = vperm.xlu1 %3690, %v1482_v61   ;;  %v1398_v5 = vpop.permute.xlu1 %1397  ;;  %3625 = vmatprep.subr.bf16.mxu0 %v3774_v22 }
 0x36c   :  { %v1486_v24 = vadd.f32 %v1398_v5, %v4608_v36 }
 0x36d   :  { %1734 = vperm.xlu0 %3693, %v1485_v1   ;;  %v1392_v7 = vpop.permute.xlu0 %1391 }
 0x36e   :  { %v1483_v19 = vadd.f32 %v1392_v7, %v4599_v32  ;;  %3626 = vmatpush3.bf16.msra.mxu0 %v3774_v22 }
 0x36f   :  { %3691 = vset.pattern.permute.xlu1 %v4134_v10  ;;  %v1394_v30 = vpop.permute.xlu1 %1393 }
 0x370   :  { %1722 = vperm.xlu1 %3691, %v1482_v61   ;;  %v1484_v15 = vadd.f32 %v1394_v30, %v4616_v38 }
 0x371   :  { %3694 = vset.pattern.permute.xlu0 %v4135_v11 }
 0x372   :  { %1534 = vperm.xlu0 %3694, %v1483_v19  }
 0x374   :  { %3692 = vset.pattern.permute.xlu1 %v4135_v11 }
 0x375   :  { %1519 = vperm.xlu1 %3692, %v1480_v14  }
 0x376   :  { %3699 = vset.pattern.permute.xlu0 %v4134_v10 }
 0x377   :  { %1730 = vperm.xlu0 %3699, %v1484_v15  }
 0x379   :  { %1544 = vperm.xlu1 %3692, %v1485_v1   ;;  %v1404_v32 = vpop.permute.xlu0 %1403 }
 0x37a   :  { %v1489_v18 = vadd.f32 %v1404_v32, %v4636_v46 }
 0x37b   :  { %v1406_v0 = vpop.permute.xlu1 %1405 }
 0x37c   :  { %1750 = vperm.xlu0 %3699, %v1489_v18  }
 0x37d   :  { %3695 = vset.pattern.permute.xlu1 %v4134_v10  ;;  %v1400_v23 = vpop.permute.xlu0 %1399 }
 0x37e   :  { %v1487_v38 = vadd.f32 %v1400_v23, %v4639_v48  ;;  %1726 = vperm.xlu1 %3695, %v1483_v19  }
 0x37f   :  { %v1402_v28 = vpop.permute.xlu1 %1401 }
 0x380   :  { %3700 = vset.pattern.permute.xlu0 %v4135_v11  ;;  %v1488_v46 = vadd.f32 %v1402_v28, %v4656_v54 }
 0x381   :  { %1554 = vperm.xlu0 %3700, %v1487_v38  }
 0x382   :  { %3696 = vset.pattern.permute.xlu1 %v4135_v11 }
 0x383   :  { %1549 = vperm.xlu1 %3696, %v1486_v24  }
 0x385   :  { %3705 = vset.pattern.permute.xlu0 %v4134_v10 }
 0x386   :  { %1746 = vperm.xlu0 %3705, %v1488_v46  }
 0x387   :  { %3697 = vset.pattern.permute.xlu1 %v4134_v10 }
 0x388   :  { %1738 = vperm.xlu1 %3697, %v1486_v24   ;;  %v4983_v24 = vld [vmem:[%s5286_s9] ss:$0 sm:$0xff] }
 0x389   :  { %v1412_v48 = vpop.permute.xlu0 %1411 }
 0x38a   :  { %v1493_v33 = vadd.f32 %v1412_v48, %v4676_v63  ;;  %v1490_v63 = vadd.f32 %v1406_v0, %v4648_v52 }
 0x38b   :  { %v1414_v34 = vpop.permute.xlu1 %1413 }
 0x38c   :  { %3698 = vset.pattern.permute.xlu1 %v4135_v11  ;;  %1766 = vperm.xlu0 %3705, %v1493_v33  }
 0x38d   :  { %1539 = vperm.xlu1 %3698, %v1484_v15   ;;  %v1408_v36 = vpop.permute.xlu0 %1407 }
 0x38e   :  { %v1491_v35 = vadd.f32 %v1408_v36, %v4679_v2 }
 0x38f   :  { %v1410_v54 = vpop.permute.xlu1 %1409 }
 0x390   :  { %3706 = vset.pattern.permute.xlu0 %v4135_v11  ;;  %v1492_v39 = vadd.f32 %v1410_v54, %v4696_v8 }
 0x391   :  { %1564 = vperm.xlu1 %3698, %v1489_v18   ;;  %1574 = vperm.xlu0 %3706, %v1491_v35  }
 0x395   :  { %3701 = vset.pattern.permute.xlu1 %v4134_v10  ;;  %3711 = vset.pattern.permute.xlu0 %v4134_v10 }
 0x396   :  { %1742 = vperm.xlu1 %3701, %v1487_v38   ;;  %1762 = vperm.xlu0 %3711, %v1492_v39  }
 0x399   :  { %v1420_v42 = vpop.permute.xlu0 %1419 }
 0x39a   :  { %v1497_v44 = vadd.f32 %v1420_v42, %v4716_v20  ;;  %3702 = vset.pattern.permute.xlu1 %v4135_v11 }
 0x39b   :  { %v1422_v2 = vpop.permute.xlu1 %1421  ;;  %1569 = vperm.xlu1 %3702, %v1490_v63  }
 0x39c   :  { %1782 = vperm.xlu0 %3711, %v1497_v44  }
 0x39d   :  { %v1416_v27 = vpop.permute.xlu0 %1415 }
 0x39e   :  { %v1495_v45 = vadd.f32 %v1416_v27, %v4719_v57 }
 0x39f   :  { %3703 = vset.pattern.permute.xlu1 %v4134_v10  ;;  %v1418_v8 = vpop.permute.xlu1 %1417 }
 0x3a0   :  { %1754 = vperm.xlu1 %3703, %v1490_v63   ;;  %3712 = vset.pattern.permute.xlu0 %v4135_v11  ;;  %v1496_v52 = vadd.f32 %v1418_v8, %v4736_v29  ;;  %v1494_v29 = vadd.f32 %v1414_v34, %v4688_v6 }
 0x3a1   :  { %1594 = vperm.xlu0 %3712, %v1495_v45  }
 0x3a4   :  { %3704 = vset.pattern.permute.xlu1 %v4135_v11 }
 0x3a5   :  { %1559 = vperm.xlu1 %3704, %v1488_v46   ;;  %3717 = vset.pattern.permute.xlu0 %v4134_v10 }
 0x3a6   :  { %1778 = vperm.xlu0 %3717, %v1496_v52  }
 0x3a9   :  { %1584 = vperm.xlu1 %3704, %v1493_v33   ;;  %v1428_v20 = vpop.permute.xlu0 %1427 }
 0x3aa   :  { %v1501_v47 = vadd.f32 %v1428_v20, %v4756_v41 }
 0x3ab   :  { %v1430_v57 = vpop.permute.xlu1 %1429 }
 0x3ac   :  { %1798 = vperm.xlu0 %3717, %v1501_v47  }
 0x3ad   :  { %3707 = vset.pattern.permute.xlu1 %v4134_v10  ;;  %v1424_v50 = vpop.permute.xlu0 %1423 }
 0x3ae   :  { %v1499_v53 = vadd.f32 %v1424_v50, %v4759_v43  ;;  %1758 = vperm.xlu1 %3707, %v1491_v35  }
 0x3af   :  { %v1426_v55 = vpop.permute.xlu1 %1425 }
 0x3b0   :  { %3718 = vset.pattern.permute.xlu0 %v4135_v11  ;;  %v1500_v56 = vadd.f32 %v1426_v55, %v4776_v51 }
 0x3b1   :  { %1614 = vperm.xlu0 %3718, %v1499_v53  }
 0x3b2   :  { %3708 = vset.pattern.permute.xlu1 %v4135_v11 }
 0x3b3   :  { %1589 = vperm.xlu1 %3708, %v1494_v29  }
 0x3b5   :  { %3723 = vset.pattern.permute.xlu0 %v4134_v10 }
 0x3b6   :  { %1794 = vperm.xlu0 %3723, %v1500_v56  }
 0x3b7   :  { %3709 = vset.pattern.permute.xlu1 %v4134_v10 }
 0x3b8   :  { %1770 = vperm.xlu1 %3709, %v1494_v29  }
 0x3b9   :  { %v1436_v41 = vpop.permute.xlu0 %1435 }
 0x3ba   :  { %v1505_v43 = vadd.f32 %v1436_v41, %v4796_v62  ;;  %v1498_v62 = vadd.f32 %v1422_v2, %v4728_v26 }
 0x3bb   :  { %v4925_v58 = vpop.permute.xlu1 %1437 }
 0x3bc   :  { %3710 = vset.pattern.permute.xlu1 %v4135_v11  ;;  %1814 = vperm.xlu0 %3723, %v1505_v43   ;;  %v1506_v63 = vadd.f32 %v4925_v58, %v4808_v9 }
 0x3bd   :  { %1579 = vperm.xlu1 %3710, %v1492_v39   ;;  %v1432_v6 = vpop.permute.xlu0 %1431 }
 0x3be   :  { %v4929_v59 = vadd.f32 %v1432_v6, %v4799_v3 }
 0x3bf   :  { %v1434_v51 = vpop.permute.xlu1 %1433 }
 0x3c0   :  { %3724 = vset.pattern.permute.xlu0 %v4135_v11  ;;  %v4934_v14 = vadd.f32 %v1434_v51, %v4816_v13 }
 0x3c1   :  { %1604 = vperm.xlu1 %3710, %v1497_v44   ;;  %1634 = vperm.xlu0 %3724, %v4929_v59  }
 0x3c5   :  { %3713 = vset.pattern.permute.xlu1 %v4134_v10  ;;  %3729 = vset.pattern.permute.xlu0 %v4134_v10 }
 0x3c6   :  { %1774 = vperm.xlu1 %3713, %v1495_v45   ;;  %1810 = vperm.xlu0 %3729, %v4934_v14  }
 0x3c9   :  { %v1444_v3 = vpop.permute.xlu0 %1443 }
 0x3ca   :  { %3714 = vset.pattern.permute.xlu1 %v4135_v11  ;;  %3730 = vset.pattern.permute.xlu0 %v4135_v11  ;;  %v4956_v1 = vadd.f32 %v1444_v3, %v4836_v25  ;;  %v4966_v25 = vld [vmem:[%s5285_s8] ss:$0 sm:$0xff] }
 0x3cb   :  { %v4942_v60 = vpop.permute.xlu1 %1445  ;;  %1609 = vperm.xlu1 %3714, %v1498_v62  }
 0x3cd   :  { %v1440_v61 = vpop.permute.xlu0 %1439 }
 0x3ce   :  { %v4945_v13 = vadd.f32 %v1440_v61, %v4839_v31 }
 0x3cf   :  { %3715 = vset.pattern.permute.xlu1 %v4134_v10  ;;  %v1442_v16 = vpop.permute.xlu1 %1441 }
 0x3d0   :  { %1786 = vperm.xlu1 %3715, %v1498_v62   ;;  %1654 = vperm.xlu0 %3730, %v4945_v13   ;;  %v4950_v26 = vadd.f32 %v1442_v16, %v4856_v40  ;;  %v1502_v40 = vadd.f32 %v1430_v57, %v4768_v49 }
 0x3d4   :  { %3716 = vset.pattern.permute.xlu1 %v4135_v11  ;;  %3733 = vset.pattern.permute.xlu0 %v4134_v10 }
 0x3d5   :  { %1599 = vperm.xlu1 %3716, %v1496_v52   ;;  %1826 = vperm.xlu0 %3733, %v4950_v26  }
 0x3d9   :  { %1624 = vperm.xlu1 %3716, %v1501_v47   ;;  %1830 = vperm.xlu0 %3733, %v4956_v1  }
 0x3dd   :  { %3719 = vset.pattern.permute.xlu1 %v4134_v10 }
 0x3de   :  { %1790 = vperm.xlu1 %3719, %v1499_v53   ;;  %v1719_v5 = vpop.permute.xlu0 %1718 }
 0x3df   :  { %v1843_v17 = vmul.f32 %v4971_v21, %v1719_v5 }
 0x3e0   :  { %v1525_v31 = vpop.permute.xlu1 %1524 }
 0x3e1   :  { %v1678_v30 = vmul.f32 %v4966_v25, %v1525_v31 }
 0x3e2   :  { %3720 = vset.pattern.permute.xlu1 %v4135_v11 }
 0x3e3   :  { %1629 = vperm.xlu1 %3720, %v1502_v40   ;;  %v1515_v49 = vpop.permute.xlu0 %1514  ;;  %v1875_v22 = vadd.f32 %v1843_v17, %v1678_v30 }
 0x3e4   :  { %v1676_v12 = vmul.f32 %v4966_v25, %v1515_v49 }
 0x3e5   :  { %v1711_v4 = vpop.permute.xlu1 %1710  ;;  %v1914_v36 = vadd.f32 %v4983_v24, %v1875_v22 }
 0x3e6   :  { %v1841_v19 = vmul.f32 %v4971_v21, %v1711_v4 }
 0x3e7   :  { %3721 = vset.pattern.permute.xlu1 %v4134_v10  ;;  %v1978_v2 = vmul.f32 0.2, %v1914_v36  ;;  %vm1946_vm3 = vcmp.gt.f32.partialorder %v1914_v36, 0.0 }
 0x3e8   :  { %1802 = vperm.xlu1 %3721, %v1502_v40   ;;  %v1873_v0 = vadd.f32 %v1841_v19, %v1676_v12  ;;  %v1715_v23 = vpop.permute.xlu0 %1714  ;;  %v1510_v19 = vadd.f32 %v4942_v60, %v4848_v37 }
 0x3e9   :  { %v1842_v33 = vmul.f32 %v4971_v21, %v1715_v23  ;;  %v2010_v47 = vsel %vm1946_vm3, %v1914_v36, %v1978_v2 }
 0x3ea   :  { %v1530_v7 = vpop.permute.xlu1 %1529  ;;  %v1912_v48 = vadd.f32 %v4983_v24, %v1873_v0 }
 0x3eb   :  { %v1679_v32 = vmul.f32 %v4966_v25, %v1530_v7 }
 0x3ec   :  { %3722 = vset.pattern.permute.xlu1 %v4135_v11  ;;  %v1976_v42 = vmul.f32 0.2, %v1912_v48  ;;  %vm1944_vm2 = vcmp.gt.f32.partialorder %v1912_v48, 0.0  ;;  %v1735_v57 = vpop.permute.xlu0 %1734 }
 0x3ed   :  { %1619 = vperm.xlu1 %3722, %v1500_v56   ;;  %v1847_v58 = vmul.f32 %v4971_v21, %v1735_v57 }
 0x3ee   :  { %v2008_v52 = vsel %vm1944_vm2, %v1912_v48, %v1976_v42 }
 0x3ef   :  { %v1723_v15 = vpop.permute.xlu1 %1722 }
 0x3f0   :  { %v1844_v18 = vmul.f32 %v4971_v21, %v1723_v15 }
 0x3f1   :  { %1644 = vperm.xlu1 %3722, %v1505_v43   ;;  %v1535_v29 = vpop.permute.xlu0 %1534 }
 0x3f2   :  { %v1876_v38 = vadd.f32 %v1844_v18, %v1679_v32  ;;  %v1680_v41 = vmul.f32 %v4966_v25, %v1535_v29 }
 0x3f4   :  { %v1915_v28 = vadd.f32 %v4983_v24, %v1876_v38  ;;  %v1520_v46 = vpop.permute.xlu1 %1519 }
 0x3f5   :  { %v1677_v34 = vmul.f32 %v4966_v25, %v1520_v46  ;;  %3725 = vset.pattern.permute.xlu1 %v4134_v10 }
 0x3f6   :  { %1806 = vperm.xlu1 %3725, %v4929_v59   ;;  %v1979_v54 = vmul.f32 0.2, %v1915_v28  ;;  %vm1947_vm1 = vcmp.gt.f32.partialorder %v1915_v28, 0.0  ;;  %v1731_v62 = vpop.permute.xlu0 %1730 }
 0x3f7   :  { %v1874_v35 = vadd.f32 %v1842_v33, %v1677_v34  ;;  %v1846_v31 = vmul.f32 %v4971_v21, %v1731_v62 }
 0x3f8   :  { %v1545_v39 = vpop.permute.xlu1 %1544  ;;  %v2011_v45 = vsel %vm1947_vm1, %v1915_v28, %v1979_v54 }
 0x3f9   :  { %v1913_v44 = vadd.f32 %v4983_v24, %v1874_v35  ;;  %v2041_v9 = vpack.c.bf16 %v2011_v45, %v2010_v47  ;;  %v1682_v56 = vmul.f32 %v4966_v25, %v1545_v39  ;;  %v3777_v47 = vld [vmem:[%s5289_s12 + $0x4] ss:$8 sps:$4 sm:$0xff]  }
 0x3fa   :  { %3726 = vset.pattern.permute.xlu1 %v4135_v11  ;;  %2508 = vmatprep.subr.bf16.mxu1 %v3777_v47 }
 0x3fb   :  { %v1977_v27 = vmul.f32 0.2, %v1913_v44  ;;  %1649 = vperm.xlu1 %3726, %v1506_v63   ;;  %vm1945_vm4 = vcmp.gt.f32.partialorder %v1913_v44, 0.0  ;;  %v1879_v3 = vadd.f32 %v1847_v58, %v1682_v56  ;;  %v1751_v22 = vpop.permute.xlu0 %1750  ;;  %v3778_v56 = vld [vmem:[%s5289_s12 + $0x10] ss:$8 sps:$4 sm:$0xff]  }
 0x3fc   :  { %v1851_v36 = vmul.f32 %v4971_v21, %v1751_v22 }
 0x3fd   :  { %v1727_v8 = vpop.permute.xlu1 %1726  ;;  %v2009_v20 = vsel %vm1945_vm4, %v1913_v44, %v1977_v27  ;;  %v1918_v5 = vadd.f32 %v4983_v24, %v1879_v3 }
 0x3fe   :  { %v2040_v50 = vpack.c.bf16 %v2009_v20, %v2008_v52  ;;  %v1845_v55 = vmul.f32 %v4971_v21, %v1727_v8  ;;  %v3775_v20 = vld [vmem:[%s5289_s12] ss:$8 sps:$4 sm:$0xff]  }
 0x3ff   :  { %3727 = vset.pattern.permute.xlu1 %v4134_v10  ;;  %v1982_v15 = vmul.f32 0.2, %v1918_v5  ;;  %vm1950_vm8 = vcmp.gt.f32.partialorder %v1918_v5, 0.0  ;;  %2509 = vmatpush1.bf16.msra.mxu1 %v3775_v20 }
 0x400   :  { %1818 = vperm.xlu1 %3727, %v1506_v63   ;;  %3627 = vmatprep.mubr.bf16.mxu0 %v2040_v50  ;;  %v1877_v51 = vadd.f32 %v1845_v55, %v1680_v41  ;;  %v1555_v28 = vpop.permute.xlu0 %1554 }
 0x401   :  { %3628 = vmatmul.mubr.bf16.vlgmr.msra.gmra.mrb[80].mxu0 %v2041_v9  ;;  %v2014_v38 = vsel %vm1950_vm8, %v1918_v5, %v1982_v15  ;;  %v1684_v33 = vmul.f32 %v4966_v25, %v1555_v28  ;;  %v3780_v9 = vld [vmem:[%s5289_s12 + $0x14] ss:$8 sps:$4 sm:$0xff]   ;;  %v3789_v5 = vld [vmem:[%s5289_s12 + $0x44] ss:$8 sps:$4 sm:$0xff]  }
 0x402   :  { %v1550_v53 = vpop.permute.xlu1 %1549  ;;  %v1916_v40 = vadd.f32 %v4983_v24, %v1877_v51  ;;  %2510 = vmatprep.subr.bf16.mxu1 %v3780_v9  ;;  %v3792_v15 = vld [vmem:[%s5289_s12 + $0x54] ss:$8 sps:$4 sm:$0xff]  }
 0x403   :  { %v1683_v6 = vmul.f32 %v4966_v25, %v1550_v53  ;;  %2511 = vmatpush1.bf16.msra.mxu1 %v3778_v56 }
 0x404   :  { %3728 = vset.pattern.permute.xlu1 %v4135_v11  ;;  %v1980_v30 = vmul.f32 0.2, %v1916_v40  ;;  %vm1948_vm6 = vcmp.gt.f32.partialorder %v1916_v40, 0.0 }
 0x405   :  { %1639 = vperm.xlu1 %3728, %v4934_v14   ;;  %v1747_v39 = vpop.permute.xlu0 %1746 }
 0x406   :  { %v2012_v18 = vsel %vm1948_vm6, %v1916_v40, %v1980_v30  ;;  %v1850_v2 = vmul.f32 %v4971_v21, %v1747_v39 }
 0x407   :  { %v1739_v43 = vpop.permute.xlu1 %1738 }
 0x408   :  { %v1848_v59 = vmul.f32 %v4971_v21, %v1739_v43  ;;  %v3783_v43 = vld [vmem:[%s5289_s12 + $0x24] ss:$8 sps:$4 sm:$0xff]  }
 0x409   :  { %1664 = vperm.xlu1 %3728, %v4956_v1   ;;  %2512 = vmatprep.subr.bf16.mxu1 %v3783_v43 }
 0x40a   :  { %v1880_v61 = vadd.f32 %v1848_v59, %v1683_v6 }
 0x40b   :  { %v1767_v62 = vpop.permute.xlu0 %1766 }
 0x40c   :  { %v1919_v16 = vadd.f32 %v4983_v24, %v1880_v61  ;;  %v1540_v14 = vpop.permute.xlu1 %1539 }
 0x40d   :  { %v1681_v4 = vmul.f32 %v4966_v25, %v1540_v14  ;;  %3731 = vset.pattern.permute.xlu1 %v4134_v10 }
 0x40e   :  { %1822 = vperm.xlu1 %3731, %v4945_v13   ;;  %v1983_v1 = vmul.f32 0.2, %v1919_v16  ;;  %vm1951_vm5 = vcmp.gt.f32.partialorder %v1919_v16, 0.0 }
 0x40f   :  { %v1878_v7 = vadd.f32 %v1846_v31, %v1681_v4  ;;  %v3786_v31 = vld [vmem:[%s5289_s12 + $0x34] ss:$8 sps:$4 sm:$0xff]   ;;  %v3784_v4 = vld [vmem:[%s5289_s12 + $0x30] ss:$8 sps:$4 sm:$0xff]  }
 0x410   :  { %v1565_v49 = vpop.permute.xlu1 %1564  ;;  %v2015_v32 = vsel %vm1951_vm5, %v1919_v16, %v1983_v1  ;;  %v3781_v16 = vld [vmem:[%s5289_s12 + $0x20] ss:$8 sps:$4 sm:$0xff]  }
 0x411   :  { %v1917_v12 = vadd.f32 %v4983_v24, %v1878_v7  ;;  %v2043_v37 = vpack.c.bf16 %v2015_v32, %v2014_v38  ;;  %v1686_v48 = vmul.f32 %v4966_v25, %v1565_v49  ;;  %2513 = vmatpush1.bf16.msra.mxu1 %v3781_v16  ;;  %v1575_v7 = vpop.permute.xlu0 %1574  ;;  %v3790_v38 = vld [vmem:[%s5289_s12 + $0x50] ss:$8 sps:$4 sm:$0xff]   ;;  %v3795_v16 = vld [vmem:[%s5289_s12 + $0x64] ss:$8 sps:$4 sm:$0xff]  }
 0x412   :  { %3732 = vset.pattern.permute.xlu1 %v4135_v11  ;;  %2514 = vmatprep.subr.bf16.mxu1 %v3786_v31  ;;  %v1688_v30 = vmul.f32 %v4966_v25, %v1575_v7  ;;  %v3793_v31 = vld [vmem:[%s5289_s12 + $0x60] ss:$8 sps:$4 sm:$0xff]  }
 0x413   :  { %v1981_v17 = vmul.f32 0.2, %v1917_v12  ;;  %1669 = vperm.xlu1 %3732, %v1510_v19   ;;  %vm1949_vm7 = vcmp.gt.f32.partialorder %v1917_v12, 0.0  ;;  %v1883_v63 = vadd.f32 %v1851_v36, %v1686_v48 }
 0x415   :  { %v1743_v13 = vpop.permute.xlu1 %1742  ;;  %v2013_v0 = vsel %vm1949_vm7, %v1917_v12, %v1981_v17  ;;  %v1922_v8 = vadd.f32 %v4983_v24, %v1883_v63  ;;  %2515 = vmatpush1.bf16.msra.mxu1 %v3784_v4  ;;  %v1855_v17 = vmul.f32 %v4971_v21, %v1767_v62 }
 0x416   :  { %v2042_v23 = vpack.c.bf16 %v2013_v0, %v2012_v18  ;;  %v1849_v46 = vmul.f32 %v4971_v21, %v1743_v13  ;;  %2516 = vmatprep.subr.bf16.mxu1 %v3789_v5  ;;  %v1763_v0 = vpop.permute.xlu0 %1762 }
 0x417   :  { %1659 = vperm.xlu1 %3732, %v4950_v26   ;;  %v1986_v55 = vmul.f32 0.2, %v1922_v8  ;;  %vm1954_vm12 = vcmp.gt.f32.partialorder %v1922_v8, 0.0  ;;  %v1854_v28 = vmul.f32 %v4971_v21, %v1763_v0 }
 0x418   :  { %3631 = vmatprep.mubr.bf16.mxu0 %v2042_v23  ;;  %v1881_v54 = vadd.f32 %v1849_v46, %v1684_v33 }
 0x419   :  { %3632 = vmatmul.mubr.bf16.gmra.mrb[84].mxu0 %v2043_v37  ;;  %v2018_v61 = vsel %vm1954_vm12, %v1922_v8, %v1986_v55 }
 0x41a   :  { %v1570_v60 = vpop.permute.xlu1 %1569  ;;  %v1920_v27 = vadd.f32 %v4983_v24, %v1881_v54 }
 0x41b   :  { %3734 = vset.pattern.permute.xlu1 %v4134_v10  ;;  %v1687_v35 = vmul.f32 %v4966_v25, %v1570_v60 }
 0x41c   :  { %1834 = vperm.xlu1 %3734, %v1510_v19   ;;  %v1984_v53 = vmul.f32 0.2, %v1920_v27  ;;  %vm1952_vm10 = vcmp.gt.f32.partialorder %v1920_v27, 0.0  ;;  %v3787_v19 = vld [vmem:[%s5289_s12 + $0x40] ss:$8 sps:$4 sm:$0xff]  }
 0x41d   :  { %2517 = vmatpush1.bf16.msra.mxu1 %v3787_v19 }
 0x41e   :  { %v2016_v59 = vsel %vm1952_vm10, %v1920_v27, %v1984_v53  ;;  %2518 = vmatprep.subr.bf16.mxu1 %v3792_v15  ;;  %v1783_v27 = vpop.permute.xlu0 %1782 }
 0x41f   :  { %v1755_v34 = vpop.permute.xlu1 %1754 }
 0x420   :  { %v1852_v26 = vmul.f32 %v4971_v21, %v1755_v34 }
 0x421   :  { %2519 = vmatpush1.bf16.msra.mxu1 %v3790_v38 }
 0x422   :  { %v1884_v42 = vadd.f32 %v1852_v26, %v1687_v35  ;;  %v1595_v47 = vpop.permute.xlu0 %1594  ;;  %2520 = vmatprep.subr.bf16.mxu1 %v3795_v16 }
 0x423   :  { %v1692_v9 = vmul.f32 %v4966_v25, %v1595_v47 }
 0x424   :  { %v1923_v10 = vadd.f32 %v4983_v24, %v1884_v42  ;;  %v1560_v44 = vpop.permute.xlu1 %1559 }
 0x425   :  { %v1685_v45 = vmul.f32 %v4966_v25, %v1560_v44  ;;  %2521 = vmatpush1.bf16.msra.mxu1 %v3793_v31 }
 0x426   :  { %v1987_v57 = vmul.f32 0.2, %v1923_v10  ;;  %vm1955_vm9 = vcmp.gt.f32.partialorder %v1923_v10, 0.0  ;;  %v1779_v43 = vpop.permute.xlu0 %1778 }
 0x427   :  { %v1882_v52 = vadd.f32 %v1850_v2, %v1685_v45  ;;  %v1858_v62 = vmul.f32 %v4971_v21, %v1779_v43 }
 0x428   :  { %v1585_v50 = vpop.permute.xlu1 %1584  ;;  %v2019_v58 = vsel %vm1955_vm9, %v1923_v10, %v1987_v57 }
 0x429   :  { %v1921_v29 = vadd.f32 %v4983_v24, %v1882_v52  ;;  %v2045_v14 = vpack.c.bf16 %v2019_v58, %v2018_v61  ;;  %v1690_v49 = vmul.f32 %v4966_v25, %v1585_v50 }
 0x42b   :  { %v1985_v41 = vmul.f32 0.2, %v1921_v29  ;;  %vm1953_vm11 = vcmp.gt.f32.partialorder %v1921_v29, 0.0  ;;  %v1887_v22 = vadd.f32 %v1855_v17, %v1690_v49  ;;  %v3798_v49 = vld [vmem:[%s5289_s12 + $0x74] ss:$8 sps:$4 sm:$0xff]  }
 0x42c   :  { %2522 = vmatprep.subr.bf16.mxu1 %v3798_v49 }
 0x42d   :  { %v1759_v6 = vpop.permute.xlu1 %1758  ;;  %v2017_v51 = vsel %vm1953_vm11, %v1921_v29, %v1985_v41  ;;  %v1926_v33 = vadd.f32 %v4983_v24, %v1887_v22  ;;  %v1859_v29 = vmul.f32 %v4971_v21, %v1783_v27 }
 0x42e   :  { %v2044_v3 = vpack.c.bf16 %v2017_v51, %v2016_v59  ;;  %v1853_v1 = vmul.f32 %v4971_v21, %v1759_v6 }
 0x42f   :  { %v1990_v39 = vmul.f32 0.2, %v1926_v33  ;;  %vm1958_vm0 = vcmp.gt.f32.partialorder %v1926_v33, 0.0 }
 0x430   :  { %3635 = vmatprep.mubr.bf16.mxu0 %v2044_v3  ;;  %v1885_v18 = vadd.f32 %v1853_v1, %v1688_v30  ;;  %v3796_v30 = vld [vmem:[%s5289_s12 + $0x70] ss:$8 sps:$4 sm:$0xff]  }
 0x431   :  { %3636 = vmatmul.mubr.bf16.gmra.mrb[88].mxu0 %v2045_v14  ;;  %v2022_v8 = vsel %vm1958_vm0, %v1926_v33, %v1990_v39  ;;  %2523 = vmatpush1.bf16.msra.mxu1 %v3796_v30 }
 0x432   :  { %v1590_v40 = vpop.permute.xlu1 %1589  ;;  %v1924_v46 = vadd.f32 %v4983_v24, %v1885_v18  ;;  %v1799_v18 = vpop.permute.xlu0 %1798 }
 0x433   :  { %v1691_v32 = vmul.f32 %v4966_v25, %v1590_v40  ;;  %v1863_v33 = vmul.f32 %v4971_v21, %v1799_v18 }
 0x434   :  { %v1988_v26 = vmul.f32 0.2, %v1924_v46  ;;  %vm1956_vm14 = vcmp.gt.f32.partialorder %v1924_v46, 0.0 }
 0x436   :  { %v2020_v44 = vsel %vm1956_vm14, %v1924_v46, %v1988_v26 }
 0x437   :  { %v1771_v12 = vpop.permute.xlu1 %1770 }
 0x438   :  { %v1856_v13 = vmul.f32 %v4971_v21, %v1771_v12 }
 0x43a   :  { %v1888_v23 = vadd.f32 %v1856_v13, %v1691_v32 }
 0x43c   :  { %v1927_v37 = vadd.f32 %v4983_v24, %v1888_v23  ;;  %v1580_v60 = vpop.permute.xlu1 %1579 }
 0x43d   :  { %v1689_v48 = vmul.f32 %v4966_v25, %v1580_v60 }
 0x43e   :  { %v1991_v36 = vmul.f32 0.2, %v1927_v37  ;;  %vm1959_vm13 = vcmp.gt.f32.partialorder %v1927_v37, 0.0 }
 0x43f   :  { %v1886_v34 = vadd.f32 %v1854_v28, %v1689_v48 }
 0x440   :  { %v1605_v35 = vpop.permute.xlu1 %1604  ;;  %v2023_v42 = vsel %vm1959_vm13, %v1927_v37, %v1991_v36  ;;  %v1615_v37 = vpop.permute.xlu0 %1614 }
 0x441   :  { %v1925_v54 = vadd.f32 %v4983_v24, %v1886_v34  ;;  %v2047_v52 = vpack.c.bf16 %v2023_v42, %v2022_v8  ;;  %v1694_v50 = vmul.f32 %v4966_v25, %v1605_v35  ;;  %v1696_v46 = vmul.f32 %v4966_v25, %v1615_v37 }
 0x443   :  { %v1989_v63 = vmul.f32 0.2, %v1925_v54  ;;  %vm1957_vm15 = vcmp.gt.f32.partialorder %v1925_v54, 0.0  ;;  %v1891_v58 = vadd.f32 %v1859_v29, %v1694_v50 }
 0x444   :  { %v1795_v26 = vpop.permute.xlu0 %1794 }
 0x445   :  { %v1775_v10 = vpop.permute.xlu1 %1774  ;;  %v2021_v2 = vsel %vm1957_vm15, %v1925_v54, %v1989_v63  ;;  %v1930_v14 = vadd.f32 %v4983_v24, %v1891_v58 }
 0x446   :  { %v2046_v45 = vpack.c.bf16 %v2021_v2, %v2020_v44  ;;  %v1857_v57 = vmul.f32 %v4971_v21, %v1775_v10  ;;  %v1862_v10 = vmul.f32 %v4971_v21, %v1795_v26 }
 0x447   :  { %v1994_v19 = vmul.f32 0.2, %v1930_v14  ;;  %vm1962_vm4 = vcmp.gt.f32.partialorder %v1930_v14, 0.0 }
 0x448   :  { %3639 = vmatprep.mubr.bf16.mxu0 %v2046_v45  ;;  %v1889_v41 = vadd.f32 %v1857_v57, %v1692_v9 }
 0x449   :  { %3640 = vmatmul.mubr.bf16.gmra.mrb[92].mxu0 %v2047_v52  ;;  %v2026_v22 = vsel %vm1962_vm4, %v1930_v14, %v1994_v19 }
 0x44a   :  { %v1610_v20 = vpop.permute.xlu1 %1609  ;;  %v1928_v3 = vadd.f32 %v4983_v24, %v1889_v41 }
 0x44b   :  { %v1695_v55 = vmul.f32 %v4966_v25, %v1610_v20 }
 0x44c   :  { %v1992_v7 = vmul.f32 0.2, %v1928_v3  ;;  %vm1960_vm2 = vcmp.gt.f32.partialorder %v1928_v3, 0.0 }
 0x44e   :  { %v2024_v32 = vsel %vm1960_vm2, %v1928_v3, %v1992_v7 }
 0x44f   :  { %v1787_v53 = vpop.permute.xlu1 %1786 }
 0x450   :  { %v1860_v56 = vmul.f32 %v4971_v21, %v1787_v53 }
 0x452   :  { %v1892_v6 = vadd.f32 %v1860_v56, %v1695_v55  ;;  %v1815_v56 = vpop.permute.xlu0 %1814 }
 0x453   :  { %v1867_v16 = vmul.f32 %v4971_v21, %v1815_v56 }
 0x454   :  { %v1931_v59 = vadd.f32 %v4983_v24, %v1892_v6  ;;  %v1600_v51 = vpop.permute.xlu1 %1599 }
 0x455   :  { %v1693_v61 = vmul.f32 %v4966_v25, %v1600_v51 }
 0x456   :  { %v1995_v4 = vmul.f32 0.2, %v1931_v59  ;;  %vm1963_vm1 = vcmp.gt.f32.partialorder %v1931_v59, 0.0 }
 0x457   :  { %v1890_v40 = vadd.f32 %v1858_v62, %v1693_v61 }
 0x458   :  { %v1625_v5 = vpop.permute.xlu1 %1624  ;;  %v2027_v15 = vsel %vm1963_vm1, %v1931_v59, %v1995_v4  ;;  %v1635_v59 = vpop.permute.xlu0 %1634 }
 0x459   :  { %v1929_v1 = vadd.f32 %v4983_v24, %v1890_v40  ;;  %v2049_v23 = vpack.c.bf16 %v2027_v15, %v2026_v22  ;;  %v1698_v28 = vmul.f32 %v4966_v25, %v1625_v5  ;;  %v1700_v3 = vmul.f32 %v4966_v25, %v1635_v59 }
 0x45b   :  { %v1993_v12 = vmul.f32 0.2, %v1929_v1  ;;  %vm1961_vm3 = vcmp.gt.f32.partialorder %v1929_v1, 0.0  ;;  %v1895_v54 = vadd.f32 %v1863_v33, %v1698_v28 }
 0x45c   :  { %v1811_v4 = vpop.permute.xlu0 %1810 }
 0x45d   :  { %v1791_v17 = vpop.permute.xlu1 %1790  ;;  %v2025_v13 = vsel %vm1961_vm3, %v1929_v1, %v1993_v12  ;;  %v1934_v27 = vadd.f32 %v4983_v24, %v1895_v54  ;;  %v1866_v19 = vmul.f32 %v4971_v21, %v1811_v4 }
 0x45e   :  { %v2048_v0 = vpack.c.bf16 %v2025_v13, %v2024_v32  ;;  %v1861_v60 = vmul.f32 %v4971_v21, %v1791_v17 }
 0x45f   :  { %v1998_v57 = vmul.f32 0.2, %v1934_v27  ;;  %vm1966_vm8 = vcmp.gt.f32.partialorder %v1934_v27, 0.0 }
 0x460   :  { %3643 = vmatprep.mubr.bf16.mxu0 %v2048_v0  ;;  %v1893_v35 = vadd.f32 %v1861_v60, %v1696_v46  ;;  %v1655_v17 = vpop.permute.xlu0 %1654 }
 0x461   :  { %3644 = vmatmul.mubr.bf16.gmra.mrb[96].mxu0 %v2049_v23  ;;  %v2030_v43 = vsel %vm1966_vm8, %v1934_v27, %v1998_v57  ;;  %v1704_v26 = vmul.f32 %v4966_v25, %v1655_v17 }
 0x462   :  { %v1630_v38 = vpop.permute.xlu1 %1629  ;;  %v1932_v44 = vadd.f32 %v4983_v24, %v1893_v35 }
 0x463   :  { %v1699_v34 = vmul.f32 %v4966_v25, %v1630_v38 }
 0x464   :  { %v1996_v20 = vmul.f32 0.2, %v1932_v44  ;;  %vm1964_vm6 = vcmp.gt.f32.partialorder %v1932_v44, 0.0  ;;  %v1827_v60 = vpop.permute.xlu0 %1826 }
 0x466   :  { %v2028_v29 = vsel %vm1964_vm6, %v1932_v44, %v1996_v20 }
 0x467   :  { %v1803_v48 = vpop.permute.xlu1 %1802 }
 0x468   :  { %v1864_v36 = vmul.f32 %v4971_v21, %v1803_v48 }
 0x46a   :  { %v1896_v39 = vadd.f32 %v1864_v36, %v1699_v34 }
 0x46c   :  { %v1935_v63 = vadd.f32 %v4983_v24, %v1896_v39  ;;  %v1620_v42 = vpop.permute.xlu1 %1619  ;;  %v1831_v39 = vpop.permute.xlu0 %1830 }
 0x46d   :  { %v1697_v2 = vmul.f32 %v4966_v25, %v1620_v42 }
 0x46e   :  { %v1999_v8 = vmul.f32 0.2, %v1935_v63  ;;  %vm1967_vm5 = vcmp.gt.f32.partialorder %v1935_v63, 0.0 }
 0x46f   :  { %v1894_v45 = vadd.f32 %v1862_v10, %v1697_v2  ;;  %v1871_v10 = vmul.f32 %v4971_v21, %v1831_v39  ;;  %v1870_v2 = vmul.f32 %v4971_v21, %v1827_v60 }
 0x470   :  { %v1645_v52 = vpop.permute.xlu1 %1644  ;;  %v2031_v9 = vsel %vm1967_vm5, %v1935_v63, %v1999_v8 }
 0x471   :  { %v1933_v47 = vadd.f32 %v4983_v24, %v1894_v45  ;;  %v2051_v58 = vpack.c.bf16 %v2031_v9, %v2030_v43  ;;  %v1702_v62 = vmul.f32 %v4966_v25, %v1645_v52 }
 0x473   :  { %v1997_v50 = vmul.f32 0.2, %v1933_v47  ;;  %vm1965_vm7 = vcmp.gt.f32.partialorder %v1933_v47, 0.0  ;;  %v1899_v5 = vadd.f32 %v1867_v16, %v1702_v62 }
 0x475   :  { %v1807_v53 = vpop.permute.xlu1 %1806  ;;  %v2029_v55 = vsel %vm1965_vm7, %v1933_v47, %v1997_v50  ;;  %v1938_v15 = vadd.f32 %v4983_v24, %v1899_v5 }
 0x476   :  { %v2050_v41 = vpack.c.bf16 %v2029_v55, %v2028_v29  ;;  %v1865_v51 = vmul.f32 %v4971_v21, %v1807_v53 }
 0x477   :  { %v2002_v23 = vmul.f32 0.2, %v1938_v15  ;;  %vm1970_vm12 = vcmp.gt.f32.partialorder %v1938_v15, 0.0 }
 0x478   :  { %3647 = vmatprep.mubr.bf16.mxu0 %v2050_v41  ;;  %v1897_v40 = vadd.f32 %v1865_v51, %v1700_v3 }
 0x479   :  { %3648 = vmatmul.mubr.bf16.gmra.mrb[100].mxu0 %v2051_v58  ;;  %v2034_v34 = vsel %vm1970_vm12, %v1938_v15, %v2002_v23 }
 0x47a   :  { %v1650_v6 = vpop.permute.xlu1 %1649  ;;  %v1936_v30 = vadd.f32 %v4983_v24, %v1897_v40 }
 0x47b   :  { %v1703_v14 = vmul.f32 %v4966_v25, %v1650_v6 }
 0x47c   :  { %v2000_v0 = vmul.f32 0.2, %v1936_v30  ;;  %vm1968_vm10 = vcmp.gt.f32.partialorder %v1936_v30, 0.0 }
 0x47e   :  { %v2032_v46 = vsel %vm1968_vm10, %v1936_v30, %v2000_v0 }
 0x47f   :  { %v1819_v61 = vpop.permute.xlu1 %1818 }
 0x480   :  { %v1868_v31 = vmul.f32 %v4971_v21, %v1819_v61 }
 0x482   :  { %v1900_v7 = vadd.f32 %v1868_v31, %v1703_v14 }
 0x484   :  { %v1939_v1 = vadd.f32 %v4983_v24, %v1900_v7  ;;  %v1640_v49 = vpop.permute.xlu1 %1639 }
 0x485   :  { %v1701_v12 = vmul.f32 %v4966_v25, %v1640_v49 }
 0x486   :  { %v2003_v13 = vmul.f32 0.2, %v1939_v1  ;;  %vm1971_vm9 = vcmp.gt.f32.partialorder %v1939_v1, 0.0 }
 0x487   :  { %v1898_v32 = vadd.f32 %v1866_v19, %v1701_v12 }
 0x488   :  { %v1665_v18 = vpop.permute.xlu1 %1664  ;;  %v2035_v37 = vsel %vm1971_vm9, %v1939_v1, %v2003_v13 }
 0x489   :  { %v1937_v22 = vadd.f32 %v4983_v24, %v1898_v32  ;;  %v2053_v35 = vpack.c.bf16 %v2035_v37, %v2034_v34  ;;  %v1706_v42 = vmul.f32 %v4966_v25, %v1665_v18 }
 0x48b   :  { %v2001_v38 = vmul.f32 0.2, %v1937_v22  ;;  %vm1969_vm11 = vcmp.gt.f32.partialorder %v1937_v22, 0.0  ;;  %v1903_v8 = vadd.f32 %v1871_v10, %v1706_v42 }
 0x48d   :  { %v1823_v28 = vpop.permute.xlu1 %1822  ;;  %v2033_v48 = vsel %vm1969_vm11, %v1937_v22, %v2001_v38  ;;  %v1942_v50 = vadd.f32 %v4983_v24, %v1903_v8 }
 0x48e   :  { %v2052_v33 = vpack.c.bf16 %v2033_v48, %v2032_v46  ;;  %v1869_v36 = vmul.f32 %v4971_v21, %v1823_v28 }
 0x48f   :  { %v2006_v43 = vmul.f32 0.2, %v1942_v50  ;;  %vm1974_vm15 = vcmp.gt.f32.partialorder %v1942_v50, 0.0 }
 0x490   :  { %3651 = vmatprep.mubr.bf16.mxu0 %v2052_v33  ;;  %v1901_v63 = vadd.f32 %v1869_v36, %v1704_v26 }
 0x491   :  { %3652 = vmatmul.mubr.bf16.gmra.mrb[104].mxu0 %v2053_v35  ;;  %v2038_v51 = vsel %vm1974_vm15, %v1942_v50, %v2006_v43 }
 0x492   :  { %v1670_v54 = vpop.permute.xlu1 %1669  ;;  %v1940_v27 = vadd.f32 %v4983_v24, %v1901_v63 }
 0x493   :  { %v1707_v9 = vmul.f32 %v4966_v25, %v1670_v54 }
 0x494   :  { %v2004_v20 = vmul.f32 0.2, %v1940_v27  ;;  %vm1972_vm13 = vcmp.gt.f32.partialorder %v1940_v27, 0.0 }
 0x496   :  { %v1660_v44 = vpop.permute.xlu1 %1659  ;;  %v2036_v56 = vsel %vm1972_vm13, %v1940_v27, %v2004_v20 }
 0x497   :  { %v1705_v45 = vmul.f32 %v4966_v25, %v1660_v44  ;;  %v5142_v25 = vld [vmem:[%s5288_s11] ss:$0 sm:$0xff] }
 0x499   :  { %v1902_v52 = vadd.f32 %v1870_v2, %v1705_v45 }
 0x49b   :  { %v1941_v47 = vadd.f32 %v4983_v24, %v1902_v52  ;;  %v1835_v57 = vpop.permute.xlu1 %1834 }
 0x49c   :  { %v1872_v53 = vmul.f32 %v4971_v21, %v1835_v57 }
 0x49d   :  { %v2005_v29 = vmul.f32 0.2, %v1941_v47  ;;  %vm1973_vm14 = vcmp.gt.f32.partialorder %v1941_v47, 0.0 }
 0x49e   :  { %v1904_v55 = vadd.f32 %v1872_v53, %v1707_v9 }
 0x49f   :  { %v2037_v41 = vsel %vm1973_vm14, %v1941_v47, %v2005_v29 }
 0x4a0   :  { %v1943_v58 = vadd.f32 %v4983_v24, %v1904_v55  ;;  %v2054_v6 = vpack.c.bf16 %v2037_v41, %v2036_v56 }
 0x4a2   :  { %v2007_v59 = vmul.f32 0.2, %v1943_v58  ;;  %3655 = vmatprep.mubr.bf16.mxu0 %v2054_v6  ;;  %vm1975_vm0 = vcmp.gt.f32.partialorder %v1943_v58, 0.0 }
 0x4a4   :  { %v2039_v62 = vsel %vm1975_vm0, %v1943_v58, %v2007_v59 }
 0x4a5   :  { %v2055_v3 = vpack.c.bf16 %v2039_v62, %v2038_v51 }
 0x4a7   :  { %3656 = vmatmul.mubr.bf16.gmra.mrb[108].mxu0 %v2055_v3 }
 0x4d4   :  { %v3629_v21 = vpop.f32.mrb[80].mxu0 }
 0x4d5   :  { %v2170_v61 = vadd.f32 %v3629_v21, %v5142_v25  ;;  %v2161_v16 = vpop.f32.mrb[81].mxu0 }
 0x4d6   :  { %v2162_v24 = vadd.f32 %v5142_v25, %v2161_v16  ;;  %v3630_v14 = vpop.f32.mrb[82].mxu0 }
 0x4d7   :  { %v2322_v31 = vmul.f32 0.2, %v2170_v61  ;;  %v2173_v40 = vadd.f32 %v3630_v14, %v5142_v25  ;;  %v2164_v4 = vpop.f32.mrb[83].mxu0  ;;  %vm2290_vm1 = vcmp.gt.f32.partialorder %v2170_v61, 0.0 }
 0x4d8   :  { %v2320_v5 = vmul.f32 0.2, %v2162_v24  ;;  %v2165_v7 = vadd.f32 %v5142_v25, %v2164_v4  ;;  %vm2288_vm2 = vcmp.gt.f32.partialorder %v2162_v24, 0.0 }
 0x4d9   :  { %vm2291_vm3 = vcmp.gt.f32.partialorder %v2173_v40, 0.0  ;;  %v2323_v1 = vmul.f32 0.2, %v2173_v40  ;;  %v2354_v19 = vsel %vm2290_vm1, %v2170_v61, %v2322_v31 }
 0x4da   :  { %vm2289_vm4 = vcmp.gt.f32.partialorder %v2165_v7, 0.0  ;;  %v2321_v49 = vmul.f32 0.2, %v2165_v7  ;;  %v2352_v12 = vsel %vm2288_vm2, %v2162_v24, %v2320_v5 }
 0x4db   :  { %v2355_v30 = vsel %vm2291_vm3, %v2173_v40, %v2323_v1 }
 0x4dc   :  { %v2353_v15 = vsel %vm2289_vm4, %v2165_v7, %v2321_v49  ;;  %v2385_v17 = vpack.c.bf16 %v2355_v30, %v2354_v19 }
 0x4dd   :  { %v2384_v32 = vpack.c.bf16 %v2353_v15, %v2352_v12 }
 0x4df   :  { %2541 = vmatmul.mubr.bf16.vlgmr.msra.gmra.mrb[48].mxu1 %v2384_v32 }
 0x4e0   :  { %2550 = vmatprep.mubr.bf16.mxu1 %v4135_v11 }
 0x4e7   :  { %2551 = vmatmul.mubr.bf16.gmra.mrb[52].mxu1 %v2385_v17 }
 0x4e8   :  { %2560 = vmatprep.mubr.bf16.mxu1 %v4135_v11 }
 0x4ec   :  { %v3633_v13 = vpop.f32.mrb[84].mxu0 }
 0x4ed   :  { %v2186_v18 = vadd.f32 %v3633_v13, %v5142_v25  ;;  %v2177_v0 = vpop.f32.mrb[85].mxu0 }
 0x4ee   :  { %v2178_v22 = vadd.f32 %v5142_v25, %v2177_v0  ;;  %v3634_v23 = vpop.f32.mrb[86].mxu0 }
 0x4ef   :  { %v2326_v38 = vmul.f32 0.2, %v2186_v18  ;;  %v2189_v37 = vadd.f32 %v3634_v23, %v5142_v25  ;;  %v2180_v60 = vpop.f32.mrb[87].mxu0  ;;  %vm2294_vm5 = vcmp.gt.f32.partialorder %v2186_v18, 0.0 }
 0x4f0   :  { %v2324_v28 = vmul.f32 0.2, %v2178_v22  ;;  %v2181_v46 = vadd.f32 %v5142_v25, %v2180_v60  ;;  %vm2292_vm6 = vcmp.gt.f32.partialorder %v2178_v22, 0.0 }
 0x4f1   :  { %vm2295_vm7 = vcmp.gt.f32.partialorder %v2189_v37, 0.0  ;;  %v2327_v48 = vmul.f32 0.2, %v2189_v37  ;;  %v2358_v34 = vsel %vm2294_vm5, %v2186_v18, %v2326_v38 }
 0x4f2   :  { %vm2293_vm8 = vcmp.gt.f32.partialorder %v2181_v46, 0.0  ;;  %v2325_v33 = vmul.f32 0.2, %v2181_v46  ;;  %v2356_v35 = vsel %vm2292_vm6, %v2178_v22, %v2324_v28 }
 0x4f3   :  { %v2359_v36 = vsel %vm2295_vm7, %v2189_v37, %v2327_v48 }
 0x4f4   :  { %v2357_v26 = vsel %vm2293_vm8, %v2181_v46, %v2325_v33  ;;  %v2387_v54 = vpack.c.bf16 %v2359_v36, %v2358_v34 }
 0x4f5   :  { %v2386_v39 = vpack.c.bf16 %v2357_v26, %v2356_v35 }
 0x4f7   :  { %2561 = vmatmul.mubr.bf16.gmra.mrb[56].mxu1 %v2386_v39 }
 0x4f8   :  { %2570 = vmatprep.mubr.bf16.mxu1 %v4135_v11 }
 0x4ff   :  { %2571 = vmatmul.mubr.bf16.gmra.mrb[60].mxu1 %v2387_v54 }
 0x500   :  { %2580 = vmatprep.mubr.bf16.mxu1 %v4135_v11 }
 0x504   :  { %v3637_v63 = vpop.f32.mrb[88].mxu0 }
 0x505   :  { %v2202_v42 = vadd.f32 %v3637_v63, %v5142_v25  ;;  %v2193_v10 = vpop.f32.mrb[89].mxu0 }
 0x506   :  { %v2194_v44 = vadd.f32 %v5142_v25, %v2193_v10  ;;  %v3638_v2 = vpop.f32.mrb[90].mxu0 }
 0x507   :  { %v2330_v27 = vmul.f32 0.2, %v2202_v42  ;;  %v2205_v45 = vadd.f32 %v3638_v2, %v5142_v25  ;;  %v2196_v8 = vpop.f32.mrb[91].mxu0  ;;  %vm2298_vm9 = vcmp.gt.f32.partialorder %v2202_v42, 0.0 }
 0x508   :  { %v2328_v52 = vmul.f32 0.2, %v2194_v44  ;;  %v2197_v20 = vadd.f32 %v5142_v25, %v2196_v8  ;;  %vm2296_vm10 = vcmp.gt.f32.partialorder %v2194_v44, 0.0 }
 0x509   :  { %vm2299_vm11 = vcmp.gt.f32.partialorder %v2205_v45, 0.0  ;;  %v2331_v47 = vmul.f32 0.2, %v2205_v45  ;;  %v2362_v50 = vsel %vm2298_vm9, %v2202_v42, %v2330_v27 }
 0x50a   :  { %vm2297_vm12 = vcmp.gt.f32.partialorder %v2197_v20, 0.0  ;;  %v2329_v57 = vmul.f32 0.2, %v2197_v20  ;;  %v2360_v53 = vsel %vm2296_vm10, %v2194_v44, %v2328_v52 }
 0x50b   :  { %v2363_v9 = vsel %vm2299_vm11, %v2205_v45, %v2331_v47 }
 0x50c   :  { %v2361_v29 = vsel %vm2297_vm12, %v2197_v20, %v2329_v57  ;;  %v2389_v55 = vpack.c.bf16 %v2363_v9, %v2362_v50 }
 0x50d   :  { %v2388_v56 = vpack.c.bf16 %v2361_v29, %v2360_v53 }
 0x50f   :  { %2581 = vmatmul.mubr.bf16.gmra.mrb[64].mxu1 %v2388_v56 }
 0x510   :  { %2590 = vmatprep.mubr.bf16.mxu1 %v4135_v11 }
 0x517   :  { %2591 = vmatmul.mubr.bf16.gmra.mrb[68].mxu1 %v2389_v55 }
 0x518   :  { %2600 = vmatprep.mubr.bf16.mxu1 %v4135_v11 }
 0x51c   :  { %v3641_v41 = vpop.f32.mrb[92].mxu0 }
 0x51d   :  { %v2218_v43 = vadd.f32 %v3641_v41, %v5142_v25  ;;  %v2209_v58 = vpop.f32.mrb[93].mxu0 }
 0x51e   :  { %v2210_v6 = vadd.f32 %v5142_v25, %v2209_v58  ;;  %v3642_v59 = vpop.f32.mrb[94].mxu0 }
 0x51f   :  { %v2334_v51 = vmul.f32 0.2, %v2218_v43  ;;  %v2221_v62 = vadd.f32 %v3642_v59, %v5142_v25  ;;  %v2212_v3 = vpop.f32.mrb[95].mxu0  ;;  %vm2302_vm13 = vcmp.gt.f32.partialorder %v2218_v43, 0.0 }
 0x520   :  { %v2332_v21 = vmul.f32 0.2, %v2210_v6  ;;  %v2213_v61 = vadd.f32 %v5142_v25, %v2212_v3  ;;  %vm2300_vm14 = vcmp.gt.f32.partialorder %v2210_v6, 0.0 }
 0x521   :  { %vm2303_vm15 = vcmp.gt.f32.partialorder %v2221_v62, 0.0  ;;  %v2335_v16 = vmul.f32 0.2, %v2221_v62  ;;  %v2366_v14 = vsel %vm2302_vm13, %v2218_v43, %v2334_v51 }
 0x522   :  { %vm2301_vm0 = vcmp.gt.f32.partialorder %v2213_v61, 0.0  ;;  %v2333_v24 = vmul.f32 0.2, %v2213_v61  ;;  %v2364_v40 = vsel %vm2300_vm14, %v2210_v6, %v2332_v21 }
 0x523   :  { %v2367_v31 = vsel %vm2303_vm15, %v2221_v62, %v2335_v16 }
 0x524   :  { %v2365_v4 = vsel %vm2301_vm0, %v2213_v61, %v2333_v24  ;;  %v2391_v5 = vpack.c.bf16 %v2367_v31, %v2366_v14 }
 0x525   :  { %v2390_v7 = vpack.c.bf16 %v2365_v4, %v2364_v40 }
 0x527   :  { %2601 = vmatmul.mubr.bf16.gmra.mrb[72].mxu1 %v2390_v7 }
 0x528   :  { %2610 = vmatprep.mubr.bf16.mxu1 %v4135_v11 }
 0x52f   :  { %2611 = vmatmul.mubr.bf16.gmra.mrb[76].mxu1 %v2391_v5 }
 0x530   :  { %2620 = vmatprep.mubr.bf16.mxu1 %v4135_v11 }
 0x534   :  { %v3645_v1 = vpop.f32.mrb[96].mxu0 }
 0x535   :  { %v2234_v49 = vadd.f32 %v3645_v1, %v5142_v25  ;;  %v2225_v19 = vpop.f32.mrb[97].mxu0 }
 0x536   :  { %v2226_v30 = vadd.f32 %v5142_v25, %v2225_v19  ;;  %v3646_v12 = vpop.f32.mrb[98].mxu0 }
 0x537   :  { %v2338_v15 = vmul.f32 0.2, %v2234_v49  ;;  %v2237_v17 = vadd.f32 %v3646_v12, %v5142_v25  ;;  %v2228_v32 = vpop.f32.mrb[99].mxu0  ;;  %vm2306_vm1 = vcmp.gt.f32.partialorder %v2234_v49, 0.0 }
 0x538   :  { %v2336_v13 = vmul.f32 0.2, %v2226_v30  ;;  %v2229_v18 = vadd.f32 %v5142_v25, %v2228_v32  ;;  %vm2304_vm2 = vcmp.gt.f32.partialorder %v2226_v30, 0.0 }
 0x539   :  { %vm2307_vm3 = vcmp.gt.f32.partialorder %v2237_v17, 0.0  ;;  %v2339_v0 = vmul.f32 0.2, %v2237_v17  ;;  %v2370_v23 = vsel %vm2306_vm1, %v2234_v49, %v2338_v15 }
 0x53a   :  { %vm2305_vm4 = vcmp.gt.f32.partialorder %v2229_v18, 0.0  ;;  %v2337_v22 = vmul.f32 0.2, %v2229_v18  ;;  %v2368_v37 = vsel %vm2304_vm2, %v2226_v30, %v2336_v13 }
 0x53b   :  { %v2371_v38 = vsel %vm2307_vm3, %v2237_v17, %v2339_v0  ;;  %v2418_v0 = vlaneseq }
 0x53c   :  { %v2369_v60 = vsel %vm2305_vm4, %v2229_v18, %v2337_v22  ;;  %v2393_v28 = vpack.c.bf16 %v2371_v38, %v2370_v23 }
 0x53d   :  { %v2392_v46 = vpack.c.bf16 %v2369_v60, %v2368_v37  ;;  %v2419_v22 = vshrl.u32 %v2418_v0, 7 }
 0x53f   :  { %2621 = vmatmul.mubr.bf16.gmra.mrb[80].mxu1 %v2392_v46  ;;  %v2420_v23 = vsub.s32 0, %v2419_v22  ;;  %v2424_v38 = vsub.s32 1, %v2419_v22 }
 0x540   :  { %2630 = vmatprep.mubr.bf16.mxu1 %v4135_v11 }
 0x547   :  { %2631 = vmatmul.mubr.bf16.gmra.mrb[84].mxu1 %v2393_v28 }
 0x548   :  { %2640 = vmatprep.mubr.bf16.mxu1 %v4135_v11 }
 0x54c   :  { %v3649_v48 = vpop.f32.mrb[100].mxu0 }
 0x54d   :  { %v2250_v33 = vadd.f32 %v3649_v48, %v5142_v25  ;;  %v2241_v34 = vpop.f32.mrb[101].mxu0 }
 0x54e   :  { %v2242_v36 = vadd.f32 %v5142_v25, %v2241_v34  ;;  %v3650_v35 = vpop.f32.mrb[102].mxu0 }
 0x54f   :  { %v2342_v26 = vmul.f32 0.2, %v2250_v33  ;;  %v2253_v54 = vadd.f32 %v3650_v35, %v5142_v25  ;;  %v2244_v39 = vpop.f32.mrb[103].mxu0  ;;  %vm2310_vm5 = vcmp.gt.f32.partialorder %v2250_v33, 0.0 }
 0x550   :  { %v2340_v63 = vmul.f32 0.2, %v2242_v36  ;;  %v2245_v42 = vadd.f32 %v5142_v25, %v2244_v39  ;;  %vm2308_vm6 = vcmp.gt.f32.partialorder %v2242_v36, 0.0 }
 0x551   :  { %vm2311_vm7 = vcmp.gt.f32.partialorder %v2253_v54, 0.0  ;;  %v2343_v10 = vmul.f32 0.2, %v2253_v54  ;;  %v2374_v2 = vsel %vm2310_vm5, %v2250_v33, %v2342_v26 }
 0x552   :  { %vm2309_vm8 = vcmp.gt.f32.partialorder %v2245_v42, 0.0  ;;  %v2341_v44 = vmul.f32 0.2, %v2245_v42  ;;  %v2372_v45 = vsel %vm2308_vm6, %v2242_v36, %v2340_v63 }
 0x553   :  { %v2375_v27 = vsel %vm2311_vm7, %v2253_v54, %v2343_v10 }
 0x554   :  { %v2373_v8 = vsel %vm2309_vm8, %v2245_v42, %v2341_v44  ;;  %v2395_v52 = vpack.c.bf16 %v2375_v27, %v2374_v2 }
 0x555   :  { %v2394_v20 = vpack.c.bf16 %v2373_v8, %v2372_v45 }
 0x557   :  { %2641 = vmatmul.mubr.bf16.gmra.mrb[88].mxu1 %v2394_v20 }
 0x558   :  { %2650 = vmatprep.mubr.bf16.mxu1 %v4135_v11 }
 0x55f   :  { %2651 = vmatmul.mubr.bf16.gmra.mrb[92].mxu1 %v2395_v52 }
 0x560   :  { %2660 = vmatprep.mubr.bf16.mxu1 %v4135_v11 }
 0x564   :  { %v3653_v47 = vpop.f32.mrb[104].mxu0 }
 0x565   :  { %v2266_v57 = vadd.f32 %v3653_v47, %v5142_v25  ;;  %v2257_v50 = vpop.f32.mrb[105].mxu0 }
 0x566   :  { %v2258_v9 = vadd.f32 %v5142_v25, %v2257_v50  ;;  %v3654_v53 = vpop.f32.mrb[106].mxu0 }
 0x567   :  { %v2346_v29 = vmul.f32 0.2, %v2266_v57  ;;  %v2269_v55 = vadd.f32 %v3654_v53, %v5142_v25  ;;  %v2260_v56 = vpop.f32.mrb[107].mxu0  ;;  %vm2314_vm9 = vcmp.gt.f32.partialorder %v2266_v57, 0.0 }
 0x568   :  { %v2344_v41 = vmul.f32 0.2, %v2258_v9  ;;  %v2261_v43 = vadd.f32 %v5142_v25, %v2260_v56  ;;  %vm2312_vm10 = vcmp.gt.f32.partialorder %v2258_v9, 0.0 }
 0x569   :  { %vm2315_vm11 = vcmp.gt.f32.partialorder %v2269_v55, 0.0  ;;  %v2347_v58 = vmul.f32 0.2, %v2269_v55  ;;  %v2378_v59 = vsel %vm2314_vm9, %v2266_v57, %v2346_v29 }
 0x56a   :  { %vm2313_vm12 = vcmp.gt.f32.partialorder %v2261_v43, 0.0  ;;  %v2345_v6 = vmul.f32 0.2, %v2261_v43  ;;  %v2376_v62 = vsel %vm2312_vm10, %v2258_v9, %v2344_v41 }
 0x56b   :  { %v2379_v51 = vsel %vm2315_vm11, %v2269_v55, %v2347_v58 }
 0x56c   :  { %v2377_v3 = vsel %vm2313_vm12, %v2261_v43, %v2345_v6  ;;  %v2397_v21 = vpack.c.bf16 %v2379_v51, %v2378_v59 }
 0x56d   :  { %v2396_v61 = vpack.c.bf16 %v2377_v3, %v2376_v62 }
 0x56f   :  { %2661 = vmatmul.mubr.bf16.gmra.mrb[96].mxu1 %v2396_v61 }
 0x570   :  { %2670 = vmatprep.mubr.bf16.mxu1 %v4135_v11 }
 0x577   :  { %2671 = vmatmul.mubr.bf16.gmra.mrb[100].mxu1 %v2397_v21 }
 0x578   :  { %2680 = vmatprep.mubr.bf16.mxu1 %v4135_v11 }
 0x57a   :  { %v3657_v16 = vpop.f32.mrb[108].mxu0 }
 0x57b   :  { %v2282_v24 = vadd.f32 %v3657_v16, %v5142_v25  ;;  %v2273_v14 = vpop.f32.mrb[109].mxu0 }
 0x57c   :  { %v2274_v31 = vadd.f32 %v5142_v25, %v2273_v14  ;;  %v3658_v40 = vpop.f32.mrb[110].mxu0 }
 0x57d   :  { %v2350_v4 = vmul.f32 0.2, %v2282_v24  ;;  %v2285_v5 = vadd.f32 %v3658_v40, %v5142_v25  ;;  %v2276_v7 = vpop.f32.mrb[111].mxu0  ;;  %vm2318_vm13 = vcmp.gt.f32.partialorder %v2282_v24, 0.0 }
 0x57e   :  { %v2348_v1 = vmul.f32 0.2, %v2274_v31  ;;  %v2277_v49 = vadd.f32 %v5142_v25, %v2276_v7  ;;  %vm2316_vm14 = vcmp.gt.f32.partialorder %v2274_v31, 0.0  ;;  %v2416_v25 = vld [vmem:[%s5290_s13] sm:$0x3]  ;;  %s4137_s13 = smov [#allocation7]  }
 0x57f   :  { %vm2319_vm15 = vcmp.gt.f32.partialorder %v2285_v5, 0.0  ;;  %v2351_v19 = vmul.f32 0.2, %v2285_v5  ;;  %v2382_v12 = vsel %vm2318_vm13, %v2282_v24, %v2350_v4  ;;  %v5194_v37 = vrot.slane %v2416_v25, %v2420_v23  ;;  %s3187_s21 = sshll.u32 %s4137_s13, 4  ;;  %s3188_s21 = int_to_ptr.vmem [resolvable:$true] %s3187_s21 }
 0x580   :  { %vm2317_vm0 = vcmp.gt.f32.partialorder %v2277_v49, 0.0  ;;  %v2349_v30 = vmul.f32 0.2, %v2277_v49  ;;  %v2380_v17 = vsel %vm2316_vm14, %v2274_v31, %v2348_v1  ;;  %v5196_v60 = vrot.slane %v2416_v25, %v2424_v38  ;;  %s4099_s22 = scalar_lea.vmem %s3188_s21, 8192  ;;  %p4104_p3 = scmp.lt.s32.totalorder %s3188_s21, %s3188_s21 }
 0x581   :  { %v2383_v15 = vsel %vm2319_vm15, %v2285_v5, %v2351_v19  ;;  %p4100_p2 = scmp.ne.s32.totalorder %s3188_s21, %s4099_s22  ;;  %p4105_p4 = scmp.lt.s32.totalorder %s4099_s22, %s4099_s22 }
 0x582   :  { %v2381_v32 = vsel %vm2317_vm0, %v2277_v49, %v2349_v30  ;;  %v2399_v13 = vpack.c.bf16 %v2383_v15, %v2382_v12 }
 0x583   :  { %v2398_v18 = vpack.c.bf16 %v2381_v32, %v2380_v17  ;;  %p4106_p5 = por %p4105_p4, %p4104_p3 }
 0x585   :  { %2681 = vmatmul.mubr.bf16.gmra.mrb[104].mxu1 %v2398_v18  ;;  %p4107_p6 = pnand %p4106_p5, %p4100_p2 }
 0x586   :  { %2690 = vmatprep.mubr.bf16.mxu1 %v4135_v11 }
 0x58d   :  { %2691 = vmatmul.mubr.bf16.gmra.mrb[108].mxu1 %v2399_v13 }
 0x5b2   :  { %v2542_v28 = vpop.f32.mrb[48].mxu1 }
 0x5b3   :  { %v2543_v46 = vadd.f32 %v2542_v28, %v5194_v37  ;;  %v2544_v48 = vpop.f32.mrb[49].mxu1 }
 0x5b4   :  { %v2545_v33 = vadd.f32 %v2544_v48, %v5196_v60  ;;  %v2546_v11 = vpop.f32.mrb[50].mxu1 }
 0x5b5   :  { %v3267_v34 = vmul.f32 -1.442695, %v2543_v46  ;;  %v2547_v36 = vadd.f32 %v2546_v11, %v5194_v37  ;;  %v2548_v35 = vpop.f32.mrb[51].mxu1 }
 0x5b6   :  { %v3268_v26 = vmul.f32 -1.442695, %v2545_v33  ;;  %v2549_v54 = vadd.f32 %v2548_v35, %v5196_v60 }
 0x5b7   :  { %3799 = vpow2.f32 %v3267_v34  ;;  %v3269_v39 = vmul.f32 -1.442695, %v2547_v36 }
 0x5b8   :  { %3801 = vpow2.f32 %v3268_v26  ;;  %v3270_v63 = vmul.f32 -1.442695, %v2549_v54 }
 0x5b9   :  { %3803 = vpow2.f32 %v3269_v39 }
 0x5ba   :  { %3805 = vpow2.f32 %v3270_v63  ;;  %v2552_v42 = vpop.f32.mrb[52].mxu1 }
 0x5bb   :  { %v2553_v10 = vadd.f32 %v2552_v42, %v5194_v37  ;;  %v2554_v44 = vpop.f32.mrb[53].mxu1 }
 0x5bc   :  { %v2555_v2 = vadd.f32 %v2554_v44, %v5196_v60  ;;  %v2556_v27 = vpop.f32.mrb[54].mxu1 }
 0x5bd   :  { %v3271_v45 = vmul.f32 -1.442695, %v2553_v10  ;;  %v2557_v8 = vadd.f32 %v2556_v27, %v5194_v37  ;;  %v2558_v52 = vpop.f32.mrb[55].mxu1 }
 0x5be   :  { %v3272_v20 = vmul.f32 -1.442695, %v2555_v2  ;;  %v2559_v47 = vadd.f32 %v2558_v52, %v5196_v60 }
 0x5bf   :  { %3807 = vpow2.f32 %v3271_v45  ;;  %v3273_v57 = vmul.f32 -1.442695, %v2557_v8 }
 0x5c0   :  { %3809 = vpow2.f32 %v3272_v20  ;;  %v3274_v50 = vmul.f32 -1.442695, %v2559_v47 }
 0x5c1   :  { %v3800_v9 = vpop.eup %3799  ;;  %3811 = vpow2.f32 %v3273_v57 }
 0x5c2   :  { %v3802_v53 = vpop.eup %3801  ;;  %v2893_v29 = vadd.f32 1.0, %v3800_v9  ;;  %3813 = vpow2.f32 %v3274_v50 }
 0x5c3   :  { %v3804_v55 = vpop.eup %3803  ;;  %v2894_v56 = vadd.f32 1.0, %v3802_v53 }
 0x5c4   :  { %v3806_v41 = vpop.eup %3805  ;;  %3815 = vrcp.f32 %v2893_v29  ;;  %v2895_v43 = vadd.f32 1.0, %v3804_v55 }
 0x5c5   :  { %3817 = vrcp.f32 %v2894_v56  ;;  %v2896_v58 = vadd.f32 1.0, %v3806_v41 }
 0x5c6   :  { %3819 = vrcp.f32 %v2895_v43 }
 0x5c7   :  { %3821 = vrcp.f32 %v2896_v58 }
 0x5c9   :  { %v3808_v6 = vpop.eup %3807 }
 0x5ca   :  { %v3810_v59 = vpop.eup %3809  ;;  %v2897_v51 = vadd.f32 1.0, %v3808_v6  ;;  %v2562_v62 = vpop.f32.mrb[56].mxu1 }
 0x5cb   :  { %v3812_v3 = vpop.eup %3811  ;;  %v2898_v21 = vadd.f32 1.0, %v3810_v59  ;;  %v2563_v61 = vadd.f32 %v2562_v62, %v5194_v37  ;;  %v2564_v16 = vpop.f32.mrb[57].mxu1 }
 0x5cc   :  { %v3814_v24 = vpop.eup %3813  ;;  %3823 = vrcp.f32 %v2897_v51  ;;  %v2899_v14 = vadd.f32 1.0, %v3812_v3  ;;  %v2565_v31 = vadd.f32 %v2564_v16, %v5196_v60  ;;  %v2566_v40 = vpop.f32.mrb[58].mxu1 }
 0x5cd   :  { %3825 = vrcp.f32 %v2898_v21  ;;  %v2900_v4 = vadd.f32 1.0, %v3814_v24  ;;  %v3275_v5 = vmul.f32 -1.442695, %v2563_v61  ;;  %v2567_v7 = vadd.f32 %v2566_v40, %v5194_v37  ;;  %v2568_v1 = vpop.f32.mrb[59].mxu1 }
 0x5ce   :  { %v3816_v49 = vpop.eup %3815  ;;  %3827 = vrcp.f32 %v2899_v14  ;;  %v3276_v19 = vmul.f32 -1.442695, %v2565_v31  ;;  %v2569_v30 = vadd.f32 %v2568_v1, %v5196_v60 }
 0x5cf   :  { %v3818_v12 = vpop.eup %3817  ;;  %3085 = vst [vmem:[#allocation7] sm:$0xff] %v3816_v49  ;;  %3829 = vrcp.f32 %v2900_v4  ;;  %v3277_v15 = vmul.f32 -1.442695, %v2567_v7 }
 0x5d0   :  { %v3820_v17 = vpop.eup %3819  ;;  %3086 = vst [vmem:[#allocation7 + $0x8] sm:$0xff] %v3818_v12  ;;  %3831 = vpow2.f32 %v3275_v5  ;;  %v3278_v32 = vmul.f32 -1.442695, %v2569_v30 }
 0x5d1   :  { %v3822_v13 = vpop.eup %3821  ;;  %3087 = vst [vmem:[#allocation7 + $0x10] sm:$0xff] %v3820_v17  ;;  %3833 = vpow2.f32 %v3276_v19 }
 0x5d2   :  { %3088 = vst [vmem:[#allocation7 + $0x18] sm:$0xff] %v3822_v13  ;;  %3835 = vpow2.f32 %v3277_v15  ;;  %v2572_v18 = vpop.f32.mrb[60].mxu1 }
 0x5d3   :  { %3837 = vpow2.f32 %v3278_v32  ;;  %v2573_v0 = vadd.f32 %v2572_v18, %v5194_v37  ;;  %v2574_v22 = vpop.f32.mrb[61].mxu1 }
 0x5d4   :  { %v2575_v23 = vadd.f32 %v2574_v22, %v5196_v60  ;;  %v2576_v25 = vpop.f32.mrb[62].mxu1 }
 0x5d5   :  { %v3279_v38 = vmul.f32 -1.442695, %v2573_v0  ;;  %v2577_v28 = vadd.f32 %v2576_v25, %v5194_v37  ;;  %v2578_v46 = vpop.f32.mrb[63].mxu1 }
 0x5d6   :  { %v3824_v48 = vpop.eup %3823  ;;  %v3280_v33 = vmul.f32 -1.442695, %v2575_v23  ;;  %v2579_v11 = vadd.f32 %v2578_v46, %v5196_v60 }
 0x5d7   :  { %v3826_v34 = vpop.eup %3825  ;;  %3089 = vst [vmem:[#allocation7 + $0x20] sm:$0xff] %v3824_v48  ;;  %3839 = vpow2.f32 %v3279_v38  ;;  %v3281_v36 = vmul.f32 -1.442695, %v2577_v28 }
 0x5d8   :  { %v3828_v35 = vpop.eup %3827  ;;  %3090 = vst [vmem:[#allocation7 + $0x28] sm:$0xff] %v3826_v34  ;;  %3841 = vpow2.f32 %v3280_v33  ;;  %v3282_v26 = vmul.f32 -1.442695, %v2579_v11 }
 0x5d9   :  { %v3830_v54 = vpop.eup %3829  ;;  %3091 = vst [vmem:[#allocation7 + $0x30] sm:$0xff] %v3828_v35  ;;  %3843 = vpow2.f32 %v3281_v36 }
 0x5da   :  { %v3832_v39 = vpop.eup %3831  ;;  %3092 = vst [vmem:[#allocation7 + $0x38] sm:$0xff] %v3830_v54  ;;  %3845 = vpow2.f32 %v3282_v26 }
 0x5db   :  { %v3834_v63 = vpop.eup %3833  ;;  %v2901_v42 = vadd.f32 1.0, %v3832_v39 }
 0x5dc   :  { %v3836_v10 = vpop.eup %3835  ;;  %v2902_v44 = vadd.f32 1.0, %v3834_v63 }
 0x5dd   :  { %v3838_v2 = vpop.eup %3837  ;;  %3847 = vrcp.f32 %v2901_v42  ;;  %v2903_v27 = vadd.f32 1.0, %v3836_v10 }
 0x5de   :  { %3849 = vrcp.f32 %v2902_v44  ;;  %v2904_v45 = vadd.f32 1.0, %v3838_v2 }
 0x5df   :  { %3851 = vrcp.f32 %v2903_v27 }
 0x5e0   :  { %3853 = vrcp.f32 %v2904_v45 }
 0x5e1   :  { %v3840_v8 = vpop.eup %3839 }
 0x5e2   :  { %v3842_v52 = vpop.eup %3841  ;;  %v2905_v20 = vadd.f32 1.0, %v3840_v8  ;;  %v2582_v47 = vpop.f32.mrb[64].mxu1 }
 0x5e3   :  { %v3844_v57 = vpop.eup %3843  ;;  %v2906_v50 = vadd.f32 1.0, %v3842_v52  ;;  %v2583_v9 = vadd.f32 %v2582_v47, %v5194_v37  ;;  %v2584_v53 = vpop.f32.mrb[65].mxu1 }
 0x5e4   :  { %v3846_v29 = vpop.eup %3845  ;;  %3855 = vrcp.f32 %v2905_v20  ;;  %v2907_v55 = vadd.f32 1.0, %v3844_v57  ;;  %v2585_v56 = vadd.f32 %v2584_v53, %v5196_v60  ;;  %v2586_v41 = vpop.f32.mrb[66].mxu1 }
 0x5e5   :  { %3857 = vrcp.f32 %v2906_v50  ;;  %v2908_v43 = vadd.f32 1.0, %v3846_v29  ;;  %v3283_v58 = vmul.f32 -1.442695, %v2583_v9  ;;  %v2587_v6 = vadd.f32 %v2586_v41, %v5194_v37  ;;  %v2588_v59 = vpop.f32.mrb[67].mxu1 }
 0x5e6   :  { %3859 = vrcp.f32 %v2907_v55  ;;  %v3284_v51 = vmul.f32 -1.442695, %v2585_v56  ;;  %v2589_v62 = vadd.f32 %v2588_v59, %v5196_v60 }
 0x5e7   :  { %v3848_v3 = vpop.eup %3847  ;;  %3861 = vrcp.f32 %v2908_v43  ;;  %v3285_v21 = vmul.f32 -1.442695, %v2587_v6 }
 0x5e8   :  { %v3850_v61 = vpop.eup %3849  ;;  %3093 = vst [vmem:[#allocation7 + $0x40] sm:$0xff] %v3848_v3  ;;  %3863 = vpow2.f32 %v3283_v58  ;;  %v3286_v16 = vmul.f32 -1.442695, %v2589_v62 }
 0x5e9   :  { %v3852_v24 = vpop.eup %3851  ;;  %3094 = vst [vmem:[#allocation7 + $0x48] sm:$0xff] %v3850_v61  ;;  %3865 = vpow2.f32 %v3284_v51 }
 0x5ea   :  { %v3854_v14 = vpop.eup %3853  ;;  %3095 = vst [vmem:[#allocation7 + $0x50] sm:$0xff] %v3852_v24  ;;  %3867 = vpow2.f32 %v3285_v21  ;;  %v2592_v31 = vpop.f32.mrb[68].mxu1 }
 0x5eb   :  { %3096 = vst [vmem:[#allocation7 + $0x58] sm:$0xff] %v3854_v14  ;;  %3869 = vpow2.f32 %v3286_v16  ;;  %v2593_v40 = vadd.f32 %v2592_v31, %v5194_v37  ;;  %v2594_v4 = vpop.f32.mrb[69].mxu1 }
 0x5ec   :  { %v2595_v5 = vadd.f32 %v2594_v4, %v5196_v60  ;;  %v2596_v7 = vpop.f32.mrb[70].mxu1 }
 0x5ed   :  { %v3287_v1 = vmul.f32 -1.442695, %v2593_v40  ;;  %v2597_v49 = vadd.f32 %v2596_v7, %v5194_v37  ;;  %v2598_v19 = vpop.f32.mrb[71].mxu1 }
 0x5ee   :  { %v3856_v30 = vpop.eup %3855  ;;  %v3288_v12 = vmul.f32 -1.442695, %v2595_v5  ;;  %v2599_v15 = vadd.f32 %v2598_v19, %v5196_v60 }
 0x5ef   :  { %v3858_v17 = vpop.eup %3857  ;;  %3097 = vst [vmem:[#allocation7 + $0x60] sm:$0xff] %v3856_v30  ;;  %3871 = vpow2.f32 %v3287_v1  ;;  %v3289_v32 = vmul.f32 -1.442695, %v2597_v49 }
 0x5f0   :  { %v3860_v13 = vpop.eup %3859  ;;  %3098 = vst [vmem:[#allocation7 + $0x68] sm:$0xff] %v3858_v17  ;;  %3873 = vpow2.f32 %v3288_v12  ;;  %v3290_v18 = vmul.f32 -1.442695, %v2599_v15 }
 0x5f1   :  { %v3862_v0 = vpop.eup %3861  ;;  %3099 = vst [vmem:[#allocation7 + $0x70] sm:$0xff] %v3860_v13  ;;  %3875 = vpow2.f32 %v3289_v32 }
 0x5f2   :  { %v3864_v22 = vpop.eup %3863  ;;  %3100 = vst [vmem:[#allocation7 + $0x78] sm:$0xff] %v3862_v0  ;;  %3877 = vpow2.f32 %v3290_v18 }
 0x5f3   :  { %v3866_v23 = vpop.eup %3865  ;;  %v2909_v25 = vadd.f32 1.0, %v3864_v22 }
 0x5f4   :  { %v3868_v38 = vpop.eup %3867  ;;  %v2910_v28 = vadd.f32 1.0, %v3866_v23 }
 0x5f5   :  { %v3870_v46 = vpop.eup %3869  ;;  %3879 = vrcp.f32 %v2909_v25  ;;  %v2911_v48 = vadd.f32 1.0, %v3868_v38 }
 0x5f6   :  { %3881 = vrcp.f32 %v2910_v28  ;;  %v2912_v33 = vadd.f32 1.0, %v3870_v46 }
 0x5f7   :  { %3883 = vrcp.f32 %v2911_v48 }
 0x5f8   :  { %3885 = vrcp.f32 %v2912_v33 }
 0x5f9   :  { %v3872_v11 = vpop.eup %3871 }
 0x5fa   :  { %v3874_v34 = vpop.eup %3873  ;;  %v2913_v36 = vadd.f32 1.0, %v3872_v11  ;;  %v2602_v35 = vpop.f32.mrb[72].mxu1 }
 0x5fb   :  { %v3876_v26 = vpop.eup %3875  ;;  %v2914_v54 = vadd.f32 1.0, %v3874_v34  ;;  %v2603_v39 = vadd.f32 %v2602_v35, %v5194_v37  ;;  %v2604_v63 = vpop.f32.mrb[73].mxu1 }
 0x5fc   :  { %v3878_v42 = vpop.eup %3877  ;;  %3887 = vrcp.f32 %v2913_v36  ;;  %v2915_v10 = vadd.f32 1.0, %v3876_v26  ;;  %v2605_v44 = vadd.f32 %v2604_v63, %v5196_v60  ;;  %v2606_v2 = vpop.f32.mrb[74].mxu1 }
 0x5fd   :  { %3889 = vrcp.f32 %v2914_v54  ;;  %v2916_v27 = vadd.f32 1.0, %v3878_v42  ;;  %v3291_v45 = vmul.f32 -1.442695, %v2603_v39  ;;  %v2607_v8 = vadd.f32 %v2606_v2, %v5194_v37  ;;  %v2608_v52 = vpop.f32.mrb[75].mxu1 }
 0x5fe   :  { %3891 = vrcp.f32 %v2915_v10  ;;  %v3292_v20 = vmul.f32 -1.442695, %v2605_v44  ;;  %v2609_v47 = vadd.f32 %v2608_v52, %v5196_v60 }
 0x5ff   :  { %v3880_v57 = vpop.eup %3879  ;;  %3893 = vrcp.f32 %v2916_v27  ;;  %v3293_v50 = vmul.f32 -1.442695, %v2607_v8 }
 0x600   :  { %v3882_v9 = vpop.eup %3881  ;;  %3101 = vst [vmem:[#allocation7 + $0x80] sm:$0xff] %v3880_v57  ;;  %3895 = vpow2.f32 %v3291_v45  ;;  %v3294_v53 = vmul.f32 -1.442695, %v2609_v47 }
 0x601   :  { %v3884_v29 = vpop.eup %3883  ;;  %3102 = vst [vmem:[#allocation7 + $0x88] sm:$0xff] %v3882_v9  ;;  %3897 = vpow2.f32 %v3292_v20 }
 0x602   :  { %v3886_v55 = vpop.eup %3885  ;;  %3103 = vst [vmem:[#allocation7 + $0x90] sm:$0xff] %v3884_v29  ;;  %3899 = vpow2.f32 %v3293_v50  ;;  %v2612_v56 = vpop.f32.mrb[76].mxu1 }
 0x603   :  { %3104 = vst [vmem:[#allocation7 + $0x98] sm:$0xff] %v3886_v55  ;;  %3901 = vpow2.f32 %v3294_v53  ;;  %v2613_v41 = vadd.f32 %v2612_v56, %v5194_v37  ;;  %v2614_v43 = vpop.f32.mrb[77].mxu1 }
 0x604   :  { %v2615_v58 = vadd.f32 %v2614_v43, %v5196_v60  ;;  %v2616_v6 = vpop.f32.mrb[78].mxu1 }
 0x605   :  { %v3295_v59 = vmul.f32 -1.442695, %v2613_v41  ;;  %v2617_v51 = vadd.f32 %v2616_v6, %v5194_v37  ;;  %v2618_v62 = vpop.f32.mrb[79].mxu1 }
 0x606   :  { %v3888_v3 = vpop.eup %3887  ;;  %v3296_v21 = vmul.f32 -1.442695, %v2615_v58  ;;  %v2619_v61 = vadd.f32 %v2618_v62, %v5196_v60 }
 0x607   :  { %v3890_v16 = vpop.eup %3889  ;;  %3105 = vst [vmem:[#allocation7 + $0xa0] sm:$0xff] %v3888_v3  ;;  %3903 = vpow2.f32 %v3295_v59  ;;  %v3297_v24 = vmul.f32 -1.442695, %v2617_v51 }
 0x608   :  { %v3892_v14 = vpop.eup %3891  ;;  %3106 = vst [vmem:[#allocation7 + $0xa8] sm:$0xff] %v3890_v16  ;;  %3905 = vpow2.f32 %v3296_v21  ;;  %v3298_v31 = vmul.f32 -1.442695, %v2619_v61 }
 0x609   :  { %v3894_v40 = vpop.eup %3893  ;;  %3107 = vst [vmem:[#allocation7 + $0xb0] sm:$0xff] %v3892_v14  ;;  %3907 = vpow2.f32 %v3297_v24 }
 0x60a   :  { %v3896_v4 = vpop.eup %3895  ;;  %3108 = vst [vmem:[#allocation7 + $0xb8] sm:$0xff] %v3894_v40  ;;  %3909 = vpow2.f32 %v3298_v31 }
 0x60b   :  { %v3898_v5 = vpop.eup %3897  ;;  %v2917_v7 = vadd.f32 1.0, %v3896_v4 }
 0x60c   :  { %v3900_v1 = vpop.eup %3899  ;;  %v2918_v49 = vadd.f32 1.0, %v3898_v5 }
 0x60d   :  { %v3902_v19 = vpop.eup %3901  ;;  %3911 = vrcp.f32 %v2917_v7  ;;  %v2919_v30 = vadd.f32 1.0, %v3900_v1 }
 0x60e   :  { %3913 = vrcp.f32 %v2918_v49  ;;  %v2920_v12 = vadd.f32 1.0, %v3902_v19 }
 0x60f   :  { %3915 = vrcp.f32 %v2919_v30 }
 0x610   :  { %3917 = vrcp.f32 %v2920_v12 }
 0x611   :  { %v3904_v15 = vpop.eup %3903 }
 0x612   :  { %v3906_v17 = vpop.eup %3905  ;;  %v2921_v32 = vadd.f32 1.0, %v3904_v15  ;;  %v2622_v13 = vpop.f32.mrb[80].mxu1 }
 0x613   :  { %v3908_v18 = vpop.eup %3907  ;;  %v2922_v0 = vadd.f32 1.0, %v3906_v17  ;;  %v2623_v22 = vadd.f32 %v2622_v13, %v5194_v37  ;;  %v2624_v23 = vpop.f32.mrb[81].mxu1 }
 0x614   :  { %v3910_v25 = vpop.eup %3909  ;;  %3919 = vrcp.f32 %v2921_v32  ;;  %v2923_v38 = vadd.f32 1.0, %v3908_v18  ;;  %v2625_v28 = vadd.f32 %v2624_v23, %v5196_v60  ;;  %v2626_v46 = vpop.f32.mrb[82].mxu1 }
 0x615   :  { %3921 = vrcp.f32 %v2922_v0  ;;  %v2924_v48 = vadd.f32 1.0, %v3910_v25  ;;  %v3299_v33 = vmul.f32 -1.442695, %v2623_v22  ;;  %v2627_v11 = vadd.f32 %v2626_v46, %v5194_v37  ;;  %v2628_v34 = vpop.f32.mrb[83].mxu1 }
 0x616   :  { %3923 = vrcp.f32 %v2923_v38  ;;  %v3300_v36 = vmul.f32 -1.442695, %v2625_v28  ;;  %v2629_v35 = vadd.f32 %v2628_v34, %v5196_v60 }
 0x617   :  { %v3912_v26 = vpop.eup %3911  ;;  %3925 = vrcp.f32 %v2924_v48  ;;  %v3301_v54 = vmul.f32 -1.442695, %v2627_v11 }
 0x618   :  { %v3914_v39 = vpop.eup %3913  ;;  %3109 = vst [vmem:[#allocation7 + $0xc0] sm:$0xff] %v3912_v26  ;;  %3927 = vpow2.f32 %v3299_v33  ;;  %v3302_v63 = vmul.f32 -1.442695, %v2629_v35 }
 0x619   :  { %v3916_v42 = vpop.eup %3915  ;;  %3110 = vst [vmem:[#allocation7 + $0xc8] sm:$0xff] %v3914_v39  ;;  %3929 = vpow2.f32 %v3300_v36 }
 0x61a   :  { %v3918_v10 = vpop.eup %3917  ;;  %3111 = vst [vmem:[#allocation7 + $0xd0] sm:$0xff] %v3916_v42  ;;  %3931 = vpow2.f32 %v3301_v54  ;;  %v2632_v44 = vpop.f32.mrb[84].mxu1 }
 0x61b   :  { %3112 = vst [vmem:[#allocation7 + $0xd8] sm:$0xff] %v3918_v10  ;;  %3933 = vpow2.f32 %v3302_v63  ;;  %v2633_v2 = vadd.f32 %v2632_v44, %v5194_v37  ;;  %v2634_v27 = vpop.f32.mrb[85].mxu1 }
 0x61c   :  { %v2635_v45 = vadd.f32 %v2634_v27, %v5196_v60  ;;  %v2636_v8 = vpop.f32.mrb[86].mxu1 }
 0x61d   :  { %v3303_v52 = vmul.f32 -1.442695, %v2633_v2  ;;  %v2637_v20 = vadd.f32 %v2636_v8, %v5194_v37  ;;  %v2638_v47 = vpop.f32.mrb[87].mxu1 }
 0x61e   :  { %v3920_v57 = vpop.eup %3919  ;;  %v3304_v50 = vmul.f32 -1.442695, %v2635_v45  ;;  %v2639_v9 = vadd.f32 %v2638_v47, %v5196_v60 }
 0x61f   :  { %v3922_v53 = vpop.eup %3921  ;;  %3113 = vst [vmem:[#allocation7 + $0xe0] sm:$0xff] %v3920_v57  ;;  %3935 = vpow2.f32 %v3303_v52  ;;  %v3305_v29 = vmul.f32 -1.442695, %v2637_v20 }
 0x620   :  { %v3924_v55 = vpop.eup %3923  ;;  %3114 = vst [vmem:[#allocation7 + $0xe8] sm:$0xff] %v3922_v53  ;;  %3937 = vpow2.f32 %v3304_v50  ;;  %v3306_v56 = vmul.f32 -1.442695, %v2639_v9 }
 0x621   :  { %v3926_v41 = vpop.eup %3925  ;;  %3115 = vst [vmem:[#allocation7 + $0xf0] sm:$0xff] %v3924_v55  ;;  %3939 = vpow2.f32 %v3305_v29 }
 0x622   :  { %v3928_v43 = vpop.eup %3927  ;;  %3116 = vst [vmem:[#allocation7 + $0xf8] sm:$0xff] %v3926_v41  ;;  %3941 = vpow2.f32 %v3306_v56 }
 0x623   :  { %v3930_v58 = vpop.eup %3929  ;;  %v2925_v6 = vadd.f32 1.0, %v3928_v43 }
 0x624   :  { %v3932_v59 = vpop.eup %3931  ;;  %v2926_v51 = vadd.f32 1.0, %v3930_v58 }
 0x625   :  { %v3934_v62 = vpop.eup %3933  ;;  %3943 = vrcp.f32 %v2925_v6  ;;  %v2927_v3 = vadd.f32 1.0, %v3932_v59 }
 0x626   :  { %3945 = vrcp.f32 %v2926_v51  ;;  %v2928_v21 = vadd.f32 1.0, %v3934_v62 }
 0x627   :  { %3947 = vrcp.f32 %v2927_v3 }
 0x628   :  { %3949 = vrcp.f32 %v2928_v21 }
 0x629   :  { %v3936_v61 = vpop.eup %3935 }
 0x62a   :  { %v3938_v16 = vpop.eup %3937  ;;  %v2929_v24 = vadd.f32 1.0, %v3936_v61  ;;  %v2642_v14 = vpop.f32.mrb[88].mxu1 }
 0x62b   :  { %v3940_v31 = vpop.eup %3939  ;;  %v2930_v40 = vadd.f32 1.0, %v3938_v16  ;;  %v2643_v4 = vadd.f32 %v2642_v14, %v5194_v37  ;;  %v2644_v5 = vpop.f32.mrb[89].mxu1 }
 0x62c   :  { %v3942_v7 = vpop.eup %3941  ;;  %3951 = vrcp.f32 %v2929_v24  ;;  %v2931_v1 = vadd.f32 1.0, %v3940_v31  ;;  %v2645_v49 = vadd.f32 %v2644_v5, %v5196_v60  ;;  %v2646_v19 = vpop.f32.mrb[90].mxu1 }
 0x62d   :  { %3953 = vrcp.f32 %v2930_v40  ;;  %v2932_v30 = vadd.f32 1.0, %v3942_v7  ;;  %v3307_v12 = vmul.f32 -1.442695, %v2643_v4  ;;  %v2647_v15 = vadd.f32 %v2646_v19, %v5194_v37  ;;  %v2648_v17 = vpop.f32.mrb[91].mxu1 }
 0x62e   :  { %3955 = vrcp.f32 %v2931_v1  ;;  %v3308_v32 = vmul.f32 -1.442695, %v2645_v49  ;;  %v2649_v13 = vadd.f32 %v2648_v17, %v5196_v60 }
 0x62f   :  { %v3944_v18 = vpop.eup %3943  ;;  %3957 = vrcp.f32 %v2932_v30  ;;  %v3309_v0 = vmul.f32 -1.442695, %v2647_v15 }
 0x630   :  { %v3946_v22 = vpop.eup %3945  ;;  %3117 = vst [vmem:[#allocation7 + $0x100] sm:$0xff] %v3944_v18  ;;  %3959 = vpow2.f32 %v3307_v12  ;;  %v3310_v23 = vmul.f32 -1.442695, %v2649_v13 }
 0x631   :  { %v3948_v25 = vpop.eup %3947  ;;  %3118 = vst [vmem:[#allocation7 + $0x108] sm:$0xff] %v3946_v22  ;;  %3961 = vpow2.f32 %v3308_v32 }
 0x632   :  { %v3950_v38 = vpop.eup %3949  ;;  %3119 = vst [vmem:[#allocation7 + $0x110] sm:$0xff] %v3948_v25  ;;  %3963 = vpow2.f32 %v3309_v0  ;;  %v2652_v28 = vpop.f32.mrb[92].mxu1 }
 0x633   :  { %3120 = vst [vmem:[#allocation7 + $0x118] sm:$0xff] %v3950_v38  ;;  %3965 = vpow2.f32 %v3310_v23  ;;  %v2653_v46 = vadd.f32 %v2652_v28, %v5194_v37  ;;  %v2654_v48 = vpop.f32.mrb[93].mxu1 }
 0x634   :  { %v2655_v33 = vadd.f32 %v2654_v48, %v5196_v60  ;;  %v2656_v11 = vpop.f32.mrb[94].mxu1 }
 0x635   :  { %v3311_v34 = vmul.f32 -1.442695, %v2653_v46  ;;  %v2657_v36 = vadd.f32 %v2656_v11, %v5194_v37  ;;  %v2658_v35 = vpop.f32.mrb[95].mxu1 }
 0x636   :  { %v3952_v26 = vpop.eup %3951  ;;  %v3312_v54 = vmul.f32 -1.442695, %v2655_v33  ;;  %v2659_v39 = vadd.f32 %v2658_v35, %v5196_v60 }
 0x637   :  { %v3954_v63 = vpop.eup %3953  ;;  %3121 = vst [vmem:[#allocation7 + $0x120] sm:$0xff] %v3952_v26  ;;  %3967 = vpow2.f32 %v3311_v34  ;;  %v3313_v42 = vmul.f32 -1.442695, %v2657_v36 }
 0x638   :  { %v3956_v10 = vpop.eup %3955  ;;  %3122 = vst [vmem:[#allocation7 + $0x128] sm:$0xff] %v3954_v63  ;;  %3969 = vpow2.f32 %v3312_v54  ;;  %v3314_v44 = vmul.f32 -1.442695, %v2659_v39 }
 0x639   :  { %v3958_v2 = vpop.eup %3957  ;;  %3123 = vst [vmem:[#allocation7 + $0x130] sm:$0xff] %v3956_v10  ;;  %3971 = vpow2.f32 %v3313_v42 }
 0x63a   :  { %v3960_v27 = vpop.eup %3959  ;;  %3124 = vst [vmem:[#allocation7 + $0x138] sm:$0xff] %v3958_v2  ;;  %3973 = vpow2.f32 %v3314_v44 }
 0x63b   :  { %v3962_v45 = vpop.eup %3961  ;;  %v2933_v8 = vadd.f32 1.0, %v3960_v27 }
 0x63c   :  { %v3964_v52 = vpop.eup %3963  ;;  %v2934_v20 = vadd.f32 1.0, %v3962_v45 }
 0x63d   :  { %v3966_v47 = vpop.eup %3965  ;;  %3975 = vrcp.f32 %v2933_v8  ;;  %v2935_v57 = vadd.f32 1.0, %v3964_v52 }
 0x63e   :  { %3977 = vrcp.f32 %v2934_v20  ;;  %v2936_v50 = vadd.f32 1.0, %v3966_v47 }
 0x63f   :  { %3979 = vrcp.f32 %v2935_v57 }
 0x640   :  { %3981 = vrcp.f32 %v2936_v50 }
 0x641   :  { %v3968_v9 = vpop.eup %3967 }
 0x642   :  { %v3970_v53 = vpop.eup %3969  ;;  %v2937_v29 = vadd.f32 1.0, %v3968_v9  ;;  %v2662_v55 = vpop.f32.mrb[96].mxu1 }
 0x643   :  { %v3972_v56 = vpop.eup %3971  ;;  %v2938_v41 = vadd.f32 1.0, %v3970_v53  ;;  %v2663_v43 = vadd.f32 %v2662_v55, %v5194_v37  ;;  %v2664_v58 = vpop.f32.mrb[97].mxu1 }
 0x644   :  { %v3974_v6 = vpop.eup %3973  ;;  %3983 = vrcp.f32 %v2937_v29  ;;  %v2939_v59 = vadd.f32 1.0, %v3972_v56  ;;  %v2665_v51 = vadd.f32 %v2664_v58, %v5196_v60  ;;  %v2666_v62 = vpop.f32.mrb[98].mxu1 }
 0x645   :  { %3985 = vrcp.f32 %v2938_v41  ;;  %v2940_v3 = vadd.f32 1.0, %v3974_v6  ;;  %v3315_v21 = vmul.f32 -1.442695, %v2663_v43  ;;  %v2667_v61 = vadd.f32 %v2666_v62, %v5194_v37  ;;  %v2668_v16 = vpop.f32.mrb[99].mxu1 }
 0x646   :  { %3987 = vrcp.f32 %v2939_v59  ;;  %v3316_v24 = vmul.f32 -1.442695, %v2665_v51  ;;  %v2669_v14 = vadd.f32 %v2668_v16, %v5196_v60 }
 0x647   :  { %v3976_v31 = vpop.eup %3975  ;;  %3989 = vrcp.f32 %v2940_v3  ;;  %v3317_v40 = vmul.f32 -1.442695, %v2667_v61 }
 0x648   :  { %v3978_v4 = vpop.eup %3977  ;;  %3125 = vst [vmem:[#allocation7 + $0x140] sm:$0xff] %v3976_v31  ;;  %3991 = vpow2.f32 %v3315_v21  ;;  %v3318_v5 = vmul.f32 -1.442695, %v2669_v14 }
 0x649   :  { %v3980_v7 = vpop.eup %3979  ;;  %3126 = vst [vmem:[#allocation7 + $0x148] sm:$0xff] %v3978_v4  ;;  %3993 = vpow2.f32 %v3316_v24 }
 0x64a   :  { %v3982_v1 = vpop.eup %3981  ;;  %3127 = vst [vmem:[#allocation7 + $0x150] sm:$0xff] %v3980_v7  ;;  %3995 = vpow2.f32 %v3317_v40  ;;  %v2672_v49 = vpop.f32.mrb[100].mxu1 }
 0x64b   :  { %3128 = vst [vmem:[#allocation7 + $0x158] sm:$0xff] %v3982_v1  ;;  %3997 = vpow2.f32 %v3318_v5  ;;  %v2673_v19 = vadd.f32 %v2672_v49, %v5194_v37  ;;  %v2674_v30 = vpop.f32.mrb[101].mxu1 }
 0x64c   :  { %v2675_v12 = vadd.f32 %v2674_v30, %v5196_v60  ;;  %v2676_v15 = vpop.f32.mrb[102].mxu1 }
 0x64d   :  { %v3319_v17 = vmul.f32 -1.442695, %v2673_v19  ;;  %v2677_v32 = vadd.f32 %v2676_v15, %v5194_v37  ;;  %v2678_v13 = vpop.f32.mrb[103].mxu1 }
 0x64e   :  { %v3984_v18 = vpop.eup %3983  ;;  %v3320_v0 = vmul.f32 -1.442695, %v2675_v12  ;;  %v2679_v22 = vadd.f32 %v2678_v13, %v5196_v60 }
 0x64f   :  { %v3986_v23 = vpop.eup %3985  ;;  %3129 = vst [vmem:[#allocation7 + $0x160] sm:$0xff] %v3984_v18  ;;  %3999 = vpow2.f32 %v3319_v17  ;;  %v3321_v25 = vmul.f32 -1.442695, %v2677_v32 }
 0x650   :  { %v3988_v38 = vpop.eup %3987  ;;  %3130 = vst [vmem:[#allocation7 + $0x168] sm:$0xff] %v3986_v23  ;;  %4001 = vpow2.f32 %v3320_v0  ;;  %v3322_v28 = vmul.f32 -1.442695, %v2679_v22 }
 0x651   :  { %v3990_v46 = vpop.eup %3989  ;;  %3131 = vst [vmem:[#allocation7 + $0x170] sm:$0xff] %v3988_v38  ;;  %4003 = vpow2.f32 %v3321_v25 }
 0x652   :  { %v3992_v48 = vpop.eup %3991  ;;  %3132 = vst [vmem:[#allocation7 + $0x178] sm:$0xff] %v3990_v46  ;;  %4005 = vpow2.f32 %v3322_v28 }
 0x653   :  { %v3994_v33 = vpop.eup %3993  ;;  %v2941_v11 = vadd.f32 1.0, %v3992_v48 }
 0x654   :  { %v3996_v34 = vpop.eup %3995  ;;  %v2942_v36 = vadd.f32 1.0, %v3994_v33 }
 0x655   :  { %v3998_v35 = vpop.eup %3997  ;;  %4007 = vrcp.f32 %v2941_v11  ;;  %v2943_v26 = vadd.f32 1.0, %v3996_v34 }
 0x656   :  { %4009 = vrcp.f32 %v2942_v36  ;;  %v2944_v54 = vadd.f32 1.0, %v3998_v35 }
 0x657   :  { %4011 = vrcp.f32 %v2943_v26 }
 0x658   :  { %4013 = vrcp.f32 %v2944_v54  ;;  %v2682_v39 = vpop.f32.mrb[104].mxu1 }
 0x659   :  { %v4000_v63 = vpop.eup %3999  ;;  %v2683_v42 = vadd.f32 %v2682_v39, %v5194_v37  ;;  %v2684_v10 = vpop.f32.mrb[105].mxu1 }
 0x65a   :  { %v4002_v44 = vpop.eup %4001  ;;  %v2945_v2 = vadd.f32 1.0, %v4000_v63  ;;  %v2685_v27 = vadd.f32 %v2684_v10, %v5196_v60  ;;  %v2686_v45 = vpop.f32.mrb[106].mxu1 }
 0x65b   :  { %v4004_v8 = vpop.eup %4003  ;;  %v2946_v52 = vadd.f32 1.0, %v4002_v44  ;;  %v2687_v20 = vadd.f32 %v2686_v45, %v5194_v37  ;;  %v2688_v47 = vpop.f32.mrb[107].mxu1  ;;  %v3323_v9 = vmul.f32 -1.442695, %v2683_v42 }
 0x65c   :  { %v4006_v57 = vpop.eup %4005  ;;  %4015 = vrcp.f32 %v2945_v2  ;;  %v2947_v50 = vadd.f32 1.0, %v4004_v8  ;;  %v2689_v53 = vadd.f32 %v2688_v47, %v5196_v60  ;;  %v3324_v55 = vmul.f32 -1.442695, %v2685_v27 }
 0x65d   :  { %4017 = vrcp.f32 %v2946_v52  ;;  %v2948_v29 = vadd.f32 1.0, %v4006_v57  ;;  %v3325_v56 = vmul.f32 -1.442695, %v2687_v20 }
 0x65e   :  { %4019 = vrcp.f32 %v2947_v50  ;;  %v3326_v43 = vmul.f32 -1.442695, %v2689_v53 }
 0x65f   :  { %v4008_v41 = vpop.eup %4007  ;;  %4021 = vrcp.f32 %v2948_v29 }
 0x660   :  { %v4010_v58 = vpop.eup %4009  ;;  %3133 = vst [vmem:[#allocation7 + $0x180] sm:$0xff] %v4008_v41  ;;  %4023 = vpow2.f32 %v3323_v9  ;;  %v2692_v6 = vpop.f32.mrb[108].mxu1 }
 0x661   :  { %v4012_v59 = vpop.eup %4011  ;;  %3134 = vst [vmem:[#allocation7 + $0x188] sm:$0xff] %v4010_v58  ;;  %4025 = vpow2.f32 %v3324_v55  ;;  %v2693_v51 = vadd.f32 %v2692_v6, %v5194_v37  ;;  %v2694_v62 = vpop.f32.mrb[109].mxu1 }
 0x662   :  { %v4014_v3 = vpop.eup %4013  ;;  %3135 = vst [vmem:[#allocation7 + $0x190] sm:$0xff] %v4012_v59  ;;  %4027 = vpow2.f32 %v3325_v56  ;;  %v2695_v21 = vadd.f32 %v2694_v62, %v5196_v60  ;;  %v2696_v61 = vpop.f32.mrb[110].mxu1 }
 0x663   :  { %3136 = vst [vmem:[#allocation7 + $0x198] sm:$0xff] %v4014_v3  ;;  %4029 = vpow2.f32 %v3326_v43  ;;  %v3327_v16 = vmul.f32 -1.442695, %v2693_v51  ;;  %v2697_v24 = vadd.f32 %v2696_v61, %v5194_v37  ;;  %v2698_v14 = vpop.f32.mrb[111].mxu1 }
 0x664   :  { %v3328_v31 = vmul.f32 -1.442695, %v2695_v21  ;;  %v2699_v40 = vadd.f32 %v2698_v14, %v5196_v60 }
 0x665   :  { %4031 = vpow2.f32 %v3327_v16  ;;  %v3329_v4 = vmul.f32 -1.442695, %v2697_v24 }
 0x666   :  { %v4016_v5 = vpop.eup %4015  ;;  %4033 = vpow2.f32 %v3328_v31  ;;  %v3330_v7 = vmul.f32 -1.442695, %v2699_v40 }
 0x667   :  { %v4018_v1 = vpop.eup %4017  ;;  %3137 = vst [vmem:[#allocation7 + $0x1a0] sm:$0xff] %v4016_v5  ;;  %4035 = vpow2.f32 %v3329_v4 }
 0x668   :  { %v4020_v49 = vpop.eup %4019  ;;  %3138 = vst [vmem:[#allocation7 + $0x1a8] sm:$0xff] %v4018_v1  ;;  %4037 = vpow2.f32 %v3330_v7 }
 0x669   :  { %v4022_v19 = vpop.eup %4021  ;;  %3139 = vst [vmem:[#allocation7 + $0x1b0] sm:$0xff] %v4020_v49 }
 0x66a   :  { %v4024_v30 = vpop.eup %4023  ;;  %3140 = vst [vmem:[#allocation7 + $0x1b8] sm:$0xff] %v4022_v19 }
 0x66b   :  { %v4026_v37 = vpop.eup %4025  ;;  %v2949_v12 = vadd.f32 1.0, %v4024_v30 }
 0x66c   :  { %v4028_v15 = vpop.eup %4027  ;;  %v2950_v17 = vadd.f32 1.0, %v4026_v37 }
 0x66d   :  { %v4030_v60 = vpop.eup %4029  ;;  %4039 = vrcp.f32 %v2949_v12  ;;  %v2951_v32 = vadd.f32 1.0, %v4028_v15 }
 0x66e   :  { %4041 = vrcp.f32 %v2950_v17  ;;  %v2952_v13 = vadd.f32 1.0, %v4030_v60 }
 0x66f   :  { %v4032_v18 = vpop.eup %4031  ;;  %4043 = vrcp.f32 %v2951_v32 }
 0x670   :  { %v4034_v0 = vpop.eup %4033  ;;  %4045 = vrcp.f32 %v2952_v13  ;;  %v2953_v22 = vadd.f32 1.0, %v4032_v18 }
 0x671   :  { %v4036_v23 = vpop.eup %4035  ;;  %v2954_v25 = vadd.f32 1.0, %v4034_v0 }
 0x672   :  { %v4038_v38 = vpop.eup %4037  ;;  %4047 = vrcp.f32 %v2953_v22  ;;  %v2955_v28 = vadd.f32 1.0, %v4036_v23 }
 0x673   :  { %4049 = vrcp.f32 %v2954_v25  ;;  %v2956_v46 = vadd.f32 1.0, %v4038_v38 }
 0x674   :  { %4051 = vrcp.f32 %v2955_v28 }
 0x675   :  { %4053 = vrcp.f32 %v2956_v46 }
 0x677   :  { %v4040_v48 = vpop.eup %4039 }
 0x678   :  { %v4042_v33 = vpop.eup %4041  ;;  %3141 = vst [vmem:[#allocation7 + $0x1c0] sm:$0xff] %v4040_v48 }
 0x679   :  { %v4044_v11 = vpop.eup %4043  ;;  %3142 = vst [vmem:[#allocation7 + $0x1c8] sm:$0xff] %v4042_v33 }
 0x67a   :  { %v4046_v34 = vpop.eup %4045  ;;  %3143 = vst [vmem:[#allocation7 + $0x1d0] sm:$0xff] %v4044_v11 }
 0x67b   :  { %3144 = vst [vmem:[#allocation7 + $0x1d8] sm:$0xff] %v4046_v34 }
 0x67c   :  { %v4048_v36 = vpop.eup %4047 }
 0x67d   :  { %v4050_v35 = vpop.eup %4049  ;;  %3145 = vst [vmem:[#allocation7 + $0x1e0] sm:$0xff] %v4048_v36 }
 0x67e   :  { %v4052_v26 = vpop.eup %4051  ;;  %3146 = vst [vmem:[#allocation7 + $0x1e8] sm:$0xff] %v4050_v35 }
 0x67f   :  { %v4054_v54 = vpop.eup %4053  ;;  %3147 = vst [vmem:[#allocation7 + $0x1f0] sm:$0xff] %v4052_v26 }
 0x680   :  { %3148 = vst [vmem:[#allocation7 + $0x1f8] sm:$0xff] %v4054_v54 }
 0x681   :  { %4110 = shalt.err (!%p4107_p6)
}
 0x682   :  { %s4111_s24 = scalar_lea.hbm %s5291_s14, 8192 }
 0x683   :  { %p4112_p7 = scmp.ne.s32.totalorder %s5291_s14, %s4111_s24  ;;  %p4115_p8 = scmp.lt.u32.totalorder %s4111_s24, %s5291_s14 }
 0x685   :  { %p4117_p9 = pnand %p4115_p8, %p4112_p7 }
 0x687   :  { %4120 = shalt.err (!%p4117_p9)
}
 0x688   :  { %3193 = dma.vmem_to_hbm [thread:$0]  %s3188_s21, 8192, %s5291_s14, [#allocation4], %s4128_s28, %s4128_s28, %s4129_s29  }
 0x689   :  { %4125 = dma.done.wait [#allocation4], 8192  }
 0x68a   :  { %4126 = vsyncadd [#allocation4], 4294959104 }
 0x68b   :  { %3201 = vsyncpa [#allocation3], 1 }
 0x68c   :  { %3202 = vsyncpa [#allocation6], 1 }
 0x68d   :  { %3203 = vsyncpa [#allocation4], 1 }

</bundles_post_ra>
